<compile_context>
chip_gen: v5e
topology: v5e:2x2
jax: 0.10.0
libtpu: 0.0.40
codegen_flags: <defaults>
</compile_context>

<pallas_src>
import functools

import jax
import jax.numpy as jnp
import numpy as np
from jax.experimental import pallas as pl
from jax.experimental.pallas import tpu as pltpu

_LANE = 128


def _cross_attn_kernel(x_ref, ctx_ref, wq_ref, wk_ref, wv_ref, wo_ref, bo_ref,
                       o_ref, q_scr, k_scr, v_scr, oh_scr, *,
                       bt, n_pts, m_true, m_pad, heads, dim_head, approx_recip):
    # x_ref:   (Bt, N, Dq)    bf16 query features of Bt batch elements
    # ctx_ref: (Bt, Mp, Dcp)  bf16 zero-padded context rows
    # wq_ref:  (Dq, inner)    bf16, transposed (y = x @ W), attention scale folded in
    # wk_ref:  (Dcp, inner)   bf16 (zero rows for the Dc padding)
    # wv_ref:  (Dcp, inner)   bf16
    # wo_ref:  (inner, Dq)    bf16
    # bo_ref:  (1, Dq)        f32
    # o_ref:   (Bt, N, Dq)
    # scratch: q (Bt,N,inner) / k,v (Bt,Mp,inner) / head-out (Bt,N,inner), all bf16
    dq = x_ref.shape[-1]
    dcp = ctx_ref.shape[-1]
    inner = heads * dim_head
    cdt = jnp.bfloat16

    # ---- projections: full-K matmuls on the whole batch block (rows = Bt*N / Bt*Mp)
    f = x_ref[...].reshape(bt * n_pts, dq)       # bf16, free leading-dim merge
    c = ctx_ref[...].reshape(bt * m_pad, dcp)    # bf16

    q_scr[...] = jnp.dot(f, wq_ref[...], preferred_element_type=jnp.float32
                         ).reshape(bt, n_pts, inner).astype(cdt)
    k_scr[...] = jnp.dot(c, wk_ref[...], preferred_element_type=jnp.float32
                         ).reshape(bt, m_pad, inner).astype(cdt)
    v_scr[...] = jnp.dot(c, wv_ref[...], preferred_element_type=jnp.float32
                         ).reshape(bt, m_pad, inner).astype(cdt)

    # Key-padding mask (built once, lane axis = Mp so score tiles are lane-dense).
    # TODO(synk): optional user-supplied boolean `mask` from the reference forward
    # is not wired up; only the (mandatory) padded-key mask is applied.
    neg = jnp.float32(-jnp.finfo(jnp.float32).max)
    if m_pad > m_true:
        key_live = jax.lax.broadcasted_iota(jnp.int32, (1, 1, m_pad), 2) < m_true
    else:
        key_live = None

    # ---- per-head attention; each matmul is batched over the Bt batch elements.
    # heads is small -> static unroll; all operands come from VMEM scratch refs so
    # nothing stays live across head iterations.
    for h in range(heads):
        sl = pl.ds(h * dim_head, dim_head)
        qh = q_scr[:, :, sl]                                  # (Bt, N,  d) bf16
        kh = k_scr[:, :, sl]                                  # (Bt, Mp, d) bf16
        vh = v_scr[:, :, sl]                                  # (Bt, Mp, d) bf16

        sim = jnp.einsum("bnd,bmd->bnm", qh, kh,
                         preferred_element_type=jnp.float32)  # (Bt, N, Mp) lane-dense
        if key_live is not None:
            sim = jnp.where(key_live, sim, neg)
        sim = sim - jnp.max(sim, axis=-1, keepdims=True)
        p = jnp.exp(sim)
        denom = jnp.sum(p, axis=-1, keepdims=True)
        if approx_recip:
            attn = p * pl.reciprocal(denom, approx=True)      # EUP slot
        else:
            attn = p / denom

        # K = Mp (>=128) full-depth contraction.
        oh = jnp.einsum("bnm,bmd->bnd", attn.astype(cdt), vh,
                        preferred_element_type=jnp.float32)   # (Bt, N, d)
        oh_scr[:, :, sl] = oh.astype(cdt)                     # concat via lane-offset store

    # ---- single hoisted output projection (K = inner) + bias, lane-dense store.
    out = jnp.dot(oh_scr[...].reshape(bt * n_pts, inner), wo_ref[...],
                  preferred_element_type=jnp.float32)         # (Bt*N, Dq)
    out = out + bo_ref[...]
    o_ref[...] = out.reshape(bt, n_pts, dq).astype(o_ref.dtype)


def cross_attention_pallas(x, context, params, *, heads, dim_head,
                           block_b=None, approx_softmax_recip=True):
    """x: (B, N, Dq) batch-grouped sparse features; context: (B, M, Dc)."""
    B, N, Dq = x.shape
    Bc, M, Dc = context.shape
    assert Bc == B
    inner = heads * dim_head
    scale = dim_head ** (-0.5)
    assert Dq % _LANE == 0 and inner % _LANE == 0, "lane-dense Dq/inner required"

    # Pad context length and context feature dim up to lane width (zero padding is
    # exact for the k/v projections; padded keys are masked in-kernel).
    Mp = ((M + _LANE - 1) // _LANE) * _LANE
    Dcp = ((Dc + _LANE - 1) // _LANE) * _LANE

    # bf16 at the pallas_call boundary: halves streamed DMA bytes and VMEM blocks.
    wdt = jnp.bfloat16
    xb = x.astype(wdt)
    ctx = jnp.pad(context.astype(wdt), ((0, 0), (0, Mp - M), (0, Dcp - Dc)))

    # Pre-transpose weights to `y = x @ W` layout, fold the attention scale into Wq.
    wq_t = (params["wq"].T * scale).astype(wdt)                      # (Dq, inner)
    wk_t = jnp.pad(params["wk"].T, ((0, Dcp - Dc), (0, 0))).astype(wdt)  # (Dcp, inner)
    wv_t = jnp.pad(params["wv"].T, ((0, Dcp - Dc), (0, 0))).astype(wdt)  # (Dcp, inner)
    wo_t = params["wo"].T.astype(wdt)                                # (inner, Dq)
    bo = params["bo"].reshape(1, Dq).astype(jnp.float32)

    # Explicit VMEM budget (double-buffered streamed blocks + 2x weight buffers +
    # scratch).  Keeps real-LDM-sized configs inside v7x's 64 MiB physical VMEM.
    out_itemsize = x.dtype.itemsize

    def _vmem_bytes(bt):
        x_blk = bt * N * Dq * 2
        c_blk = bt * Mp * Dcp * 2
        o_blk = bt * N * Dq * out_itemsize
        weights = (Dq * inner + 2 * Dcp * inner + inner * Dq) * 2 + Dq * 4
        scratch = (2 * bt * N * inner + 2 * bt * Mp * inner) * 2
        return 2 * (x_blk + c_blk + o_blk) + 2 * weights + scratch

    budget = 40 << 20   # headroom under v7x's 64 MiB physical / 32 MiB default scoped

    if block_b is None:
        divisors = [d for d in range(1, B + 1) if B % d == 0]
        fitting = [d for d in divisors if _vmem_bytes(d) <= budget] or [1]
        row_target = 256   # fills v6e/v7x 256-wide MXU; v5e saturates at 128 anyway
        # Prefer: pipelined grid (>=2 steps) AND >=row_target projection rows.
        cand = [d for d in fitting if B // d >= 2 and d * N >= row_target]
        if cand:
            block_b = min(cand)
        else:
            # Never collapse to a single-step grid (no pipelining / megacore) unless B==1.
            cand = [d for d in fitting if B // d >= 2]
            block_b = max(cand) if cand else max(fitting)
    Bt = block_b
    assert B % Bt == 0
    grid = (B // Bt,)

    vmem_limit = int(min(64 << 20, max(32 << 20, 2 * _vmem_bytes(Bt))))

    kernel = functools.partial(
        _cross_attn_kernel, bt=Bt, n_pts=N, m_true=M, m_pad=Mp,
        heads=heads, dim_head=dim_head, approx_recip=approx_softmax_recip)

    # Weights/bias use constant index maps -> resident in VMEM across grid steps.
    # TODO(synk): at real LDM dims on v7x, single-buffer these resident specs
    # (pipeline_mode=pl.Buffered(1)) to halve their VMEM footprint.
    const2 = lambda g: (0, 0)
    return pl.pallas_call(
        kernel,
        out_shape=jax.ShapeDtypeStruct((B, N, Dq), x.dtype),
        grid_spec=pltpu.PrefetchScalarGridSpec(
            num_scalar_prefetch=0,
            grid=grid,
            in_specs=[
                pl.BlockSpec((Bt, N, Dq), lambda g: (g, 0, 0)),
                pl.BlockSpec((Bt, Mp, Dcp), lambda g: (g, 0, 0)),
                pl.BlockSpec((Dq, inner), const2),
                pl.BlockSpec((Dcp, inner), const2),
                pl.BlockSpec((Dcp, inner), const2),
                pl.BlockSpec((inner, Dq), const2),
                pl.BlockSpec((1, Dq), const2),
            ],
            out_specs=pl.BlockSpec((Bt, N, Dq), lambda g: (g, 0, 0)),
            scratch_shapes=[
                pltpu.VMEM((Bt, N, inner), jnp.bfloat16),   # q
                pltpu.VMEM((Bt, Mp, inner), jnp.bfloat16),  # k
                pltpu.VMEM((Bt, Mp, inner), jnp.bfloat16),  # v
                pltpu.VMEM((Bt, N, inner), jnp.bfloat16),   # per-head outputs
            ],
        ),
        compiler_params=pltpu.CompilerParams(
            dimension_semantics=("parallel",),   # batch axis -> megacore sharding
            vmem_limit_bytes=vmem_limit,
        ),
    )(xb, ctx, wq_t, wk_t, wv_t, wo_t, bo)


def cross_attention_ref(x, context, params, *, heads, dim_head):
    """Plain-JAX f32 reference mirroring the PyTorch forward (per-batch loop)."""
    B, N, Dq = x.shape
    scale = dim_head ** (-0.5)
    outs = []
    for i in range(B):
        f = x[i]                         # (N, Dq)
        c = context[i]                   # (M, Dc)
        q = f @ params["wq"].T           # (N, inner)
        k = c @ params["wk"].T
        v = c @ params["wv"].T
        q = q.reshape(N, heads, dim_head).transpose(1, 0, 2)       # (h, N, d)
        k = k.reshape(-1, heads, dim_head).transpose(1, 0, 2)      # (h, M, d)
        v = v.reshape(-1, heads, dim_head).transpose(1, 0, 2)
        sim = jnp.einsum("hid,hjd->hij", q, k) * scale
        attn = jax.nn.softmax(sim, axis=-1)
        o = jnp.einsum("hij,hjd->hid", attn, v)                    # (h, N, d)
        o = o.transpose(1, 0, 2).reshape(N, heads * dim_head)
        o = o @ params["wo"].T + params["bo"]
        outs.append(o)
    return jnp.stack(outs, axis=0)


if __name__ == "__main__":
    # Small shapes consistent with the module: B distinct batch indices in x.C[:,-1],
    # N points per batch element, context length M, query_dim lane-dense (=128).
    B = 4            # number of distinct batch indices
    N = 64           # points per batch element (assumed equal)
    query_dim = 128
    context_dim = 64
    M = 8            # context sequence length (padded to 128 inside the wrapper)
    heads = 4
    dim_head = 32
    inner = heads * dim_head

    key = jax.random.PRNGKey(0)
    kx, kc, k1, k2, k3, k4, k5 = jax.random.split(key, 7)

    # Sparse-tensor stand-in: flat features sorted by batch index, then grouped.
    feats_flat = jax.random.normal(kx, (B * N, query_dim), dtype=jnp.float32)
    coords_batch = jnp.repeat(jnp.arange(B), N)          # x.C[:, -1]
    x = feats_flat.reshape(B, N, query_dim)              # batch-grouped dense view
    context = jax.random.normal(kc, (B, M, context_dim), dtype=jnp.float32)

    # Deterministic parameters (PyTorch Linear stores weight as (out, in)).
    params = {
        "wq": 0.05 * jax.random.normal(k1, (inner, query_dim), dtype=jnp.float32),
        "wk": 0.05 * jax.random.normal(k2, (inner, context_dim), dtype=jnp.float32),
        "wv": 0.05 * jax.random.normal(k3, (inner, context_dim), dtype=jnp.float32),
        "wo": 0.05 * jax.random.normal(k4, (query_dim, inner), dtype=jnp.float32),
        "bo": 0.01 * jax.random.normal(k5, (query_dim,), dtype=jnp.float32),
    }

    out = cross_attention_pallas(x, context, params, heads=heads, dim_head=dim_head)
    out = jax.block_until_ready(out)

    ref = cross_attention_ref(x, context, params, heads=heads, dim_head=dim_head)
    # bf16 MXU operands / bf16-at-boundary inputs (f32 accumulation) -> loose tolerance.
    np.testing.assert_allclose(np.asarray(out), np.asarray(ref),
                               rtol=2e-2, atol=2e-2)

    # Scatter back into the flat sparse-feature layout (nfeats[indices] = out);
    # coords/stride/cmaps/kmaps pass through the SparseTensor unchanged.
    nfeats = out.reshape(B * N, query_dim)
    _ = jax.block_until_ready(nfeats)
    _ = coords_batch

    print("KERNEL_OK")
</pallas_src>

<mosaic_0001>
module attributes {stable_mosaic.version = 11 : i64} {
  func.func @_cross_attn_kernel(%arg0: i32, %arg1: memref<2x64x128xbf16, #tpu.memory_space<vmem>>, %arg2: memref<2x128x128xbf16, #tpu.memory_space<vmem>>, %arg3: memref<128x128xbf16, #tpu.memory_space<vmem>>, %arg4: memref<128x128xbf16, #tpu.memory_space<vmem>>, %arg5: memref<128x128xbf16, #tpu.memory_space<vmem>>, %arg6: memref<128x128xbf16, #tpu.memory_space<vmem>>, %arg7: memref<1x128xf32, #tpu.memory_space<vmem>>, %arg8: memref<2x64x128xf32, #tpu.memory_space<vmem>>, %arg9: memref<2x64x128xbf16, #tpu.memory_space<vmem>>, %arg10: memref<2x128x128xbf16, #tpu.memory_space<vmem>>, %arg11: memref<2x128x128xbf16, #tpu.memory_space<vmem>>, %arg12: memref<2x64x128xbf16, #tpu.memory_space<vmem>>) attributes {dimension_semantics = [#tpu.dimension_semantics<parallel>], iteration_bounds = array<i64: 2>, scalar_prefetch = 0 : i64, scratch_operands = 4 : i64, tpu.core_type = #tpu.core_type<tc>, window_params = [{transform_indices = @transform_0, window_bounds = array<i64: 2, 64, 128>}, {transform_indices = @transform_1, window_bounds = array<i64: 2, 128, 128>}, {pipeline_mode = #tpu.pipeline_mode<synchronous>, transform_indices = @transform_2, window_bounds = array<i64: 128, 128>}, {pipeline_mode = #tpu.pipeline_mode<synchronous>, transform_indices = @transform_3, window_bounds = array<i64: 128, 128>}, {pipeline_mode = #tpu.pipeline_mode<synchronous>, transform_indices = @transform_4, window_bounds = array<i64: 128, 128>}, {pipeline_mode = #tpu.pipeline_mode<synchronous>, transform_indices = @transform_5, window_bounds = array<i64: 128, 128>}, {pipeline_mode = #tpu.pipeline_mode<synchronous>, transform_indices = @transform_6, window_bounds = array<i64: 1, 128>}, {transform_indices = @transform_7, window_bounds = array<i64: 2, 64, 128>}]} {
    %c0 = arith.constant 0 : index
    %c0_0 = arith.constant 0 : index
    %c0_1 = arith.constant 0 : index
    %0 = vector.load %arg1[%c0, %c0_0, %c0_1] : memref<2x64x128xbf16, #tpu.memory_space<vmem>>, vector<2x64x128xbf16>
    %1 = vector.shape_cast %0 : vector<2x64x128xbf16> to vector<128x128xbf16>
    %c0_2 = arith.constant 0 : index
    %c0_3 = arith.constant 0 : index
    %c0_4 = arith.constant 0 : index
    %2 = vector.load %arg2[%c0_2, %c0_3, %c0_4] : memref<2x128x128xbf16, #tpu.memory_space<vmem>>, vector<2x128x128xbf16>
    %3 = vector.shape_cast %2 : vector<2x128x128xbf16> to vector<256x128xbf16>
    %c0_5 = arith.constant 0 : index
    %c0_6 = arith.constant 0 : index
    %4 = vector.load %arg3[%c0_5, %c0_6] : memref<128x128xbf16, #tpu.memory_space<vmem>>, vector<128x128xbf16>
    %cst = arith.constant dense<0.000000e+00> : vector<128x128xf32>
    %5 = tpu.matmul %1, %4, %cst {dimension_numbers = #tpu.dot_dimension_numbers<[1], [0], [0], [1], [0, 0, 1, 1], [], []>} : vector<128x128xbf16>, vector<128x128xbf16>, vector<128x128xf32> -> vector<128x128xf32>
    %6 = vector.shape_cast %5 : vector<128x128xf32> to vector<2x64x128xf32>
    %7 = arith.truncf %6 : vector<2x64x128xf32> to vector<2x64x128xbf16>
    %c0_7 = arith.constant 0 : index
    %c0_8 = arith.constant 0 : index
    %c0_9 = arith.constant 0 : index
    %8 = vector.load %arg9[%c0_7, %c0_8, %c0_9] : memref<2x64x128xbf16, #tpu.memory_space<vmem>>, vector<2x64x128xbf16>
    tpu.vector_store %arg9[%c0_7, %c0_8, %c0_9], %7 {strides = array<i32>} : memref<2x64x128xbf16, #tpu.memory_space<vmem>>, vector<2x64x128xbf16>,
    %c0_10 = arith.constant 0 : index
    %c0_11 = arith.constant 0 : index
    %9 = vector.load %arg4[%c0_10, %c0_11] : memref<128x128xbf16, #tpu.memory_space<vmem>>, vector<128x128xbf16>
    %cst_12 = arith.constant dense<0.000000e+00> : vector<256x128xf32>
    %10 = tpu.matmul %3, %9, %cst_12 {dimension_numbers = #tpu.dot_dimension_numbers<[1], [0], [0], [1], [0, 0, 1, 1], [], []>} : vector<256x128xbf16>, vector<128x128xbf16>, vector<256x128xf32> -> vector<256x128xf32>
    %11 = vector.shape_cast %10 : vector<256x128xf32> to vector<2x128x128xf32>
    %12 = arith.truncf %11 : vector<2x128x128xf32> to vector<2x128x128xbf16>
    %c0_13 = arith.constant 0 : index
    %c0_14 = arith.constant 0 : index
    %c0_15 = arith.constant 0 : index
    %13 = vector.load %arg10[%c0_13, %c0_14, %c0_15] : memref<2x128x128xbf16, #tpu.memory_space<vmem>>, vector<2x128x128xbf16>
    tpu.vector_store %arg10[%c0_13, %c0_14, %c0_15], %12 {strides = array<i32>} : memref<2x128x128xbf16, #tpu.memory_space<vmem>>, vector<2x128x128xbf16>,
    %c0_16 = arith.constant 0 : index
    %c0_17 = arith.constant 0 : index
    %14 = vector.load %arg5[%c0_16, %c0_17] : memref<128x128xbf16, #tpu.memory_space<vmem>>, vector<128x128xbf16>
    %cst_18 = arith.constant dense<0.000000e+00> : vector<256x128xf32>
    %15 = tpu.matmul %3, %14, %cst_18 {dimension_numbers = #tpu.dot_dimension_numbers<[1], [0], [0], [1], [0, 0, 1, 1], [], []>} : vector<256x128xbf16>, vector<128x128xbf16>, vector<256x128xf32> -> vector<256x128xf32>
    %16 = vector.shape_cast %15 : vector<256x128xf32> to vector<2x128x128xf32>
    %17 = arith.truncf %16 : vector<2x128x128xf32> to vector<2x128x128xbf16>
    %c0_19 = arith.constant 0 : index
    %c0_20 = arith.constant 0 : index
    %c0_21 = arith.constant 0 : index
    %18 = vector.load %arg11[%c0_19, %c0_20, %c0_21] : memref<2x128x128xbf16, #tpu.memory_space<vmem>>, vector<2x128x128xbf16>
    tpu.vector_store %arg11[%c0_19, %c0_20, %c0_21], %17 {strides = array<i32>} : memref<2x128x128xbf16, #tpu.memory_space<vmem>>, vector<2x128x128xbf16>,
    %19 = tpu.iota {dimensions = array<i32: 2>} : vector<1x1x128xi32>
    %c8_i32 = arith.constant 8 : i32
    %20 = vector.broadcast %c8_i32 : i32 to vector<1x1x128xi32>
    %21 = arith.cmpi slt, %19, %20 : vector<1x1x128xi32>
    %c0_22 = arith.constant 0 : index
    %c0_23 = arith.constant 0 : index
    %c0_24 = arith.constant 0 : index
    %22 = vector.load %arg9[%c0_22, %c0_23, %c0_24] : memref<2x64x128xbf16, #tpu.memory_space<vmem>>, vector<2x64x32xbf16>
    %c0_25 = arith.constant 0 : index
    %c0_26 = arith.constant 0 : index
    %c0_27 = arith.constant 0 : index
    %23 = vector.load %arg10[%c0_25, %c0_26, %c0_27] : memref<2x128x128xbf16, #tpu.memory_space<vmem>>, vector<2x128x32xbf16>
    %c0_28 = arith.constant 0 : index
    %c0_29 = arith.constant 0 : index
    %c0_30 = arith.constant 0 : index
    %24 = vector.load %arg11[%c0_28, %c0_29, %c0_30] : memref<2x128x128xbf16, #tpu.memory_space<vmem>>, vector<2x128x32xbf16>
    "tpu.trace_start"() <{level = 10 : i32, message = "bnd,bmd->bnm"}> : () -> ()
    %cst_31 = arith.constant dense<0.000000e+00> : vector<2x64x128xf32>
    %25 = tpu.matmul %22, %23, %cst_31 {dimension_numbers = #tpu.dot_dimension_numbers<[2], [2], [1], [1], [0, 0, 0, 1, 1, 1], [0], [0]>} : vector<2x64x32xbf16>, vector<2x128x32xbf16>, vector<2x64x128xf32> -> vector<2x64x128xf32>
    %cst_32 = arith.constant -3.40282347E+38 : f32
    "tpu.trace_stop"() : () -> ()
    %26 = vector.shape_cast %21 : vector<1x1x128xi1> to vector<1x1x128xi1>
    %27 = vector.broadcast %26 : vector<1x1x128xi1> to vector<2x64x128xi1>
    %28 = vector.broadcast %cst_32 : f32 to vector<2x64x128xf32>
    %29 = arith.select %27, %25, %28 : vector<2x64x128xi1>, vector<2x64x128xf32>
    %cst_33 = arith.constant dense<0xFF800000> : vector<2x64xf32>
    %30 = vector.multi_reduction <maximumf>, %29, %cst_33 [2] : vector<2x64x128xf32> to vector<2x64xf32>
    %31 = vector.shape_cast %30 : vector<2x64xf32> to vector<2x64x1xf32>
    %32 = vector.broadcast %31 : vector<2x64x1xf32> to vector<2x64x128xf32>
    %33 = arith.subf %29, %32 : vector<2x64x128xf32>
    %34 = math.exp %33 : vector<2x64x128xf32>
    %cst_34 = arith.constant dense<0.000000e+00> : vector<2x64xf32>
    %35 = vector.multi_reduction <add>, %34, %cst_34 [2] : vector<2x64x128xf32> to vector<2x64xf32>
    %36 = vector.shape_cast %35 : vector<2x64xf32> to vector<2x64x1xf32>
    %37 = tpu.reciprocal %36 {approx = true} : vector<2x64x1xf32> -> vector<2x64x1xf32>
    %38 = vector.broadcast %37 : vector<2x64x1xf32> to vector<2x64x128xf32>
    %39 = arith.mulf %34, %38 : vector<2x64x128xf32>
    %40 = arith.truncf %39 : vector<2x64x128xf32> to vector<2x64x128xbf16>
    "tpu.trace_start"() <{level = 10 : i32, message = "bnm,bmd->bnd"}> : () -> ()
    %cst_35 = arith.constant dense<0.000000e+00> : vector<2x64x32xf32>
    %41 = tpu.matmul %40, %24, %cst_35 {dimension_numbers = #tpu.dot_dimension_numbers<[2], [1], [1], [2], [0, 0, 0, 1, 1, 2], [0], [0]>} : vector<2x64x128xbf16>, vector<2x128x32xbf16>, vector<2x64x32xf32> -> vector<2x64x32xf32>
    "tpu.trace_stop"() : () -> ()
    %42 = arith.truncf %41 : vector<2x64x32xf32> to vector<2x64x32xbf16>
    %c0_36 = arith.constant 0 : index
    %c0_37 = arith.constant 0 : index
    %c0_38 = arith.constant 0 : index
    %43 = vector.load %arg12[%c0_36, %c0_37, %c0_38] : memref<2x64x128xbf16, #tpu.memory_space<vmem>>, vector<2x64x32xbf16>
    tpu.vector_store %arg12[%c0_36, %c0_37, %c0_38], %42 {strides = array<i32>} : memref<2x64x128xbf16, #tpu.memory_space<vmem>>, vector<2x64x32xbf16>,
    %c0_39 = arith.constant 0 : index
    %c0_40 = arith.constant 0 : index
    %c32 = arith.constant 32 : index
    %44 = vector.load %arg9[%c0_39, %c0_40, %c32] : memref<2x64x128xbf16, #tpu.memory_space<vmem>>, vector<2x64x32xbf16>
    %c0_41 = arith.constant 0 : index
    %c0_42 = arith.constant 0 : index
    %c32_43 = arith.constant 32 : index
    %45 = vector.load %arg10[%c0_41, %c0_42, %c32_43] : memref<2x128x128xbf16, #tpu.memory_space<vmem>>, vector<2x128x32xbf16>
    %c0_44 = arith.constant 0 : index
    %c0_45 = arith.constant 0 : index
    %c32_46 = arith.constant 32 : index
    %46 = vector.load %arg11[%c0_44, %c0_45, %c32_46] : memref<2x128x128xbf16, #tpu.memory_space<vmem>>, vector<2x128x32xbf16>
    "tpu.trace_start"() <{level = 10 : i32, message = "bnd,bmd->bnm"}> : () -> ()
    %cst_47 = arith.constant dense<0.000000e+00> : vector<2x64x128xf32>
    %47 = tpu.matmul %44, %45, %cst_47 {dimension_numbers = #tpu.dot_dimension_numbers<[2], [2], [1], [1], [0, 0, 0, 1, 1, 1], [0], [0]>} : vector<2x64x32xbf16>, vector<2x128x32xbf16>, vector<2x64x128xf32> -> vector<2x64x128xf32>
    %cst_48 = arith.constant -3.40282347E+38 : f32
    "tpu.trace_stop"() : () -> ()
    %48 = vector.shape_cast %21 : vector<1x1x128xi1> to vector<1x1x128xi1>
    %49 = vector.broadcast %48 : vector<1x1x128xi1> to vector<2x64x128xi1>
    %50 = vector.broadcast %cst_48 : f32 to vector<2x64x128xf32>
    %51 = arith.select %49, %47, %50 : vector<2x64x128xi1>, vector<2x64x128xf32>
    %cst_49 = arith.constant dense<0xFF800000> : vector<2x64xf32>
    %52 = vector.multi_reduction <maximumf>, %51, %cst_49 [2] : vector<2x64x128xf32> to vector<2x64xf32>
    %53 = vector.shape_cast %52 : vector<2x64xf32> to vector<2x64x1xf32>
    %54 = vector.broadcast %53 : vector<2x64x1xf32> to vector<2x64x128xf32>
    %55 = arith.subf %51, %54 : vector<2x64x128xf32>
    %56 = math.exp %55 : vector<2x64x128xf32>
    %cst_50 = arith.constant dense<0.000000e+00> : vector<2x64xf32>
    %57 = vector.multi_reduction <add>, %56, %cst_50 [2] : vector<2x64x128xf32> to vector<2x64xf32>
    %58 = vector.shape_cast %57 : vector<2x64xf32> to vector<2x64x1xf32>
    %59 = tpu.reciprocal %58 {approx = true} : vector<2x64x1xf32> -> vector<2x64x1xf32>
    %60 = vector.broadcast %59 : vector<2x64x1xf32> to vector<2x64x128xf32>
    %61 = arith.mulf %56, %60 : vector<2x64x128xf32>
    %62 = arith.truncf %61 : vector<2x64x128xf32> to vector<2x64x128xbf16>
    "tpu.trace_start"() <{level = 10 : i32, message = "bnm,bmd->bnd"}> : () -> ()
    %cst_51 = arith.constant dense<0.000000e+00> : vector<2x64x32xf32>
    %63 = tpu.matmul %62, %46, %cst_51 {dimension_numbers = #tpu.dot_dimension_numbers<[2], [1], [1], [2], [0, 0, 0, 1, 1, 2], [0], [0]>} : vector<2x64x128xbf16>, vector<2x128x32xbf16>, vector<2x64x32xf32> -> vector<2x64x32xf32>
    "tpu.trace_stop"() : () -> ()
    %64 = arith.truncf %63 : vector<2x64x32xf32> to vector<2x64x32xbf16>
    %c0_52 = arith.constant 0 : index
    %c0_53 = arith.constant 0 : index
    %c32_54 = arith.constant 32 : index
    %65 = vector.load %arg12[%c0_52, %c0_53, %c32_54] : memref<2x64x128xbf16, #tpu.memory_space<vmem>>, vector<2x64x32xbf16>
    tpu.vector_store %arg12[%c0_52, %c0_53, %c32_54], %64 {strides = array<i32>} : memref<2x64x128xbf16, #tpu.memory_space<vmem>>, vector<2x64x32xbf16>,
    %c0_55 = arith.constant 0 : index
    %c0_56 = arith.constant 0 : index
    %c64 = arith.constant 64 : index
    %66 = vector.load %arg9[%c0_55, %c0_56, %c64] : memref<2x64x128xbf16, #tpu.memory_space<vmem>>, vector<2x64x32xbf16>
    %c0_57 = arith.constant 0 : index
    %c0_58 = arith.constant 0 : index
    %c64_59 = arith.constant 64 : index
    %67 = vector.load %arg10[%c0_57, %c0_58, %c64_59] : memref<2x128x128xbf16, #tpu.memory_space<vmem>>, vector<2x128x32xbf16>
    %c0_60 = arith.constant 0 : index
    %c0_61 = arith.constant 0 : index
    %c64_62 = arith.constant 64 : index
    %68 = vector.load %arg11[%c0_60, %c0_61, %c64_62] : memref<2x128x128xbf16, #tpu.memory_space<vmem>>, vector<2x128x32xbf16>
    "tpu.trace_start"() <{level = 10 : i32, message = "bnd,bmd->bnm"}> : () -> ()
    %cst_63 = arith.constant dense<0.000000e+00> : vector<2x64x128xf32>
    %69 = tpu.matmul %66, %67, %cst_63 {dimension_numbers = #tpu.dot_dimension_numbers<[2], [2], [1], [1], [0, 0, 0, 1, 1, 1], [0], [0]>} : vector<2x64x32xbf16>, vector<2x128x32xbf16>, vector<2x64x128xf32> -> vector<2x64x128xf32>
    %cst_64 = arith.constant -3.40282347E+38 : f32
    "tpu.trace_stop"() : () -> ()
    %70 = vector.shape_cast %21 : vector<1x1x128xi1> to vector<1x1x128xi1>
    %71 = vector.broadcast %70 : vector<1x1x128xi1> to vector<2x64x128xi1>
    %72 = vector.broadcast %cst_64 : f32 to vector<2x64x128xf32>
    %73 = arith.select %71, %69, %72 : vector<2x64x128xi1>, vector<2x64x128xf32>
    %cst_65 = arith.constant dense<0xFF800000> : vector<2x64xf32>
    %74 = vector.multi_reduction <maximumf>, %73, %cst_65 [2] : vector<2x64x128xf32> to vector<2x64xf32>
    %75 = vector.shape_cast %74 : vector<2x64xf32> to vector<2x64x1xf32>
    %76 = vector.broadcast %75 : vector<2x64x1xf32> to vector<2x64x128xf32>
    %77 = arith.subf %73, %76 : vector<2x64x128xf32>
    %78 = math.exp %77 : vector<2x64x128xf32>
    %cst_66 = arith.constant dense<0.000000e+00> : vector<2x64xf32>
    %79 = vector.multi_reduction <add>, %78, %cst_66 [2] : vector<2x64x128xf32> to vector<2x64xf32>
    %80 = vector.shape_cast %79 : vector<2x64xf32> to vector<2x64x1xf32>
    %81 = tpu.reciprocal %80 {approx = true} : vector<2x64x1xf32> -> vector<2x64x1xf32>
    %82 = vector.broadcast %81 : vector<2x64x1xf32> to vector<2x64x128xf32>
    %83 = arith.mulf %78, %82 : vector<2x64x128xf32>
    %84 = arith.truncf %83 : vector<2x64x128xf32> to vector<2x64x128xbf16>
    "tpu.trace_start"() <{level = 10 : i32, message = "bnm,bmd->bnd"}> : () -> ()
    %cst_67 = arith.constant dense<0.000000e+00> : vector<2x64x32xf32>
    %85 = tpu.matmul %84, %68, %cst_67 {dimension_numbers = #tpu.dot_dimension_numbers<[2], [1], [1], [2], [0, 0, 0, 1, 1, 2], [0], [0]>} : vector<2x64x128xbf16>, vector<2x128x32xbf16>, vector<2x64x32xf32> -> vector<2x64x32xf32>
    "tpu.trace_stop"() : () -> ()
    %86 = arith.truncf %85 : vector<2x64x32xf32> to vector<2x64x32xbf16>
    %c0_68 = arith.constant 0 : index
    %c0_69 = arith.constant 0 : index
    %c64_70 = arith.constant 64 : index
    %87 = vector.load %arg12[%c0_68, %c0_69, %c64_70] : memref<2x64x128xbf16, #tpu.memory_space<vmem>>, vector<2x64x32xbf16>
    tpu.vector_store %arg12[%c0_68, %c0_69, %c64_70], %86 {strides = array<i32>} : memref<2x64x128xbf16, #tpu.memory_space<vmem>>, vector<2x64x32xbf16>,
    %c0_71 = arith.constant 0 : index
    %c0_72 = arith.constant 0 : index
    %c96 = arith.constant 96 : index
    %88 = vector.load %arg9[%c0_71, %c0_72, %c96] : memref<2x64x128xbf16, #tpu.memory_space<vmem>>, vector<2x64x32xbf16>
    %c0_73 = arith.constant 0 : index
    %c0_74 = arith.constant 0 : index
    %c96_75 = arith.constant 96 : index
    %89 = vector.load %arg10[%c0_73, %c0_74, %c96_75] : memref<2x128x128xbf16, #tpu.memory_space<vmem>>, vector<2x128x32xbf16>
    %c0_76 = arith.constant 0 : index
    %c0_77 = arith.constant 0 : index
    %c96_78 = arith.constant 96 : index
    %90 = vector.load %arg11[%c0_76, %c0_77, %c96_78] : memref<2x128x128xbf16, #tpu.memory_space<vmem>>, vector<2x128x32xbf16>
    "tpu.trace_start"() <{level = 10 : i32, message = "bnd,bmd->bnm"}> : () -> ()
    %cst_79 = arith.constant dense<0.000000e+00> : vector<2x64x128xf32>
    %91 = tpu.matmul %88, %89, %cst_79 {dimension_numbers = #tpu.dot_dimension_numbers<[2], [2], [1], [1], [0, 0, 0, 1, 1, 1], [0], [0]>} : vector<2x64x32xbf16>, vector<2x128x32xbf16>, vector<2x64x128xf32> -> vector<2x64x128xf32>
    %cst_80 = arith.constant -3.40282347E+38 : f32
    "tpu.trace_stop"() : () -> ()
    %92 = vector.shape_cast %21 : vector<1x1x128xi1> to vector<1x1x128xi1>
    %93 = vector.broadcast %92 : vector<1x1x128xi1> to vector<2x64x128xi1>
    %94 = vector.broadcast %cst_80 : f32 to vector<2x64x128xf32>
    %95 = arith.select %93, %91, %94 : vector<2x64x128xi1>, vector<2x64x128xf32>
    %cst_81 = arith.constant dense<0xFF800000> : vector<2x64xf32>
    %96 = vector.multi_reduction <maximumf>, %95, %cst_81 [2] : vector<2x64x128xf32> to vector<2x64xf32>
    %97 = vector.shape_cast %96 : vector<2x64xf32> to vector<2x64x1xf32>
    %98 = vector.broadcast %97 : vector<2x64x1xf32> to vector<2x64x128xf32>
    %99 = arith.subf %95, %98 : vector<2x64x128xf32>
    %100 = math.exp %99 : vector<2x64x128xf32>
    %cst_82 = arith.constant dense<0.000000e+00> : vector<2x64xf32>
    %101 = vector.multi_reduction <add>, %100, %cst_82 [2] : vector<2x64x128xf32> to vector<2x64xf32>
    %102 = vector.shape_cast %101 : vector<2x64xf32> to vector<2x64x1xf32>
    %103 = tpu.reciprocal %102 {approx = true} : vector<2x64x1xf32> -> vector<2x64x1xf32>
    %104 = vector.broadcast %103 : vector<2x64x1xf32> to vector<2x64x128xf32>
    %105 = arith.mulf %100, %104 : vector<2x64x128xf32>
    %106 = arith.truncf %105 : vector<2x64x128xf32> to vector<2x64x128xbf16>
    "tpu.trace_start"() <{level = 10 : i32, message = "bnm,bmd->bnd"}> : () -> ()
    %cst_83 = arith.constant dense<0.000000e+00> : vector<2x64x32xf32>
    %107 = tpu.matmul %106, %90, %cst_83 {dimension_numbers = #tpu.dot_dimension_numbers<[2], [1], [1], [2], [0, 0, 0, 1, 1, 2], [0], [0]>} : vector<2x64x128xbf16>, vector<2x128x32xbf16>, vector<2x64x32xf32> -> vector<2x64x32xf32>
    "tpu.trace_stop"() : () -> ()
    %108 = arith.truncf %107 : vector<2x64x32xf32> to vector<2x64x32xbf16>
    %c0_84 = arith.constant 0 : index
    %c0_85 = arith.constant 0 : index
    %c96_86 = arith.constant 96 : index
    %109 = vector.load %arg12[%c0_84, %c0_85, %c96_86] : memref<2x64x128xbf16, #tpu.memory_space<vmem>>, vector<2x64x32xbf16>
    tpu.vector_store %arg12[%c0_84, %c0_85, %c96_86], %108 {strides = array<i32>} : memref<2x64x128xbf16, #tpu.memory_space<vmem>>, vector<2x64x32xbf16>,
    %c0_87 = arith.constant 0 : index
    %c0_88 = arith.constant 0 : index
    %c0_89 = arith.constant 0 : index
    %110 = vector.load %arg12[%c0_87, %c0_88, %c0_89] : memref<2x64x128xbf16, #tpu.memory_space<vmem>>, vector<2x64x128xbf16>
    %111 = vector.shape_cast %110 : vector<2x64x128xbf16> to vector<128x128xbf16>
    %c0_90 = arith.constant 0 : index
    %c0_91 = arith.constant 0 : index
    %112 = vector.load %arg6[%c0_90, %c0_91] : memref<128x128xbf16, #tpu.memory_space<vmem>>, vector<128x128xbf16>
    %cst_92 = arith.constant dense<0.000000e+00> : vector<128x128xf32>
    %113 = tpu.matmul %111, %112, %cst_92 {dimension_numbers = #tpu.dot_dimension_numbers<[1], [0], [0], [1], [0, 0, 1, 1], [], []>} : vector<128x128xbf16>, vector<128x128xbf16>, vector<128x128xf32> -> vector<128x128xf32>
    %c0_93 = arith.constant 0 : index
    %c0_94 = arith.constant 0 : index
    %114 = vector.load %arg7[%c0_93, %c0_94] : memref<1x128xf32, #tpu.memory_space<vmem>>, vector<1x128xf32>
    %115 = vector.broadcast %114 : vector<1x128xf32> to vector<128x128xf32>
    %116 = arith.addf %113, %115 : vector<128x128xf32>
    %117 = vector.shape_cast %116 : vector<128x128xf32> to vector<2x64x128xf32>
    %c0_95 = arith.constant 0 : index
    %c0_96 = arith.constant 0 : index
    %c0_97 = arith.constant 0 : index
    %118 = vector.load %arg8[%c0_95, %c0_96, %c0_97] : memref<2x64x128xf32, #tpu.memory_space<vmem>>, vector<2x64x128xf32>
    tpu.vector_store %arg8[%c0_95, %c0_96, %c0_97], %117 {strides = array<i32>} : memref<2x64x128xf32, #tpu.memory_space<vmem>>, vector<2x64x128xf32>,
    return
  }
  func.func @transform_0(%arg0: i32) -> (i32, i32, i32) {
    %c0_i32 = arith.constant 0 : i32
    %c0_i32_0 = arith.constant 0 : i32
    %c0_i32_1 = arith.constant 0 : i32
    return %arg0, %c0_i32, %c0_i32_0 : i32, i32, i32
  }
  func.func @transform_1(%arg0: i32) -> (i32, i32, i32) {
    %c0_i32 = arith.constant 0 : i32
    %c0_i32_0 = arith.constant 0 : i32
    %c0_i32_1 = arith.constant 0 : i32
    return %arg0, %c0_i32, %c0_i32_0 : i32, i32, i32
  }
  func.func @transform_2(%arg0: i32) -> (i32, i32) {
    %c0_i32 = arith.constant 0 : i32
    %c0_i32_0 = arith.constant 0 : i32
    %c0_i32_1 = arith.constant 0 : i32
    return %c0_i32, %c0_i32_0 : i32, i32
  }
  func.func @transform_3(%arg0: i32) -> (i32, i32) {
    %c0_i32 = arith.constant 0 : i32
    %c0_i32_0 = arith.constant 0 : i32
    %c0_i32_1 = arith.constant 0 : i32
    return %c0_i32, %c0_i32_0 : i32, i32
  }
  func.func @transform_4(%arg0: i32) -> (i32, i32) {
    %c0_i32 = arith.constant 0 : i32
    %c0_i32_0 = arith.constant 0 : i32
    %c0_i32_1 = arith.constant 0 : i32
    return %c0_i32, %c0_i32_0 : i32, i32
  }
  func.func @transform_5(%arg0: i32) -> (i32, i32) {
    %c0_i32 = arith.constant 0 : i32
    %c0_i32_0 = arith.constant 0 : i32
    %c0_i32_1 = arith.constant 0 : i32
    return %c0_i32, %c0_i32_0 : i32, i32
  }
  func.func @transform_6(%arg0: i32) -> (i32, i32) {
    %c0_i32 = arith.constant 0 : i32
    %c0_i32_0 = arith.constant 0 : i32
    %c0_i32_1 = arith.constant 0 : i32
    return %c0_i32, %c0_i32_0 : i32, i32
  }
  func.func @transform_7(%arg0: i32) -> (i32, i32, i32) {
    %c0_i32 = arith.constant 0 : i32
    %c0_i32_0 = arith.constant 0 : i32
    %c0_i32_1 = arith.constant 0 : i32
    return %arg0, %c0_i32, %c0_i32_0 : i32, i32, i32
  }
}

</mosaic_0001>

<bundles_post_ra>
// kernel: tpu_custom_call.1
= control target key start
LH: loop header
LB: loop body
LE: loop exit
PB: predicated region body
PF: predicated region fallthrough
CT: control target
= control target key end

     0   :  { %s8794_s0 = inlined_call_operand.hbm [shape: bf16[4,64,128], index: 0, kind: input, shape index: {}]   ;;  %s8795_s1 = inlined_call_operand.hbm [shape: bf16[4,128,128], index: 1, kind: input, shape index: {}]   ;;  %s8796_s2 = inlined_call_operand.hbm [shape: bf16[128,128], index: 2, kind: input, shape index: {}]   ;;  %s8797_s3 = inlined_call_operand.hbm [shape: bf16[128,128], index: 3, kind: input, shape index: {}]   ;;  %s8798_s4 = inlined_call_operand.hbm [shape: bf16[128,128], index: 4, kind: input, shape index: {}]   ;;  %s8799_s5 = inlined_call_operand.hbm [shape: bf16[128,128], index: 5, kind: input, shape index: {}]   ;;  %s8800_s6 = inlined_call_operand.vmem [shape: f32[1,128], index: 6, kind: input, shape index: {}]   ;;  %s8801_s7 = inlined_call_operand.hbm [shape: f32[4,64,128], index: 7, kind: output, shape index: {}]  }
   0x1   :  { %8818 = sst [smem:[#allocation53_spill]] %s8796_s2 }
   0x2   :  { %8819 = sst [smem:[#allocation54_spill]] %s8797_s3 }
   0x3   :  { %8820 = sst [smem:[#allocation55_spill]] %s8798_s4 }
   0x4   :  { %8821 = sst [smem:[#allocation56_spill]] %s8799_s5 }
   0x5   :  { %12 = vsyncpa [#allocation7], 0 }
   0x6   :  { %14 = vsyncpa [#allocation7 + $0x1], 0 }
   0x7   :  { %15 = vsyncpa [#allocation10], 0 }
   0x8   :  { %17 = vsyncpa [#allocation10 + $0x1], 0 }
   0x9   :  { %18 = vsyncpa [#allocation13], 0 }
   0xa   :  { %19 = vsyncpa [#allocation16], 0 }
   0xb   :  { %20 = vsyncpa [#allocation8], 0 }
   0xc   :  { %22 = vsyncpa [#allocation8 + $0x1], 0  ;;  %s7036_s24 = smov 0   ;;  %s7038_s25 = smov 0  }
   0xd   :  { %s7040_s26 = smov 0   ;;  %s7042_s27 = smov 0  }
   0xe LB: > { %8822 = sst [smem:[#allocation24_spill]] %s6979_s26  ;;  %s7057_s28 = sadd.s32 4294967295, %s6983_s27   ;;  %s6983_s27 = sphi %s7042_s27, %s8913_s27   ;;  %s6979_s26 = sphi %s7040_s26, %s8910_s26   ;;  %s6975_s25 = sphi %s7038_s25, %s8912_s25   ;;  %s6971_s24 = sphi %s7036_s24, %s8911_s24  }
   0xf   : > { %s4933_s29 = sadd.s32 4294967294, %s6983_s27   ;;  %p48_p0 = scmp.ne.s32.totalorder %s6975_s25, %s6971_s24 }
  0x10   : > { %p49_p1 = scmp.eq.s32.totalorder %s7057_s28, 0  ;;  %p203_p2 = scmp.eq.s32.totalorder %s7057_s28, 1 }
  0x11   : > { %p209_p3 = scmp.eq.s32.totalorder %s4933_s29, 1  ;;  %p4934_p5 = scmp.ge.s32.totalorder %s6983_s27, 1 }
  0x12   : > { %p7066_p4 = por %p49_p1, %p48_p0  ;;  %p216_p7 = scmp.lt.s32.totalorder %s6983_s27, 3 }
  0x13   : > { %p7071_p6 = por %p209_p3, %p48_p0  ;;  %s8825_s2 = sld [smem:[#allocation53_spill]] }
  0x14   : > { %p7079_p8 = pnand %p4934_p5, %p216_p7  ;;  %s6985_s13 = smov [#allocation11]  }
  0x15   : > { %s229_s14 = sshll.u32 %s6985_s13, 4  ;;  %s8828_s3 = sld [smem:[#allocation54_spill]]  ;;  %s230_s14 = int_to_ptr.vmem [resolvable:$true] %s229_s14 }
  0x16   : > { %p6387_p9 = pneg %p7079_p8  ;;  %s8802_s19 = smov 64  }
  0x17   : > { %s8804_s20 = smov 4   ;;  %s6988_s21 = smov [#allocation12]  }
  0x18   : > { %p7087_p10 = pnand %p6387_p9, %p49_p1  ;;  %s243_s22 = sshll.u32 %s6988_s21, 4  ;;  %s244_s22 = int_to_ptr.vmem [resolvable:$true] %s243_s22 }
  0x19   : > { %s227_s11 = sshll.u32 %s8825_s2, 4  ;;  %s8829_s4 = sld [smem:[#allocation55_spill]]  ;;  %s228_s11 = int_to_ptr.hbm [resolvable:$true] %s227_s11 }
  0x1a   : > { %6390 = dma.hbm_to_vmem [thread:$0]  (!%p7087_p10), %s228_s11, 1024, %s230_s14, [#allocation10], %s8802_s19, %s8802_s19, %s8804_s20  }
  0x1b   : > { %s241_s18 = sshll.u32 %s8828_s3, 4  ;;  %s8830_s5 = sld [smem:[#allocation56_spill]]  ;;  %s242_s18 = int_to_ptr.hbm [resolvable:$true] %s241_s18 }
  0x1c   : > { %6393 = dma.hbm_to_vmem [thread:$0]  (!%p7087_p10), %s242_s18, 1024, %s244_s22, [#allocation13], %s8802_s19, %s8802_s19, %s8804_s20  }
  0x1d   : > { %s6989_s14 = smov [#allocation14]   ;;  %s6990_s17 = smov [#allocation15]  }
  0x1e   : > { %s257_s16 = sshll.u32 %s6989_s14, 4  ;;  %s271_s18 = sshll.u32 %s6990_s17, 4  ;;  %s258_s16 = int_to_ptr.vmem [resolvable:$true] %s257_s16  ;;  %s272_s18 = int_to_ptr.vmem [resolvable:$true] %s271_s18 }
  0x1f   : > { %s255_s9 = sshll.u32 %s8829_s4, 4  ;;  %s7122_s21 = sadd.s32 1, %s6983_s27   ;;  %s256_s9 = int_to_ptr.hbm [resolvable:$true] %s255_s9 }
  0x20   : > { %6396 = dma.hbm_to_vmem [thread:$0]  (!%p7087_p10), %s256_s9, 1024, %s258_s16, [#allocation13], %s8802_s19, %s8802_s19, %s8804_s20  }
  0x21   : > { %s269_s13 = sshll.u32 %s8830_s5, 4  ;;  %s35_s22 = sadd.s32 1, %s6979_s26  ;;  %s270_s13 = int_to_ptr.hbm [resolvable:$true] %s269_s13 }
  0x22   : > { %6399 = dma.hbm_to_vmem [thread:$0]  (!%p7087_p10), %s270_s13, 1024, %s272_s18, [#allocation16], %s8802_s19, %s8802_s19, %s8804_s20  }
  0x23   : > { %s32_s23 = ssub.s32 %s6983_s27, %s7122_s21  ;;  %p42_p12 = scmp.ne.s32.totalorder %s6979_s26, %s6975_s25 }
  0x24   : > { %p33_p13 = scmp.eq.s32.totalorder %s32_s23, 0  ;;  %p43_p0 = scmp.eq.s32.totalorder %s6983_s27, 0 }
  0x25   : > { %p7132_p3 = por %p203_p2, %p42_p12  ;;  %p6415_p5 = scmp.lt.s32.totalorder %s6983_s27, 2 }
  0x26   : > { %s7138_s15 = scalar_select %p33_p13, %s6979_s26, %s35_s22  }
  0x27   : > { %p44_p7 = por %p43_p0, %p42_p12  ;;  %s7141_s9 = sand.u32 1, %s6979_s26  }
  0x28   : > { %8832 = sst [smem:[#allocation25_spill]] %s7138_s15  ;;  %s4940_s10 = sshll.u32 %s7141_s9, 6 }
  0x29   : > { %s5891_s11 = sshll.u32 %s6983_s27, 6  ;;  %s292_s17 = scalar_lea.vmem [#allocation6], %s4940_s10 }
  0x2a   : > { %s298_s16 = scalar_lea.hbm %s8794_s0, %s5891_s11  ;;  %s301_s18 = sshll.u32 %s292_s17, 4  ;;  %s302_s18 = int_to_ptr.vmem [resolvable:$true] %s301_s18 }
  0x2b   : > { %s299_s23 = sshll.u32 %s298_s16, 4  ;;  %p7148_p2 = pnand %p6415_p5, %p44_p7  ;;  %s300_s23 = int_to_ptr.hbm [resolvable:$true] %s299_s23 }
  0x2c   : > { %s311_s19 = sand.u32 1, %s6983_s27   ;;  %s4944_s20 = sshll.u32 %s7141_s9, 7 }
  0x2d   : > { %s289_s2 = scalar_lea.sflag [#allocation7], %s7141_s9  ;;  %s6841_s3 = sshra.s32 %s300_s23, 4  ;;  %s6842_s3 = int_to_ptr.hbm [resolvable:$true] %s6841_s3 }
  0x2e   : > { %s6843_s4 = scalar_lea.hbm %s6842_s3, 64  ;;  %p6845_p10 = pneg %p7148_p2 }
  0x2f   : > { %p6844_p9 = scmp.ne.s32.totalorder %s6842_s3, %s6843_s4  ;;  %s6848_s13 = scalar_lea.hbm %s8794_s0, 128 }
  0x30   : > { %p6849_p0 = scmp.lt.s32.totalorder %s6842_s3, %s8794_s0  ;;  %p6850_p5 = scmp.lt.s32.totalorder %s6848_s13, %s6843_s4 }
  0x31   : > { %p6846_p12 = pnand %p6845_p10, %p6844_p9 }
  0x32   : > { %p6851_p7 = por %p6850_p5, %p6849_p0 }
  0x33   : > { %p6847_p13 = pneg %p6846_p12 }
  0x35   : > { %p6852_p11 = pnand %p6851_p7, %p6847_p13 }
  0x37   : > { %6855 = shalt.err (!%p6852_p11)
}
  0x38   : > { %s8834_s9 = smov 4   ;;  %s8835_s17 = smov 64  }
  0x39   : > { %6403 = dma.hbm_to_vmem [thread:$0]  (!%p7148_p2), %s300_s23, 1024, %s302_s18, %s289_s2, %s8835_s17, %s8835_s17, %s8834_s9  }
  0x3a   : > { %s5893_s5 = sshll.u32 %s6983_s27, 7  ;;  %s315_s26 = scalar_lea.vmem [#allocation9], %s4944_s20 }
  0x3b   : > { %s321_s11 = scalar_lea.hbm %s8795_s1, %s5893_s5  ;;  %s324_s14 = sshll.u32 %s315_s26, 4  ;;  %s325_s14 = int_to_ptr.vmem [resolvable:$true] %s324_s14 }
  0x3c   : > { %s322_s3 = sshll.u32 %s321_s11, 4  ;;  %s312_s4 = scalar_lea.sflag [#allocation10], %s311_s19  ;;  %s323_s3 = int_to_ptr.hbm [resolvable:$true] %s322_s3 }
  0x3d   : > { %s6871_s13 = sshra.s32 %s323_s3, 4  ;;  %s6878_s23 = scalar_lea.hbm %s8795_s1, 256  ;;  %s6872_s13 = int_to_ptr.hbm [resolvable:$true] %s6871_s13 }
  0x3e   : > { %s6873_s16 = scalar_lea.hbm %s6872_s13, 128  ;;  %p6879_p13 = scmp.lt.s32.totalorder %s6872_s13, %s8795_s1 }
  0x3f   : > { %p6874_p11 = scmp.ne.s32.totalorder %s6872_s13, %s6873_s16  ;;  %p6880_p0 = scmp.lt.s32.totalorder %s6878_s23, %s6873_s16 }
  0x41   : > { %p6876_p9 = pnand %p6874_p11, %p6845_p10  ;;  %p6881_p5 = por %p6880_p0, %p6879_p13 }
  0x43   : > { %p6877_p12 = pneg %p6876_p9 }
  0x45   : > { %p6882_p7 = pnand %p6881_p5, %p6877_p12 }
  0x47   : > { %6885 = shalt.err (!%p6882_p7)
}
  0x48   : > { %6406 = dma.hbm_to_vmem [thread:$0]  (!%p7148_p2), %s323_s3, 2048, %s325_s14, %s312_s4, %s8835_s17, %s8835_s17, %s8834_s9  }
  0x49   : > { %336 = sbr.rel (%p7079_p8) target bundleno = 2292 (0x8f4), region = 48 }
  0x4e   : > { %s7192_s26 = sand.u32 1, %s6975_s25  }
  0x4f   : > { %s4949_s19 = sshll.u32 %s7192_s26, 6  ;;  %s339_s20 = scalar_lea.sflag [#allocation7], %s7192_s26 }
  0x50   : > { %s7196_s10 = scalar_lea.vmem [#allocation6], %s4949_s19 }
  0x51   : > { %6946 = dma.done.wait (%p7066_p4), %s339_s20, 1024  }
  0x52   : > { %6948 = vsyncadd (%p7066_p4), %s339_s20, 4294966272  ;;  %s348_s12 = sand.u32 1, %s7057_s28   ;;  %s4950_s22 = sshll.u32 %s7192_s26, 7 }
  0x53   : > { %s349_s9 = scalar_lea.sflag [#allocation10], %s348_s12  ;;  %s7206_s17 = scalar_lea.vmem [#allocation9], %s4950_s22 }
  0x54   : > { %6950 = dma.done.wait (%p7066_p4), %s349_s9, 2048  }
  0x55   : > { %6952 = vsyncadd (%p7066_p4), %s349_s9, 4294965248 }
  0x56   : > { %6954 = dma.done.wait (%p49_p1), [#allocation10], 1024  }
  0x57   : > { %6956 = vsyncadd (%p49_p1), [#allocation10], 4294966272 }
  0x58   : > { %6958 = dma.done.wait (%p49_p1), [#allocation13], 2048  }
  0x59   : > { %6960 = vsyncadd (%p49_p1), [#allocation13], 4294965248 }
  0x5a   : > { %6962 = dma.done.wait (%p49_p1), [#allocation16], 1024  }
  0x5b   : > { %6964 = vsyncadd (%p49_p1), [#allocation16], 4294966272  ;;  %v5925_v0 = vld [vmem:[#allocation11 + $0x38] sm:$0xff]  ;;  %v5924_v3 = vld [vmem:[#allocation11 + $0x30] sm:$0xff]  ;;  %s6991_s30 = smov 96   ;;  %s6992_s11 = smov 64  }
  0x5c   : > { %v5933_v1 = vld [vmem:[#allocation12 + $0x38] sm:$0xff]  ;;  %572 = vmatpush.bf16.msra.mxu0 %v5925_v0  ;;  %v5932_v4 = vld [vmem:[#allocation12 + $0x30] sm:$0xff]  ;;  %v5923_v6 = vld [vmem:[#allocation11 + $0x28] sm:$0xff]  ;;  %s6993_s14 = smov 32   ;;  %vm1326_vm0 = vcmask 261120   ;;  %vm1913_vm2 = vcmask 257024  }
  0x5d   : > { %v5941_v2 = vld [vmem:[#allocation14 + $0x38] sm:$0xff]  ;;  %813 = vmatpush.bf16.msra.mxu1 %v5933_v1  ;;  %v5940_v5 = vld [vmem:[#allocation14 + $0x30] sm:$0xff]  ;;  %v5931_v7 = vld [vmem:[#allocation12 + $0x28] sm:$0xff]  ;;  %vm2798_vm3 = vcmask 519424   ;;  %vm3683_vm4 = vcmask 781824   ;;  %vm4568_vm5 = vcmask 1044224  }
  0x5e   : > { %1030 = vmatpush.bf16.msra.mxu2 %v5941_v2  ;;  %6357 = vmatpush.bf16.msra.mxu3 %v5941_v2  ;;  %v5939_v8 = vld [vmem:[#allocation14 + $0x28] sm:$0xff]  ;;  %v5922_v9 = vld [vmem:[#allocation11 + $0x20] sm:$0xff]  ;;  %v5921_v12 = vld [vmem:[#allocation11 + $0x18] sm:$0xff]  ;;  %s8713_s13 = scalar_lea.vmem [#allocation17], %s4950_s22  ;;  %s6119_s16 = sshll.u32 %s7057_s28, 7 }
  0x5f   : > { %v5930_v10 = vld [vmem:[#allocation12 + $0x20] sm:$0xff]  ;;  %v5929_v13 = vld [vmem:[#allocation12 + $0x18] sm:$0xff]  ;;  %v5920_v15 = vld [vmem:[#allocation11 + $0x10] sm:$0xff]  ;;  %s4795_s23 = scalar_lea.hbm %s8801_s7, %s6119_s16  ;;  %s4796_s15 = sshll.u32 %s8713_s13, 4  ;;  %s4797_s15 = int_to_ptr.vmem [resolvable:$true] %s4796_s15 }
  0x60   : > { %573 = vmatpush.bf16.msra.mxu0 %v5924_v3  ;;  %v5938_v11 = vld [vmem:[#allocation14 + $0x20] sm:$0xff]  ;;  %v5937_v14 = vld [vmem:[#allocation14 + $0x18] sm:$0xff]  ;;  %v5928_v16 = vld [vmem:[#allocation12 + $0x10] sm:$0xff]  ;;  %s4798_s5 = sshll.u32 %s4795_s23, 4  ;;  %s4783_s19 = scalar_lea.sflag [#allocation8], %s7192_s26  ;;  %s4799_s5 = int_to_ptr.hbm [resolvable:$true] %s4798_s5 }
  0x61   : > { %814 = vmatpush.bf16.msra.mxu1 %v5932_v4  ;;  %v5936_v17 = vld [vmem:[#allocation14 + $0x10] sm:$0xff]  ;;  %v5919_v18 = vld [vmem:[#allocation11 + $0x8] sm:$0xff]  ;;  %v5918_v21 = vld [vmem:[#allocation11] sm:$0xff]  ;;  %s6915_s20 = sshra.s32 %s4799_s5, 4  ;;  %s6921_s22 = scalar_lea.hbm %s8801_s7, 256  ;;  %s6916_s20 = int_to_ptr.hbm [resolvable:$true] %s6915_s20 }
  0x62   : > { %1031 = vmatpush.bf16.msra.mxu2 %v5940_v5  ;;  %6358 = vmatpush.bf16.msra.mxu3 %v5940_v5  ;;  %v5927_v19 = vld [vmem:[#allocation12 + $0x8] sm:$0xff]  ;;  %v5926_v22 = vld [vmem:[#allocation12] sm:$0xff]  ;;  %v5904_v30 = vld [vmem:[%s7206_s17 + $0x10] sm:$0xff]  ;;  %s6917_s28 = scalar_lea.hbm %s6916_s20, 128  ;;  %p6922_p2 = scmp.lt.s32.totalorder %s6916_s20, %s8801_s7 }
  0x63   : > { %v5935_v20 = vld [vmem:[#allocation14 + $0x8] sm:$0xff]  ;;  %v5934_v23 = vld [vmem:[#allocation14] sm:$0xff]  ;;  %v5896_v31 = vld [vmem:[%s7196_s10 + $0x10] sm:$0xff]  ;;  %p6918_p1 = scmp.ne.s32.totalorder %s6916_s20, %s6917_s28  ;;  %p6923_p10 = scmp.lt.s32.totalorder %s6921_s22, %s6917_s28 }
  0x64   : > { %574 = vmatpush.bf16.msra.mxu0 %v5923_v6  ;;  %v5894_v24 = vld [vmem:[%s7196_s10] sm:$0xff]  ;;  %v5903_v27 = vld [vmem:[%s7206_s17 + $0x8] sm:$0xff]  ;;  %v7239_v32 = vld [vmem:[%s7206_s17 + $0x70] sm:$0xff] }
  0x65   : > { %815 = vmatpush.bf16.msra.mxu1 %v5931_v7  ;;  %v5902_v25 = vld [vmem:[%s7206_s17] sm:$0xff]  ;;  %v5895_v28 = vld [vmem:[%s7196_s10 + $0x8] sm:$0xff]  ;;  %v5905_v33 = vld [vmem:[%s7206_s17 + $0x18] sm:$0xff]  ;;  %p6919_p4 = pnand %p6918_p1, %p7132_p3  ;;  %p6924_p11 = por %p6923_p10, %p6922_p2 }
  0x66   : > { %1032 = vmatpush.bf16.msra.mxu2 %v5939_v8  ;;  %6359 = vmatpush.bf16.msra.mxu3 %v5939_v8  ;;  %v7227_v26 = vld [vmem:[%s7206_s17 + $0x60] sm:$0xff]  ;;  %v7233_v29 = vld [vmem:[%s7206_s17 + $0x68] sm:$0xff]  ;;  %v5897_v34 = vld [vmem:[%s7196_s10 + $0x18] sm:$0xff] }
  0x67   : > { %v7245_v35 = vld [vmem:[%s7206_s17 + $0x78] sm:$0xff]  ;;  %v5906_v36 = vld [vmem:[%s7206_s17 + $0x20] sm:$0xff]  ;;  %v5907_v38 = vld [vmem:[%s7206_s17 + $0x28] sm:$0xff]  ;;  %p6920_p8 = pneg %p6919_p4 }
  0x68   : > { %575 = vmatpush.bf16.msra.mxu0 %v5922_v9  ;;  %v5898_v37 = vld [vmem:[%s7196_s10 + $0x20] sm:$0xff]  ;;  %v5899_v39 = vld [vmem:[%s7196_s10 + $0x28] sm:$0xff]  ;;  %v5908_v40 = vld [vmem:[%s7206_s17 + $0x30] sm:$0xff] }
  0x69   : > { %816 = vmatpush.bf16.msra.mxu1 %v5930_v10  ;;  %v5900_v41 = vld [vmem:[%s7196_s10 + $0x30] sm:$0xff]  ;;  %v5909_v42 = vld [vmem:[%s7206_s17 + $0x38] sm:$0xff]  ;;  %v5910_v43 = vld [vmem:[%s7206_s17 + $0x40] sm:$0xff]  ;;  %p6925_p9 = pnand %p6924_p11, %p6920_p8 }
  0x6a   : > { %1033 = vmatpush.bf16.msra.mxu2 %v5938_v11  ;;  %6360 = vmatpush.bf16.msra.mxu3 %v5938_v11  ;;  %v5901_v46 = vld [vmem:[%s7196_s10 + $0x38] sm:$0xff]  ;;  %v5911_v54 = vld [vmem:[%s7206_s17 + $0x48] sm:$0xff]  ;;  %v5912_v9 = vld [vmem:[%s7206_s17 + $0x50] sm:$0xff] }
  0x6c   : > { %576 = vmatpush.bf16.msra.mxu0 %v5921_v12 }
  0x6d   : > { %817 = vmatpush.bf16.msra.mxu1 %v5929_v13 }
  0x6e   : > { %1034 = vmatpush.bf16.msra.mxu2 %v5937_v14  ;;  %6361 = vmatpush.bf16.msra.mxu3 %v5937_v14 }
  0x70   : > { %577 = vmatpush.bf16.msra.mxu0 %v5920_v15 }
  0x71   : > { %818 = vmatpush.bf16.msra.mxu1 %v5928_v16 }
  0x72   : > { %1035 = vmatpush.bf16.msra.mxu2 %v5936_v17  ;;  %6362 = vmatpush.bf16.msra.mxu3 %v5936_v17 }
  0x74   : > { %578 = vmatpush.bf16.msra.mxu0 %v5919_v18 }
  0x75   : > { %819 = vmatpush.bf16.msra.mxu1 %v5927_v19 }
  0x76   : > { %1036 = vmatpush.bf16.msra.mxu2 %v5935_v20  ;;  %6363 = vmatpush.bf16.msra.mxu3 %v5935_v20 }
  0x78   : > { %579 = vmatpush.bf16.msra.mxu0 %v5918_v21 }
  0x79   : > { %820 = vmatpush.bf16.msra.mxu1 %v5926_v22 }
  0x7a   : > { %1037 = vmatpush.bf16.msra.mxu2 %v5934_v23  ;;  %6364 = vmatpush.bf16.msra.mxu3 %v5934_v23 }
  0x7b   : > { %580 = vmatmul.bf16.vlgmr.msra.gmra.mxu0 %v5894_v24 }
  0x7c   : > { %821 = vmatmul.bf16.vlgmr.msra.gmra.mxu1 %v5902_v25 }
  0x7d   : > { %1038 = vmatmul.bf16.vlgmr.msra.gmra.mxu2 %v5902_v25  ;;  %1098 = vmatmul.bf16.vlgmr.msra.gmra.mxu3 %v7227_v26 }
  0x8b   : > { %585 = vmatmul.bf16.gmra.mxu0 %v5895_v28 }
  0x8c   : > { %826 = vmatmul.bf16.gmra.mxu1 %v5903_v27 }
  0x8d   : > { %1043 = vmatmul.bf16.gmra.mxu2 %v5903_v27  ;;  %1103 = vmatmul.bf16.gmra.mxu3 %v7233_v29 }
  0x9b   : > { %590 = vmatmul.bf16.gmra.mxu0 %v5896_v31 }
  0x9c   : > { %831 = vmatmul.bf16.gmra.mxu1 %v5904_v30 }
  0x9d   : > { %1048 = vmatmul.bf16.gmra.mxu2 %v5904_v30  ;;  %1108 = vmatmul.bf16.gmra.mxu3 %v7239_v32  ;;  %v5913_v30 = vld [vmem:[%s7206_s17 + $0x58] sm:$0xff] }
  0xab   : > { %595 = vmatmul.bf16.gmra.mxu0 %v5897_v34 }
  0xac   : > { %836 = vmatmul.bf16.gmra.mxu1 %v5905_v33 }
  0xad   : > { %1053 = vmatmul.bf16.gmra.mxu2 %v5905_v33  ;;  %1113 = vmatmul.bf16.gmra.mxu3 %v7245_v35 }
  0xbb   : > { %600 = vmatmul.bf16.gmra.mxu0 %v5898_v37 }
  0xbc   : > { %841 = vmatmul.bf16.gmra.mxu1 %v5906_v36 }
  0xbd   : > { %1058 = vmatmul.bf16.gmra.mxu2 %v5906_v36 }
  0xcb   : > { %605 = vmatmul.bf16.gmra.mxu0 %v5899_v39 }
  0xcc   : > { %846 = vmatmul.bf16.gmra.mxu1 %v5907_v38 }
  0xcd   : > { %1063 = vmatmul.bf16.gmra.mxu2 %v5907_v38 }
  0xdb   : > { %610 = vmatmul.bf16.gmra.mxu0 %v5900_v41 }
  0xdc   : > { %851 = vmatmul.bf16.gmra.mxu1 %v5908_v40 }
  0xdd   : > { %1068 = vmatmul.bf16.gmra.mxu2 %v5908_v40 }
  0xeb   : > { %615 = vmatmul.bf16.gmra.mxu0 %v5901_v46 }
  0xec   : > { %856 = vmatmul.bf16.gmra.mxu1 %v5909_v42 }
  0xed   : > { %1073 = vmatmul.bf16.gmra.mxu2 %v5909_v42 }
  0xf8   : > { %v581_v44 = vpop.f32.mrf.mxu0 }
  0xf9   : > { %v822_v45 = vpop.f32.mrf.mxu1 }
  0xfc   : > { %861 = vmatmul.bf16.gmra.mxu1 %v5910_v43 }
  0xfd   : > { %1078 = vmatmul.bf16.gmra.mxu2 %v5910_v43 }
 0x100   : > { %v1039_v47 = vpop.f32.mrf.mxu2  ;;  %v1099_v48 = vpop.f32.mrf.mxu3 }
 0x101   : > { %v583_v49 = vpop.f32.mrf.mxu0  ;;  %v824_v50 = vpop.f32.mrf.mxu1 }
 0x102   : > { %v6123_v51 = vpack.c.bf16 %v583_v49, %v581_v44  ;;  %v6163_v52 = vpack.c.bf16 %v824_v50, %v822_v45 }
 0x104   : > { %6124 = vst [vmem:[#allocation2 + $0x30] sm:$0xff] %v6123_v51  }
 0x105   : > { %6164 = vst [vmem:[#allocation3] sm:$0xff] %v6163_v52  }
 0x108   : > { %v1041_v53 = vpop.f32.mrf.mxu2  ;;  %v1101_v55 = vpop.f32.mrf.mxu3 }
 0x109   : > { %v6243_v56 = vpack.c.bf16 %v1041_v53, %v1039_v47  ;;  %v827_v57 = vpop.f32.mrf.mxu1  ;;  %v586_v58 = vpop.f32.mrf.mxu0  ;;  %v6303_v59 = vpack.c.bf16 %v1101_v55, %v1099_v48 }
 0x10b   : > { %6244 = vst [vmem:[#allocation4 + $0x30] sm:$0xff] %v6243_v56   ;;  %v5982_v60 = vld [vmem:[#allocation2 + $0x30] sm:$0xff] }
 0x10c   : > { %866 = vmatmul.bf16.gmra.mxu1 %v5911_v54  ;;  %v6030_v61 = vld [vmem:[#allocation3] sm:$0xff]  ;;  %6353 = vst [vmem:[#allocation4 + $0x60] sm:$0xff] %v6303_v59   ;;  %2030 = vrot.lane.b32.xlu0 %v5982_v60, %s6991_s30  ;;  %v6062_v5 = vld [vmem:[#allocation2 + $0x30] sm:$0xff] }
 0x10d   : > { %v5990_v62 = vld [vmem:[#allocation3] sm:$0xff]  ;;  %1083 = vmatmul.bf16.gmra.mxu2 %v5911_v54  ;;  %2963 = vrot.lane.b32.xlu1 %v6030_v61, %s6992_s11  ;;  %v6022_v7 = vld [vmem:[#allocation2 + $0x30] sm:$0xff] }
 0x10e   : > { %2078 = vrot.lane.b32.xlu2 %v5990_v62, %s6991_s30  ;;  %v6070_v6 = vld [vmem:[#allocation3] sm:$0xff] }
 0x110   : > { %v1044_v63 = vpop.f32.mrf.mxu2  ;;  %v1104_v0 = vpop.f32.mrf.mxu3 }
 0x111   : > { %v829_v1 = vpop.f32.mrf.mxu1  ;;  %v588_v2 = vpop.f32.mrf.mxu0 }
 0x112   : > { %v6168_v3 = vpack.c.bf16 %v829_v1, %v827_v57  ;;  %v6128_v4 = vpack.c.bf16 %v588_v2, %v586_v58  ;;  %v6006_v16 = vld [vmem:[#allocation4 + $0x30] sm:$0xff] }
 0x113   : > { %v6018_v13 = vld [vmem:[#allocation4 + $0x60] sm:$0xff] }
 0x114   : > { %6327 = vst [vmem:[#allocation3 + $0x18] sm:$0xff] %v6168_v3   ;;  %3800 = vrot.lane.b32.xlu0 %v6062_v5, %s6993_s14 }
 0x115   : > { %6320 = vst [vmem:[#allocation2] sm:$0xff] %v6128_v4   ;;  %2915 = vrot.lane.b32.xlu1 %v6022_v7, %s6992_s11 }
 0x116   : > { %3848 = vrot.lane.b32.xlu2 %v6070_v6, %s6993_s14 }
 0x118   : > { %v1046_v8 = vpop.f32.mrf.mxu2  ;;  %v1106_v10 = vpop.f32.mrf.mxu3 }
 0x119   : > { %v6248_v11 = vpack.c.bf16 %v1046_v8, %v1044_v63  ;;  %v832_v12 = vpop.f32.mrf.mxu1  ;;  %v591_v14 = vpop.f32.mrf.mxu0  ;;  %v6308_v15 = vpack.c.bf16 %v1106_v10, %v1104_v0 }
 0x11b   : > { %6342 = vst [vmem:[#allocation4] sm:$0xff] %v6248_v11   ;;  %v5991_v25 = vld [vmem:[#allocation3 + $0x18] sm:$0xff] }
 0x11c   : > { %871 = vmatmul.bf16.gmra.mxu1 %v5912_v9  ;;  %v5983_v17 = vld [vmem:[#allocation2] sm:$0xff]  ;;  %6354 = vst [vmem:[#allocation4 + $0x10] sm:$0xff] %v6308_v15   ;;  %2673 = vrot.lane.b32.xlu0 %v6018_v13, %s6991_s30  ;;  %v6031_v27 = vld [vmem:[#allocation3 + $0x18] sm:$0xff] }
 0x11d   : > { %1088 = vmatmul.bf16.gmra.mxu2 %v5912_v9  ;;  %2548 = vrot.lane.b32.xlu1 %v6006_v16, %s6991_s30  ;;  %v6063_v24 = vld [vmem:[#allocation2] sm:$0xff]  ;;  %v6071_v40 = vld [vmem:[#allocation3 + $0x18] sm:$0xff] }
 0x11e   : > { %2032 = vrot.lane.b32.xlu2 %v5983_v17, %s6991_s30  ;;  %v6023_v36 = vld [vmem:[#allocation2] sm:$0xff] }
 0x120   : > { %v1049_v18 = vpop.f32.mrf.mxu2  ;;  %v1109_v19 = vpop.f32.mrf.mxu3 }
 0x121   : > { %v834_v20 = vpop.f32.mrf.mxu1  ;;  %v593_v21 = vpop.f32.mrf.mxu0 }
 0x122   : > { %v6173_v22 = vpack.c.bf16 %v834_v20, %v832_v12  ;;  %v6133_v23 = vpack.c.bf16 %v593_v21, %v591_v14  ;;  %v6007_v49 = vld [vmem:[#allocation4] sm:$0xff] }
 0x123   : > { %v6019_v57 = vld [vmem:[#allocation4 + $0x10] sm:$0xff] }
 0x124   : > { %6328 = vst [vmem:[#allocation3 + $0x50] sm:$0xff] %v6173_v22   ;;  %2080 = vrot.lane.b32.xlu0 %v5991_v25, %s6991_s30 }
 0x125   : > { %6321 = vst [vmem:[#allocation2 + $0x18] sm:$0xff] %v6133_v23   ;;  %2965 = vrot.lane.b32.xlu1 %v6031_v27, %s6992_s11 }
 0x126   : > { %3802 = vrot.lane.b32.xlu2 %v6063_v24, %s6993_s14 }
 0x128   : > { %v1051_v28 = vpop.f32.mrf.mxu2  ;;  %v1111_v31 = vpop.f32.mrf.mxu3 }
 0x129   : > { %v6253_v33 = vpack.c.bf16 %v1051_v28, %v1049_v18  ;;  %v837_v34 = vpop.f32.mrf.mxu1  ;;  %v596_v37 = vpop.f32.mrf.mxu0  ;;  %v6313_v38 = vpack.c.bf16 %v1111_v31, %v1109_v19 }
 0x12b   : > { %6343 = vst [vmem:[#allocation4 + $0x40] sm:$0xff] %v6253_v33   ;;  %v5992_v39 = vld [vmem:[#allocation3 + $0x50] sm:$0xff] }
 0x12c   : > { %876 = vmatmul.bf16.gmra.mxu1 %v5913_v30  ;;  %6355 = vst [vmem:[#allocation4 + $0x68] sm:$0xff] %v6313_v38   ;;  %2917 = vrot.lane.b32.xlu0 %v6023_v36, %s6992_s11  ;;  %v6024_v44 = vld [vmem:[#allocation2 + $0x18] sm:$0xff]  ;;  %v6072_v48 = vld [vmem:[#allocation3 + $0x50] sm:$0xff] }
 0x12d   : > { %1093 = vmatmul.bf16.gmra.mxu2 %v5913_v30  ;;  %3850 = vrot.lane.b32.xlu1 %v6071_v40, %s6993_s14  ;;  %v5984_v1 = vld [vmem:[#allocation2 + $0x18] sm:$0xff]  ;;  %v6032_v7 = vld [vmem:[#allocation3 + $0x50] sm:$0xff] }
 0x12e   : > { %2082 = vrot.lane.b32.xlu2 %v5992_v39, %s6991_s30  ;;  %v6064_v15 = vld [vmem:[#allocation2 + $0x18] sm:$0xff] }
 0x130   : > { %v1054_v41 = vpop.f32.mrf.mxu2  ;;  %v1114_v42 = vpop.f32.mrf.mxu3 }
 0x131   : > { %v839_v43 = vpop.f32.mrf.mxu1  ;;  %v598_v45 = vpop.f32.mrf.mxu0 }
 0x132   : > { %v6178_v46 = vpack.c.bf16 %v839_v43, %v837_v34  ;;  %v6138_v47 = vpack.c.bf16 %v598_v45, %v596_v37  ;;  %v6008_v54 = vld [vmem:[#allocation4 + $0x40] sm:$0xff] }
 0x133   : > { %v6020_v60 = vld [vmem:[#allocation4 + $0x68] sm:$0xff] }
 0x134   : > { %6329 = vst [vmem:[#allocation3 + $0x60] sm:$0xff] %v6178_v46   ;;  %2919 = vrot.lane.b32.xlu0 %v6024_v44, %s6992_s11 }
 0x135   : > { %6322 = vst [vmem:[#allocation2 + $0x10] sm:$0xff] %v6138_v47   ;;  %2550 = vrot.lane.b32.xlu1 %v6007_v49, %s6991_s30 }
 0x136   : > { %3852 = vrot.lane.b32.xlu2 %v6072_v48, %s6993_s14 }
 0x138   : > { %v1056_v50 = vpop.f32.mrf.mxu2  ;;  %v1116_v51 = vpop.f32.mrf.mxu3 }
 0x139   : > { %v6258_v52 = vpack.c.bf16 %v1056_v50, %v1054_v41  ;;  %v842_v53 = vpop.f32.mrf.mxu1  ;;  %v6318_v55 = vpack.c.bf16 %v1116_v51, %v1114_v42  ;;  %v601_v56 = vpop.f32.mrf.mxu0 }
 0x13b   : > { %6344 = vst [vmem:[#allocation4 + $0x58] sm:$0xff] %v6258_v52   ;;  %v5993_v21 = vld [vmem:[#allocation3 + $0x60] sm:$0xff] }
 0x13c   : > { %881 = vmatmul.bf16.gmra.mxu1 %v7227_v26  ;;  %6356 = vst [vmem:[#allocation4 + $0x48] sm:$0xff] %v6318_v55   ;;  %2552 = vrot.lane.b32.xlu0 %v6008_v54, %s6991_s30  ;;  %v5985_v5 = vld [vmem:[#allocation2 + $0x10] sm:$0xff]  ;;  %v6033_v31 = vld [vmem:[#allocation3 + $0x60] sm:$0xff] }
 0x13d   : > { %2675 = vrot.lane.b32.xlu1 %v6019_v57, %s6991_s30  ;;  %v6025_v11 = vld [vmem:[#allocation2 + $0x10] sm:$0xff]  ;;  %v6073_v39 = vld [vmem:[#allocation3 + $0x60] sm:$0xff] }
 0x13e   : > { %v6065_v19 = vld [vmem:[#allocation2 + $0x10] sm:$0xff] }
 0x140   : > { %v1059_v58 = vpop.f32.mrf.mxu2 }
 0x141   : > { %v844_v59 = vpop.f32.mrf.mxu1  ;;  %v603_v61 = vpop.f32.mrf.mxu0 }
 0x142   : > { %v6183_v62 = vpack.c.bf16 %v844_v59, %v842_v53  ;;  %v6009_v63 = vld [vmem:[#allocation4 + $0x58] sm:$0xff]  ;;  %v6143_v0 = vpack.c.bf16 %v603_v61, %v601_v56 }
 0x143   : > { %2554 = vrot.lane.b32.xlu2 %v6009_v63, %s6991_s30  ;;  %v6021_v2 = vld [vmem:[#allocation4 + $0x48] sm:$0xff] }
 0x144   : > { %6330 = vst [vmem:[#allocation3 + $0x68] sm:$0xff] %v6183_v62   ;;  %2677 = vrot.lane.b32.xlu0 %v6020_v60, %s6991_s30 }
 0x145   : > { %6323 = vst [vmem:[#allocation2 + $0x8] sm:$0xff] %v6143_v0   ;;  %2034 = vrot.lane.b32.xlu1 %v5984_v1, %s6991_s30 }
 0x148   : > { %v1061_v26 = vpop.f32.mrf.mxu2 }
 0x149   : > { %v6263_v3 = vpack.c.bf16 %v1061_v26, %v1059_v58  ;;  %v847_v4 = vpop.f32.mrf.mxu1  ;;  %v606_v6 = vpop.f32.mrf.mxu0 }
 0x14b   : > { %6345 = vst [vmem:[#allocation4 + $0x8] sm:$0xff] %v6263_v3   ;;  %2679 = vrot.lane.b32.xlu2 %v6021_v2, %s6991_s30  ;;  %v6034_v9 = vld [vmem:[#allocation3 + $0x68] sm:$0xff] }
 0x14c   : > { %886 = vmatmul.bf16.gmra.mxu1 %v7233_v29  ;;  %2036 = vrot.lane.b32.xlu0 %v5985_v5, %s6991_s30  ;;  %v6074_v16 = vld [vmem:[#allocation3 + $0x68] sm:$0xff] }
 0x14d   : > { %2967 = vrot.lane.b32.xlu1 %v6032_v7, %s6992_s11  ;;  %v6066_v23 = vld [vmem:[#allocation2 + $0x8] sm:$0xff] }
 0x14e   : > { %v5994_v25 = vld [vmem:[#allocation3 + $0x68] sm:$0xff] }
 0x14f   : > { %v5986_v38 = vld [vmem:[#allocation2 + $0x8] sm:$0xff] }
 0x150   : > { %v1064_v8 = vpop.f32.mrf.mxu2  ;;  %v6026_v46 = vld [vmem:[#allocation2 + $0x8] sm:$0xff] }
 0x151   : > { %v849_v10 = vpop.f32.mrf.mxu1  ;;  %v608_v12 = vpop.f32.mrf.mxu0 }
 0x152   : > { %v6188_v13 = vpack.c.bf16 %v849_v10, %v847_v4  ;;  %v6148_v14 = vpack.c.bf16 %v608_v12, %v606_v6  ;;  %v6010_v54 = vld [vmem:[#allocation4 + $0x8] sm:$0xff] }
 0x153   : > { %2971 = vrot.lane.b32.xlu2 %v6034_v9, %s6992_s11  ;;  %v6050_v4 = vld [vmem:[#allocation4 + $0x8] sm:$0xff] }
 0x154   : > { %6331 = vst [vmem:[#allocation3 + $0x20] sm:$0xff] %v6188_v13   ;;  %2921 = vrot.lane.b32.xlu0 %v6025_v11, %s6992_s11 }
 0x155   : > { %6324 = vst [vmem:[#allocation2 + $0x20] sm:$0xff] %v6148_v14   ;;  %3804 = vrot.lane.b32.xlu1 %v6064_v15, %s6993_s14 }
 0x158   : > { %v1066_v29 = vpop.f32.mrf.mxu2 }
 0x159   : > { %v6268_v17 = vpack.c.bf16 %v1066_v29, %v1064_v8  ;;  %v852_v18 = vpop.f32.mrf.mxu1  ;;  %v611_v20 = vpop.f32.mrf.mxu0 }
 0x15b   : > { %6346 = vst [vmem:[#allocation4 + $0x28] sm:$0xff] %v6268_v17   ;;  %3856 = vrot.lane.b32.xlu2 %v6074_v16, %s6993_s14  ;;  %v5995_v34 = vld [vmem:[#allocation3 + $0x20] sm:$0xff]  ;;  %v5970_v17 = vld [vmem:[#allocation4 + $0x8] sm:$0xff] }
 0x15c   : > { %891 = vmatmul.bf16.gmra.mxu1 %v7239_v32  ;;  %3806 = vrot.lane.b32.xlu0 %v6065_v19, %s6993_s14  ;;  %v6035_v42 = vld [vmem:[#allocation3 + $0x20] sm:$0xff] }
 0x15d   : > { %2084 = vrot.lane.b32.xlu1 %v5993_v21, %s6991_s30  ;;  %v6027_v44 = vld [vmem:[#allocation2 + $0x20] sm:$0xff] }
 0x15e   : > { %v6067_v51 = vld [vmem:[#allocation2 + $0x20] sm:$0xff] }
 0x15f   : > { %v5955_v12 = vld [vmem:[#allocation3 + $0x20] sm:$0xff] }
 0x160   : > { %v1069_v22 = vpop.f32.mrf.mxu2  ;;  %v5987_v29 = vld [vmem:[#allocation2 + $0x20] sm:$0xff]  ;;  %v1355_v16 = vsel %vm1326_vm0, %v5955_v12, 0 }
 0x161   : > { %v854_v24 = vpop.f32.mrf.mxu1  ;;  %v613_v28 = vpop.f32.mrf.mxu0 }
 0x162   : > { %v6193_v27 = vpack.c.bf16 %v854_v24, %v852_v18  ;;  %v6153_v30 = vpack.c.bf16 %v613_v28, %v611_v20  ;;  %v6051_v61 = vld [vmem:[#allocation4 + $0x28] sm:$0xff]  ;;  %v6075_v28 = vld [vmem:[#allocation3 + $0x20] sm:$0xff] }
 0x163   : > { %3949 = vrot.lane.b32.xlu2 %v6066_v23, %s6993_s14  ;;  %v5971_v8 = vld [vmem:[#allocation4 + $0x28] sm:$0xff] }
 0x164   : > { %6332 = vst [vmem:[#allocation3 + $0x70] sm:$0xff] %v6193_v27   ;;  %2086 = vrot.lane.b32.xlu0 %v5994_v25, %s6991_s30  ;;  %v5954_v23 = vld [vmem:[#allocation3 + $0x68] sm:$0xff]  ;;  %v5969_v25 = vld [vmem:[#allocation4 + $0x58] sm:$0xff] }
 0x165   : > { %6325 = vst [vmem:[#allocation2 + $0x28] sm:$0xff] %v6153_v30   ;;  %2969 = vrot.lane.b32.xlu1 %v6033_v31, %s6992_s11  ;;  %v1352_v31 = vsel %vm1326_vm0, %v5954_v23, 0 }
 0x168   : > { %v1071_v32 = vpop.f32.mrf.mxu2  ;;  %v7298_v33 = vpop.permute.xlu2 %2078 }
 0x169   : > { %v6273_v36 = vpack.c.bf16 %v1071_v32, %v1069_v22  ;;  %v857_v37 = vpop.f32.mrf.mxu1  ;;  %v616_v52 = vpop.f32.mrf.mxu0  ;;  %v5968_v32 = vld [vmem:[#allocation4 + $0x40] sm:$0xff] }
 0x16b   : > { %6347 = vst [vmem:[#allocation4 + $0x38] sm:$0xff] %v6273_v36   ;;  %2088 = vrot.lane.b32.xlu2 %v5995_v34, %s6991_s30  ;;  %v6076_v48 = vld [vmem:[#allocation3 + $0x70] sm:$0xff] }
 0x16c   : > { %896 = vmatmul.bf16.gmra.mxu1 %v7245_v35  ;;  %2179 = vrot.lane.b32.xlu0 %v5986_v38, %s6991_s30  ;;  %v5956_v57 = vld [vmem:[#allocation3 + $0x70] sm:$0xff]  ;;  %v6028_v59 = vld [vmem:[#allocation2 + $0x28] sm:$0xff] }
 0x16d   : > { %3854 = vrot.lane.b32.xlu1 %v6073_v39, %s6993_s14  ;;  %v1358_v2 = vsel %vm1326_vm0, %v5956_v57, 0  ;;  %v5996_v11 = vld [vmem:[#allocation3 + $0x70] sm:$0xff]  ;;  %v6068_v39 = vld [vmem:[#allocation2 + $0x28] sm:$0xff] }
 0x16e   : > { %v6036_v22 = vld [vmem:[#allocation3 + $0x70] sm:$0xff] }
 0x170   : > { %v1074_v40 = vpop.f32.mrf.mxu2  ;;  %v7304_v41 = vpop.permute.xlu2 %3848 }
 0x171   : > { %v859_v43 = vpop.f32.mrf.mxu1  ;;  %v618_v1 = vpop.f32.mrf.mxu0 }
 0x172   : > { %v6198_v45 = vpack.c.bf16 %v859_v43, %v857_v37  ;;  %v6158_v3 = vpack.c.bf16 %v618_v1, %v616_v52  ;;  %v5972_v5 = vld [vmem:[#allocation4 + $0x38] sm:$0xff] }
 0x173   : > { %2973 = vrot.lane.b32.xlu2 %v6035_v42, %s6992_s11  ;;  %v6052_v9 = vld [vmem:[#allocation4 + $0x38] sm:$0xff]  ;;  %v5967_v42 = vld [vmem:[#allocation4] sm:$0xff] }
 0x174   : > { %6333 = vst [vmem:[#allocation3 + $0x10] sm:$0xff] %v6198_v45   ;;  %3066 = vrot.lane.b32.xlu0 %v6027_v44, %s6992_s11  ;;  %v6011_v44 = vld [vmem:[#allocation4 + $0x28] sm:$0xff] }
 0x175   : > { %3064 = vrot.lane.b32.xlu1 %v6026_v46, %s6992_s11  ;;  %6326 = vst [vmem:[#allocation2 + $0x38] sm:$0xff] %v6158_v3   ;;  %v5951_v3 = vld [vmem:[#allocation3 + $0x18] sm:$0xff] }
 0x178   : > { %v1076_v35 = vpop.f32.mrf.mxu2  ;;  %v7309_v47 = vpop.permute.xlu2 %2032 }
 0x179   : > { %v6278_v49 = vpack.c.bf16 %v1076_v35, %v1074_v40  ;;  %v862_v50 = vpop.f32.mrf.mxu1  ;;  %v5953_v40 = vld [vmem:[#allocation3 + $0x60] sm:$0xff]  ;;  %v5966_v35 = vld [vmem:[#allocation4 + $0x30] sm:$0xff] }
 0x17a   : > { %v1349_v46 = vsel %vm1326_vm0, %v5953_v40, 0 }
 0x17b   : > { %6348 = vst [vmem:[#allocation4 + $0x20] sm:$0xff] %v6278_v49   ;;  %v5957_v53 = vld [vmem:[#allocation3 + $0x10] sm:$0xff]  ;;  %3860 = vrot.lane.b32.xlu2 %v6076_v48, %s6993_s14 }
 0x17c   : > { %3951 = vrot.lane.b32.xlu0 %v6067_v51, %s6993_s14  ;;  %v1361_v55 = vsel %vm1326_vm0, %v5957_v53, 0  ;;  %v5997_v20 = vld [vmem:[#allocation3 + $0x10] sm:$0xff]  ;;  %v6012_v53 = vld [vmem:[#allocation4 + $0x38] sm:$0xff] }
 0x17d   : > { %2556 = vrot.lane.b32.xlu1 %v6010_v54, %s6991_s30  ;;  %1363 = vmatpush.bf16.xpose.msrb.mxu3 %v1361_v55  ;;  %v5952_v54 = vld [vmem:[#allocation3 + $0x50] sm:$0xff] }
 0x17e   : > { %v7315_v56 = vpop.permute.xlu0 %2030 }
 0x17f   : > { %v7317_v58 = vpop.permute.xlu1 %2963 }
 0x180   : > { %v7319_v62 = vpop.permute.xlu2 %3802  ;;  %v1079_v26 = vpop.f32.mrf.mxu2 }
 0x181   : > { %v864_v60 = vpop.f32.mrf.mxu1 }
 0x182   : > { %v6203_v63 = vpack.c.bf16 %v864_v60, %v862_v50  ;;  %v5973_v0 = vld [vmem:[#allocation4 + $0x20] sm:$0xff]  ;;  %v1346_v60 = vsel %vm1326_vm0, %v5952_v54, 0 }
 0x183   : > { %1767 = vmatpush.bf16.msrb.mxu0 %v5973_v0  ;;  %3068 = vrot.lane.b32.xlu2 %v6028_v59, %s6992_s11  ;;  %v6013_v37 = vld [vmem:[#allocation4 + $0x20] sm:$0xff]  ;;  %v5988_v59 = vld [vmem:[#allocation2 + $0x28] sm:$0xff] }
 0x184   : > { %6334 = vst [vmem:[#allocation3 + $0x28] sm:$0xff] %v6203_v63   ;;  %3443 = vrot.lane.b32.xlu0 %v6051_v61, %s6992_s11 }
 0x185   : > { %3441 = vrot.lane.b32.xlu1 %v6050_v4, %s6992_s11  ;;  %1364 = vmatpush.bf16.xpose.msrb.mxu3 %v1358_v2  ;;  %v6069_v2 = vld [vmem:[#allocation2 + $0x38] sm:$0xff] }
 0x186   : > { %v7325_v6 = vpop.permute.xlu0 %3800 }
 0x187   : > { %1768 = vmatpush.bf16.msrb.mxu0 %v5972_v5  ;;  %v7327_v7 = vpop.permute.xlu1 %2915  ;;  %v6037_v5 = vld [vmem:[#allocation3 + $0x10] sm:$0xff] }
 0x188   : > { %v7329_v13 = vpop.permute.xlu2 %2082  ;;  %v1081_v14 = vpop.f32.mrf.mxu2 }
 0x189   : > { %v867_v10 = vpop.f32.mrf.mxu1  ;;  %v6283_v15 = vpack.c.bf16 %v1081_v14, %v1079_v26 }
 0x18b   : > { %1769 = vmatpush.bf16.msrb.mxu0 %v5971_v8  ;;  %3445 = vrot.lane.b32.xlu2 %v6052_v9, %s6992_s11  ;;  %6349 = vst [vmem:[#allocation4 + $0x78] sm:$0xff] %v6283_v15   ;;  %v5998_v51 = vld [vmem:[#allocation3 + $0x28] sm:$0xff]  ;;  %v1343_v9 = vsel %vm1326_vm0, %v5951_v3, 0 }
 0x18c   : > { %2090 = vrot.lane.b32.xlu0 %v5996_v11, %s6991_s30  ;;  %v6078_v1 = vld [vmem:[#allocation3 + $0x28] sm:$0xff] }
 0x18d   : > { %2181 = vrot.lane.b32.xlu1 %v5987_v29, %s6991_s30  ;;  %1365 = vmatpush.bf16.xpose.msrb.mxu3 %v1355_v16  ;;  %v6038_v29 = vld [vmem:[#allocation3 + $0x28] sm:$0xff]  ;;  %v5950_v16 = vld [vmem:[#allocation3] sm:$0xff] }
 0x18e   : > { %v7335_v18 = vpop.permute.xlu0 %2673 }
 0x18f   : > { %1770 = vmatpush.bf16.msrb.mxu0 %v5970_v17  ;;  %v7337_v19 = vpop.permute.xlu1 %2548 }
 0x190   : > { %v1084_v27 = vpop.f32.mrf.mxu2  ;;  %v7340_v30 = vpop.permute.xlu2 %3852 }
 0x191   : > { %v869_v21 = vpop.f32.mrf.mxu1 }
 0x192   : > { %v6208_v24 = vpack.c.bf16 %v869_v21, %v867_v10  ;;  %v1340_v21 = vsel %vm1326_vm0, %v5950_v16, 0  ;;  %v5944_v16 = vld [vmem:[#allocation2 + $0x18] sm:$0xff] }
 0x193   : > { %1771 = vmatpush.bf16.msrb.mxu0 %v5969_v25  ;;  %2092 = vrot.lane.b32.xlu2 %v5997_v20, %s6991_s30  ;;  %v6077_v20 = vld [vmem:[#allocation3 + $0x10] sm:$0xff] }
 0x194   : > { %6335 = vst [vmem:[#allocation3 + $0x40] sm:$0xff] %v6208_v24   ;;  %2975 = vrot.lane.b32.xlu0 %v6036_v22, %s6992_s11 }
 0x195   : > { %3858 = vrot.lane.b32.xlu1 %v6075_v28, %s6993_s14  ;;  %1366 = vmatpush.bf16.xpose.msrb.mxu3 %v1352_v31  ;;  %v5989_v31 = vld [vmem:[#allocation2 + $0x38] sm:$0xff] }
 0x196   : > { %v7345_v34 = vpop.permute.xlu0 %2080 }
 0x197   : > { %1772 = vmatpush.bf16.msrb.mxu0 %v5968_v32  ;;  %v7347_v36 = vpop.permute.xlu1 %2965  ;;  %v5942_v32 = vld [vmem:[#allocation2 + $0x30] sm:$0xff] }
 0x198   : > { %v1086_v43 = vpop.f32.mrf.mxu2 }
 0x199   : > { %v872_v38 = vpop.f32.mrf.mxu1  ;;  %v6288_v45 = vpack.c.bf16 %v1086_v43, %v1084_v27 }
 0x19b   : > { %1773 = vmatpush.bf16.msrb.mxu0 %v5967_v42  ;;  %2562 = vrot.lane.b32.xlu2 %v6013_v37, %s6991_s30  ;;  %6350 = vst [vmem:[#allocation4 + $0x50] sm:$0xff] %v6288_v45   ;;  %v6039_v14 = vld [vmem:[#allocation3 + $0x40] sm:$0xff]  ;;  %v6029_v45 = vld [vmem:[#allocation2 + $0x38] sm:$0xff] }
 0x19c   : > { %3953 = vrot.lane.b32.xlu0 %v6068_v39, %s6993_s14  ;;  %v6079_v25 = vld [vmem:[#allocation3 + $0x40] sm:$0xff] }
 0x19d   : > { %2558 = vrot.lane.b32.xlu1 %v6011_v44, %s6991_s30  ;;  %1367 = vmatpush.bf16.xpose.msrb.mxu3 %v1349_v46  ;;  %v7353_v48 = vpop.permute.xlu2 %2554  ;;  %v5999_v28 = vld [vmem:[#allocation3 + $0x40] sm:$0xff] }
 0x19e   : > { %v7355_v49 = vpop.permute.xlu0 %2917 }
 0x19f   : > { %1774 = vmatpush.bf16.msrb.mxu0 %v5966_v35  ;;  %v7357_v50 = vpop.permute.xlu1 %3850 }
 0x1a0   : > { %v1089_v57 = vpop.f32.mrf.mxu2 }
 0x1a1   : > { %v874_v52 = vpop.f32.mrf.mxu1 }
 0x1a2   : > { %v6213_v55 = vpack.c.bf16 %v874_v52, %v872_v38 }
 0x1a3   : > { %2227 = vrot.lane.b32.xlu2 %v5998_v51, %s6991_s30 }
 0x1a4   : > { %6336 = vst [vmem:[#allocation3 + $0x38] sm:$0xff] %v6213_v55   ;;  %2560 = vrot.lane.b32.xlu0 %v6012_v53, %s6991_s30  ;;  %v6053_v55 = vld [vmem:[#allocation4 + $0x20] sm:$0xff] }
 0x1a5   : > { %2183 = vrot.lane.b32.xlu1 %v5988_v59, %s6991_s30  ;;  %1368 = vmatpush.bf16.xpose.msrb.mxu3 %v1346_v60  ;;  %v2680_v61 = vpop.permute.xlu2 %2679 }
 0x1a6   : > { %v7363_v63 = vpop.permute.xlu0 %2919  ;;  %2689 = vmatpush.bf16.msrb.mxu1 %v2680_v61 }
 0x1a7   : > { %v7365_v0 = vpop.permute.xlu1 %2550 }
 0x1a8   : > { %v1091_v4 = vpop.f32.mrf.mxu2 }
 0x1a9   : > { %v877_v26 = vpop.f32.mrf.mxu1  ;;  %v6293_v8 = vpack.c.bf16 %v1091_v4, %v1089_v57  ;;  %v5943_v57 = vld [vmem:[#allocation2] sm:$0xff] }
 0x1ab   : > { %3997 = vrot.lane.b32.xlu2 %v6078_v1, %s6993_s14  ;;  %6351 = vst [vmem:[#allocation4 + $0x18] sm:$0xff] %v6293_v8   ;;  %v6080_v40 = vld [vmem:[#allocation3 + $0x38] sm:$0xff] }
 0x1ac   : > { %3955 = vrot.lane.b32.xlu0 %v6069_v2, %s6993_s14  ;;  %v6000_v43 = vld [vmem:[#allocation3 + $0x38] sm:$0xff] }
 0x1ad   : > { %2977 = vrot.lane.b32.xlu1 %v6037_v5, %s6992_s11  ;;  %1369 = vmatpush.bf16.xpose.msrb.mxu3 %v1343_v9  ;;  %v7371_v10 = vpop.permute.xlu2 %2971  ;;  %v6040_v54 = vld [vmem:[#allocation3 + $0x38] sm:$0xff] }
 0x1ae   : > { %v7373_v11 = vpop.permute.xlu0 %2552  ;;  %v6049_v5 = vld [vmem:[#allocation4 + $0x58] sm:$0xff] }
 0x1af   : > { %v2676_v12 = vpop.permute.xlu1 %2675 }
 0x1b0   : > { %v1094_v35 = vpop.f32.mrf.mxu2 }
 0x1b1   : > { %v879_v15 = vpop.f32.mrf.mxu1 }
 0x1b2   : > { %v6218_v17 = vpack.c.bf16 %v879_v15, %v877_v26  ;;  %v6016_v3 = vld [vmem:[#allocation4 + $0x18] sm:$0xff] }
 0x1b3   : > { %3114 = vrot.lane.b32.xlu2 %v6039_v14, %s6992_s11 }
 0x1b4   : > { %6337 = vst [vmem:[#allocation3 + $0x8] sm:$0xff] %v6218_v17   ;;  %3112 = vrot.lane.b32.xlu0 %v6038_v29, %s6992_s11  ;;  %v6048_v17 = vld [vmem:[#allocation4 + $0x40] sm:$0xff] }
 0x1b5   : > { %3862 = vrot.lane.b32.xlu1 %v6077_v20, %s6993_s14  ;;  %1370 = vmatpush.bf16.xpose.msrb.mxu3 %v1340_v21  ;;  %v7379_v22 = vpop.permute.xlu2 %3856 }
 0x1b6   : > { %v2678_v23 = vpop.permute.xlu0 %2677 }
 0x1b7   : > { %v7381_v24 = vpop.permute.xlu1 %2034  ;;  %2690 = vmatpush.bf16.msrb.mxu1 %v2678_v23 }
 0x1b8   : > { %v1096_v60 = vpop.f32.mrf.mxu2 }
 0x1b9   : > { %v882_v27 = vpop.f32.mrf.mxu1  ;;  %v6298_v1 = vpack.c.bf16 %v1096_v60, %v1094_v35 }
 0x1bb   : > { %2691 = vmatpush.bf16.msrb.mxu1 %v2676_v12  ;;  %3999 = vrot.lane.b32.xlu2 %v6079_v25, %s6993_s14  ;;  %6352 = vst [vmem:[#allocation4 + $0x70] sm:$0xff] %v6298_v1   ;;  %v6001_v29 = vld [vmem:[#allocation3 + $0x8] sm:$0xff] }
 0x1bc   : > { %5196 = vmatmul.msk.bf16.vlgmr.msrb.gmra.mxu3 %vm1326_vm0, %v5942_v32  ;;  %2229 = vrot.lane.b32.xlu0 %v5999_v28, %s6991_s30  ;;  %v6081_v28 = vld [vmem:[#allocation3 + $0x8] sm:$0xff]  ;;  %v6015_v32 = vld [vmem:[#allocation4 + $0x50] sm:$0xff] }
 0x1bd   : > { %2185 = vrot.lane.b32.xlu1 %v5989_v31, %s6991_s30  ;;  %v7387_v37 = vpop.permute.xlu2 %3949 }
 0x1be   : > { %8836 = vst [vmem:[#allocation26_spill] sm:$0xff] %v7387_v37  ;;  %v7389_v38 = vpop.permute.xlu0 %2036 }
 0x1bf   : > { %v7391_v39 = vpop.permute.xlu1 %2967  ;;  %2692 = vmatpush.bf16.msrb.mxu1 %v7335_v18  ;;  %v6041_v18 = vld [vmem:[#allocation3 + $0x8] sm:$0xff] }
 0x1c0   : > { %v2998_v37 = vsel %vm1326_vm0, %v7391_v39, 0  ;;  %v2995_v39 = vsel %vm1326_vm0, %v7347_v36, 0 }
 0x1c1   : > { %v884_v42 = vpop.f32.mrf.mxu1 }
 0x1c2   : > { %v6223_v44 = vpack.c.bf16 %v884_v42, %v882_v27  ;;  %v6017_v14 = vld [vmem:[#allocation4 + $0x70] sm:$0xff] }
 0x1c3   : > { %4001 = vrot.lane.b32.xlu2 %v6080_v40, %s6993_s14 }
 0x1c4   : > { %6338 = vst [vmem:[#allocation3 + $0x58] sm:$0xff] %v6223_v44   ;;  %2231 = vrot.lane.b32.xlu0 %v6000_v43, %s6991_s30 }
 0x1c5   : > { %3070 = vrot.lane.b32.xlu1 %v6029_v45, %s6992_s11  ;;  %v7397_v46 = vpop.permute.xlu2 %2088 }
 0x1c6   : > { %v7399_v51 = vpop.permute.xlu0 %2921 }
 0x1c7   : > { %v7401_v52 = vpop.permute.xlu1 %3804 }
 0x1c9   : > { %v887_v53 = vpop.f32.mrf.mxu1 }
 0x1cb   : > { %3118 = vrot.lane.b32.xlu2 %v6041_v18, %s6992_s11  ;;  %v6042_v35 = vld [vmem:[#allocation3 + $0x58] sm:$0xff] }
 0x1cc   : > { %5197 = vmatmul.msk.bf16.gmra.mxu3 %vm1326_vm0, %v5943_v57  ;;  %3116 = vrot.lane.b32.xlu0 %v6040_v54, %s6992_s11  ;;  %v6002_v18 = vld [vmem:[#allocation3 + $0x58] sm:$0xff] }
 0x1cd   : > { %3447 = vrot.lane.b32.xlu1 %v6053_v55, %s6992_s11  ;;  %v7407_v59 = vpop.permute.xlu2 %2973 }
 0x1ce   : > { %v7409_v61 = vpop.permute.xlu0 %3806 }
 0x1cf   : > { %v7411_v26 = vpop.permute.xlu1 %2084 }
 0x1d1   : > { %v889_v2 = vpop.f32.mrf.mxu1 }
 0x1d2   : > { %v6228_v4 = vpack.c.bf16 %v889_v2, %v887_v53  ;;  %v5945_v53 = vld [vmem:[#allocation2 + $0x10] sm:$0xff]  ;;  %v6082_v2 = vld [vmem:[#allocation3 + $0x58] sm:$0xff] }
 0x1d3   : > { %2671 = vrot.lane.b32.xlu2 %v6017_v14, %s6991_s30 }
 0x1d4   : > { %6339 = vst [vmem:[#allocation3 + $0x48] sm:$0xff] %v6228_v4   ;;  %2669 = vrot.lane.b32.xlu0 %v6016_v3, %s6991_s30 }
 0x1d5   : > { %3439 = vrot.lane.b32.xlu1 %v6049_v5, %s6992_s11  ;;  %v7415_v8 = vpop.permute.xlu2 %3860 }
 0x1d6   : > { %v7417_v9 = vpop.permute.xlu0 %2086 }
 0x1d7   : > { %v7419_v12 = vpop.permute.xlu1 %2969 }
 0x1d9   : > { %v892_v15 = vpop.f32.mrf.mxu1 }
 0x1db   : > { %v6003_v25 = vld [vmem:[#allocation3 + $0x48] sm:$0xff] }
 0x1dc   : > { %5198 = vmatmul.msk.bf16.gmra.mxu3 %vm1326_vm0, %v5944_v16  ;;  %2233 = vrot.lane.b32.xlu0 %v6001_v29, %s6991_s30  ;;  %v6043_v44 = vld [vmem:[#allocation3 + $0x48] sm:$0xff] }
 0x1dd   : > { %3437 = vrot.lane.b32.xlu1 %v6048_v17, %s6992_s11  ;;  %v7425_v20 = vpop.permute.xlu2 %3068  ;;  %2237 = vrot.lane.b32.xlu2 %v6003_v25, %s6991_s30  ;;  %v6083_v4 = vld [vmem:[#allocation3 + $0x48] sm:$0xff] }
 0x1de   : > { %8837 = vst [vmem:[#allocation27_spill] sm:$0xff] %v7425_v20  ;;  %v7427_v21 = vpop.permute.xlu0 %2179 }
 0x1df   : > { %8838 = vst [vmem:[#allocation28_spill] sm:$0xff] %v7427_v21  ;;  %v7429_v23 = vpop.permute.xlu1 %3854 }
 0x1e1   : > { %v894_v27 = vpop.f32.mrf.mxu1 }
 0x1e2   : > { %v6233_v31 = vpack.c.bf16 %v894_v27, %v892_v15 }
 0x1e4   : > { %6340 = vst [vmem:[#allocation3 + $0x78] sm:$0xff] %v6233_v31   ;;  %4003 = vrot.lane.b32.xlu0 %v6081_v28, %s6993_s14 }
 0x1e5   : > { %v7433_v40 = vpop.permute.xlu2 %3445  ;;  %2667 = vrot.lane.b32.xlu1 %v6015_v32, %s6991_s30  ;;  %3122 = vrot.lane.b32.xlu2 %v6043_v44, %s6992_s11 }
 0x1e6   : > { %v7436_v42 = vpop.permute.xlu0 %3066 }
 0x1e7   : > { %8839 = vst [vmem:[#allocation29_spill] sm:$0xff] %v7436_v42  ;;  %v7438_v43 = vpop.permute.xlu1 %3064 }
 0x1e8   : > { %8840 = vst [vmem:[#allocation30_spill] sm:$0xff] %v7438_v43 }
 0x1e9   : > { %v897_v45 = vpop.f32.mrf.mxu1 }
 0x1eb   : > { %v6004_v29 = vld [vmem:[#allocation3 + $0x78] sm:$0xff] }
 0x1ec   : > { %5199 = vmatmul.msk.bf16.gmra.mxu3 %vm1326_vm0, %v5945_v53  ;;  %3120 = vrot.lane.b32.xlu0 %v6042_v35, %s6992_s11  ;;  %v6084_v16 = vld [vmem:[#allocation3 + $0x78] sm:$0xff] }
 0x1ed   : > { %v2093_v54 = vpop.permute.xlu2 %2092  ;;  %2235 = vrot.lane.b32.xlu1 %v6002_v18, %s6991_s30  ;;  %v5964_v31 = vld [vmem:[#allocation3 + $0x78] sm:$0xff] }
 0x1ee   : > { %v7444_v55 = vpop.permute.xlu0 %3951  ;;  %v2128_v57 = vsel %vm1326_vm0, %v2093_v54, 0  ;;  %v1483_v35 = vsel %vm1326_vm0, %v5964_v31, 0  ;;  %v2122_v54 = vsel %vm1326_vm0, %v7397_v46, 0  ;;  %v2119_v46 = vsel %vm1326_vm0, %v7417_v9, 0 }
 0x1ef   : > { %8841 = vst [vmem:[#allocation31_spill] sm:$0xff] %v7444_v55  ;;  %v7447_v60 = vpop.permute.xlu1 %2556  ;;  %2130 = vmatpush.bf16.xpose.msra.mxu0 %v2128_v57 }
 0x1f1   : > { %v899_v1 = vpop.f32.mrf.mxu1 }
 0x1f2   : > { %v6238_v3 = vpack.c.bf16 %v899_v1, %v897_v45  ;;  %v6044_v45 = vld [vmem:[#allocation3 + $0x78] sm:$0xff] }
 0x1f4   : > { %6341 = vst [vmem:[#allocation3 + $0x30] sm:$0xff] %v6238_v3   ;;  %4005 = vrot.lane.b32.xlu0 %v6082_v2, %s6993_s14  ;;  %v5963_v3 = vld [vmem:[#allocation3 + $0x48] sm:$0xff] }
 0x1f5   : > { %4007 = vrot.lane.b32.xlu1 %v6083_v4, %s6993_s14  ;;  %v7451_v5 = vpop.permute.xlu2 %2562  ;;  %v1480_v4 = vsel %vm1326_vm0, %v5963_v3, 0 }
 0x1f6   : > { %v7453_v14 = vpop.permute.xlu0 %3443 }
 0x1f7   : > { %v7455_v15 = vpop.permute.xlu1 %3441 }
 0x1fb   : > { %v5965_v17 = vld [vmem:[#allocation3 + $0x30] sm:$0xff] }
 0x1fc   : > { %2239 = vrot.lane.b32.xlu0 %v6004_v29, %s6991_s30  ;;  %v1486_v25 = vsel %vm1326_vm0, %v5965_v17, 0  ;;  %v6085_v57 = vld [vmem:[#allocation3 + $0x30] sm:$0xff]  ;;  %v5962_v17 = vld [vmem:[#allocation3 + $0x58] sm:$0xff] }
 0x1fd   : > { %1488 = vmatpush.bf16.xpose.msra.mxu3 %v1486_v25  ;;  %4009 = vrot.lane.b32.xlu1 %v6084_v16, %s6993_s14  ;;  %v7460_v27 = vpop.permute.xlu2 %2227  ;;  %v6005_v2 = vld [vmem:[#allocation3 + $0x30] sm:$0xff]  ;;  %v1477_v31 = vsel %vm1326_vm0, %v5962_v17, 0  ;;  %v5960_v17 = vld [vmem:[#allocation3 + $0x38] sm:$0xff] }
 0x1fe   : > { %v2091_v28 = vpop.permute.xlu0 %2090  ;;  %4011 = vrot.lane.b32.xlu2 %v6085_v57, %s6993_s14  ;;  %v6045_v25 = vld [vmem:[#allocation3 + $0x30] sm:$0xff] }
 0x1ff   : > { %v7462_v32 = vpop.permute.xlu1 %2181  ;;  %v2125_v44 = vsel %vm1326_vm0, %v2091_v28, 0 }
 0x200   : > { %8842 = vst [vmem:[#allocation32_spill] sm:$0xff] %v7462_v32  ;;  %2131 = vmatpush.bf16.xpose.msra.mxu0 %v2125_v44 }
 0x204   : > { %3124 = vrot.lane.b32.xlu0 %v6044_v45, %s6992_s11 }
 0x205   : > { %1489 = vmatpush.bf16.xpose.msra.mxu3 %v1483_v35  ;;  %v7471_v1 = vpop.permute.xlu2 %3997  ;;  %v2116_v35 = vsel %vm1326_vm0, %v7411_v26, 0  ;;  %v1471_v26 = vsel %vm1326_vm0, %v5960_v17, 0 }
 0x206   : > { %v2976_v18 = vpop.permute.xlu0 %2975  ;;  %8843 = vst [vmem:[#allocation33_spill] sm:$0xff] %v7471_v1 }
 0x207   : > { %v7467_v53 = vpop.permute.xlu1 %3858 }
 0x208   : > { %2132 = vmatpush.bf16.xpose.msra.mxu0 %v2122_v54  ;;  %v5961_v54 = vld [vmem:[#allocation3 + $0x8] sm:$0xff] }
 0x209   : > { %v1474_v57 = vsel %vm1326_vm0, %v5961_v54, 0  ;;  %v2110_v54 = vsel %vm1326_vm0, %v7345_v34, 0  ;;  %v3007_v34 = vsel %vm1326_vm0, %v7407_v59, 0 }
 0x20c   : > { %2241 = vrot.lane.b32.xlu0 %v6005_v2, %s6991_s30 }
 0x20d   : > { %1490 = vmatpush.bf16.xpose.msra.mxu3 %v1480_v4  ;;  %v7482_v28 = vpop.permute.xlu2 %3114  ;;  %v2113_v4 = vsel %vm1326_vm0, %v7329_v13, 0  ;;  %v3010_v13 = vsel %vm1326_vm0, %v2976_v18, 0 }
 0x20e   : > { %v7476_v29 = vpop.permute.xlu0 %3953  ;;  %8845 = vst [vmem:[#allocation35_spill] sm:$0xff] %v7482_v28 }
 0x20f   : > { %8844 = vst [vmem:[#allocation34_spill] sm:$0xff] %v7476_v29  ;;  %v7478_v16 = vpop.permute.xlu1 %2558 }
 0x210   : > { %2133 = vmatpush.bf16.xpose.msra.mxu0 %v2119_v46 }
 0x214   : > { %3126 = vrot.lane.b32.xlu0 %v6045_v25, %s6992_s11 }
 0x215   : > { %1491 = vmatpush.bf16.xpose.msra.mxu3 %v1477_v31  ;;  %v7492_v9 = vpop.permute.xlu2 %3999 }
 0x216   : > { %v7486_v44 = vpop.permute.xlu0 %2560  ;;  %8847 = vst [vmem:[#allocation37_spill] sm:$0xff] %v7492_v9 }
 0x217   : > { %v7488_v45 = vpop.permute.xlu1 %2183 }
 0x218   : > { %8846 = vst [vmem:[#allocation36_spill] sm:$0xff] %v7488_v45  ;;  %2134 = vmatpush.bf16.xpose.msra.mxu0 %v2116_v35 }
 0x21d   : > { %1492 = vmatpush.bf16.xpose.msra.mxu3 %v1474_v57  ;;  %v7500_v25 = vpop.permute.xlu2 %4001  ;;  %v5959_v57 = vld [vmem:[#allocation3 + $0x40] sm:$0xff] }
 0x21e   : > { %v7495_v2 = vpop.permute.xlu0 %3955  ;;  %8849 = vst [vmem:[#allocation39_spill] sm:$0xff] %v7500_v25 }
 0x21f   : > { %8848 = vst [vmem:[#allocation38_spill] sm:$0xff] %v7495_v2  ;;  %v2978_v3 = vpop.permute.xlu1 %2977  ;;  %v5981_v2 = vld [vmem:[#allocation4 + $0x48] sm:$0xff] }
 0x220   : > { %2135 = vmatpush.bf16.xpose.msra.mxu0 %v2113_v4  ;;  %v3013_v46 = vsel %vm1326_vm0, %v2978_v3, 0  ;;  %v1468_v4 = vsel %vm1326_vm0, %v5959_v57, 0  ;;  %v1183_v57 = vlaneseq }
 0x221   : > { %3015 = vmatpush.bf16.xpose.msrb.mxu2 %v3013_v46 }
 0x222   : > { %v7528_v59 = vand.u32 127, %v1183_v57 }
 0x224   : > { %vm1185_vm1 = vcmp.lt.s32.totalorder %v7528_v59, 8 }
 0x225   : > { %1493 = vmatpush.bf16.xpose.msra.mxu3 %v1471_v26  ;;  %v7510_v3 = vpop.permute.xlu2 %3118  ;;  %v2107_v26 = vsel %vm1326_vm0, %v7298_v33, 0  ;;  %v3004_v33 = vsel %vm1326_vm0, %v7371_v10, 0  ;;  %v3001_v10 = vsel %vm1326_vm0, %v7419_v12, 0 }
 0x226   : > { %v7503_v31 = vpop.permute.xlu0 %3112 }
 0x227   : > { %8850 = vst [vmem:[#allocation40_spill] sm:$0xff] %v7503_v31  ;;  %v7505_v35 = vpop.permute.xlu1 %3862 }
 0x228   : > { %2136 = vmatpush.bf16.xpose.msra.mxu0 %v2110_v54  ;;  %v5958_v54 = vld [vmem:[#allocation3 + $0x28] sm:$0xff]  ;;  %v3898_v36 = vsel %vm1326_vm0, %v7505_v35, 0 }
 0x229   : > { %3016 = vmatpush.bf16.xpose.msrb.mxu2 %v3010_v13  ;;  %v1465_v13 = vsel %vm1326_vm0, %v5958_v54, 0  ;;  %v5979_v54 = vld [vmem:[#allocation4 + $0x10] sm:$0xff] }
 0x22d   : > { %1494 = vmatpush.bf16.xpose.msra.mxu3 %v1468_v4  ;;  %v2672_v18 = vpop.permute.xlu2 %2671 }
 0x22e   : > { %v7513_v46 = vpop.permute.xlu0 %2229  ;;  %2693 = vmatpush.bf16.msrb.mxu1 %v2672_v18 }
 0x22f   : > { %v7515_v17 = vpop.permute.xlu1 %2185 }
 0x230   : > { %8851 = vst [vmem:[#allocation41_spill] sm:$0xff] %v7515_v17  ;;  %2137 = vmatpush.bf16.xpose.msra.mxu0 %v2107_v26  ;;  %v5980_v26 = vld [vmem:[#allocation4 + $0x68] sm:$0xff] }
 0x231   : > { %3017 = vmatpush.bf16.xpose.msrb.mxu2 %v3007_v34  ;;  %v5946_v34 = vld [vmem:[#allocation2 + $0x8] sm:$0xff] }
 0x235   : > { %1495 = vmatpush.bf16.xpose.msra.mxu3 %v1465_v13 }
 0x236   : > { %v7522_v4 = vpop.permute.xlu0 %2231 }
 0x237   : > { %v7524_v29 = vpop.permute.xlu1 %3070 }
 0x238   : > { %8852 = vst [vmem:[#allocation42_spill] sm:$0xff] %v7524_v29 }
 0x239   : > { %3018 = vmatpush.bf16.xpose.msrb.mxu2 %v3004_v33  ;;  %v5978_v33 = vld [vmem:[#allocation4 + $0x60] sm:$0xff] }
 0x23c   : > { %5248 = vmatmul.msk.bf16.vlgmr.msra.gmra.mxu3 %vm1326_vm0, %v5946_v34 }
 0x23d   : > { %1868 = vmatpush.bf16.msrb.mxu3 %v5981_v2 }
 0x23e   : > { %v7532_v2 = vpop.permute.xlu0 %3116 }
 0x23f   : > { %8853 = vst [vmem:[#allocation43_spill] sm:$0xff] %v7532_v2  ;;  %v7534_v18 = vpop.permute.xlu1 %3447  ;;  %v1372_v13 = vpop.f32.mrf.mxu3 }
 0x240   : > { %v7540_v57 = vsel %vm1185_vm1, %v1372_v13, -3.4028235e+38  ;;  %v5976_v13 = vld [vmem:[#allocation4 + $0x18] sm:$0xff] }
 0x241   : > { %1869 = vmatpush.bf16.msrb.mxu3 %v5980_v26  ;;  %3019 = vmatpush.bf16.xpose.msrb.mxu2 %v3001_v10  ;;  %v5977_v26 = vld [vmem:[#allocation4 + $0x70] sm:$0xff]  ;;  %v5947_v10 = vld [vmem:[#allocation2 + $0x20] sm:$0xff] }
 0x242   : > { %1535 = vmax.xlane.f32.xlu0 %v7540_v57 }
 0x245   : > { %1870 = vmatpush.bf16.msrb.mxu3 %v5979_v54 }
 0x246   : > { %v2670_v34 = vpop.permute.xlu0 %2669 }
 0x247   : > { %v7543_v54 = vpop.permute.xlu1 %3439  ;;  %v1374_v55 = vpop.f32.mrf.mxu3  ;;  %2694 = vmatpush.bf16.msrb.mxu1 %v2670_v34 }
 0x248   : > { %v7549_v12 = vsel %vm1185_vm1, %v1374_v55, -3.4028235e+38 }
 0x249   : > { %1871 = vmatpush.bf16.msrb.mxu3 %v5978_v33  ;;  %3020 = vmatpush.bf16.xpose.msrb.mxu2 %v2998_v37  ;;  %v5975_v33 = vld [vmem:[#allocation4 + $0x50] sm:$0xff]  ;;  %v5974_v37 = vld [vmem:[#allocation4 + $0x78] sm:$0xff] }
 0x24a   : > { %1537 = vmax.xlane.f32.xlu0 %v7549_v12 }
 0x24c   : > { %5249 = vmatmul.msk.bf16.gmra.mxu3 %vm1326_vm0, %v5947_v10 }
 0x24d   : > { %1872 = vmatpush.bf16.msrb.mxu3 %v5977_v26 }
 0x24e   : > { %v7553_v26 = vpop.permute.xlu0 %2233 }
 0x24f   : > { %v7555_v34 = vpop.permute.xlu1 %3437  ;;  %v1377_v29 = vpop.f32.mrf.mxu3 }
 0x250   : > { %v7561_v55 = vsel %vm1185_vm1, %v1377_v29, -3.4028235e+38  ;;  %v5948_v29 = vld [vmem:[#allocation2 + $0x28] sm:$0xff] }
 0x251   : > { %1873 = vmatpush.bf16.msrb.mxu3 %v5976_v13  ;;  %3021 = vmatpush.bf16.xpose.msrb.mxu2 %v2995_v39 }
 0x252   : > { %1539 = vmax.xlane.f32.xlu1 %v7561_v55 }
 0x255   : > { %1874 = vmatpush.bf16.msrb.mxu3 %v5975_v33  ;;  %v2992_v33 = vsel %vm1326_vm0, %v7317_v58, 0 }
 0x256   : > { %v7564_v13 = vpop.permute.xlu0 %4003 }
 0x257   : > { %8854 = vst [vmem:[#allocation44_spill] sm:$0xff] %v7564_v13  ;;  %v1379_v10 = vpop.f32.mrf.mxu3  ;;  %v2668_v20 = vpop.permute.xlu1 %2667 }
 0x258   : > { %v7570_v42 = vsel %vm1185_vm1, %v1379_v10, -3.4028235e+38  ;;  %2695 = vmatpush.bf16.msrb.mxu1 %v2668_v20  ;;  %v3895_v20 = vsel %vm1326_vm0, %v7415_v8, 0 }
 0x259   : > { %1875 = vmatpush.bf16.msrb.mxu3 %v5974_v37  ;;  %3022 = vmatpush.bf16.xpose.msrb.mxu2 %v2992_v33 }
 0x25a   : > { %1541 = vmax.xlane.f32.xlu1 %v7570_v42 }
 0x25c   : > { %5250 = vmatmul.msk.bf16.gmra.mxu3 %vm1326_vm0, %v5948_v29 }
 0x25e   : > { %v7576_v39 = vpop.permute.xlu0 %3120 }
 0x25f   : > { %v1382_v37 = vpop.f32.mrf.mxu3 }
 0x260   : > { %5532 = vmatmul.msk.bf16.vlgmr.msrb.gmra.mxu2 %vm1326_vm0, %v7327_v7  ;;  %v7582_v58 = vsel %vm1185_vm1, %v1382_v37, -3.4028235e+38  ;;  %v3892_v7 = vsel %vm1326_vm0, %v7467_v53, 0 }
 0x261   : > { %3900 = vmatpush.bf16.xpose.msra.mxu2 %v3898_v36  ;;  %1543 = vmax.xlane.f32.xlu2 %v7582_v58  ;;  %v5949_v36 = vld [vmem:[#allocation2 + $0x38] sm:$0xff] }
 0x266   : > { %v7587_v35 = vpop.permute.xlu0 %4005 }
 0x267   : > { %8855 = vst [vmem:[#allocation45_spill] sm:$0xff] %v7587_v35  ;;  %v1384_v10 = vpop.f32.mrf.mxu3 }
 0x268   : > { %v7591_v33 = vsel %vm1185_vm1, %v1384_v10, -3.4028235e+38 }
 0x269   : > { %3901 = vmatpush.bf16.xpose.msra.mxu2 %v3895_v20  ;;  %1545 = vmax.xlane.f32.xlu2 %v7591_v33  ;;  %v3889_v20 = vsel %vm1326_vm0, %v7379_v22, 0  ;;  %v3883_v22 = vsel %vm1326_vm0, %v7340_v30, 0  ;;  %v2236_v30 = vpop.permute.xlu1 %2235 }
 0x26c   : > { %5251 = vmatmul.msk.bf16.gmra.mxu3 %vm1326_vm0, %v5949_v36 }
 0x26e   : > { %v2240_v29 = vpop.permute.xlu0 %2239 }
 0x26f   : > { %v1387_v37 = vpop.f32.mrf.mxu3 }
 0x270   : > { %5533 = vmatmul.msk.bf16.gmra.mxu2 %vm1326_vm0, %v7355_v49  ;;  %v7601_v8 = vsel %vm1185_vm1, %v1387_v37, -3.4028235e+38  ;;  %v3886_v49 = vsel %vm1326_vm0, %v7429_v23, 0  ;;  %v3880_v23 = vsel %vm1326_vm0, %v7357_v50, 0  ;;  %v2262_v50 = vsel %vm1326_vm0, %v7522_v4, 0 }
 0x271   : > { %3902 = vmatpush.bf16.xpose.msra.mxu2 %v3892_v7  ;;  %1547 = vmax.xlane.f32.xlu0 %v7601_v8 }
 0x276   : > { %v7606_v53 = vpop.permute.xlu0 %3124 }
 0x277   : > { %v1389_v10 = vpop.f32.mrf.mxu3 }
 0x278   : > { %v7610_v7 = vsel %vm1185_vm1, %v1389_v10, -3.4028235e+38  ;;  %v2238_v10 = vpop.permute.xlu2 %2237 }
 0x279   : > { %3903 = vmatpush.bf16.xpose.msra.mxu2 %v3889_v20  ;;  %1549 = vmax.xlane.f32.xlu1 %v7610_v7  ;;  %v2274_v20 = vsel %vm1326_vm0, %v2240_v29, 0  ;;  %v2265_v29 = vsel %vm1326_vm0, %v7553_v26, 0 }
 0x27e   : > { %v2242_v36 = vpop.permute.xlu0 %2241 }
 0x27f   : > { %v2277_v37 = vsel %vm1326_vm0, %v2242_v36, 0  ;;  %v2268_v36 = vsel %vm1326_vm0, %v2236_v30, 0 }
 0x280   : > { %5534 = vmatmul.msk.bf16.gmra.mxu2 %vm1326_vm0, %v7363_v63  ;;  %2279 = vmatpush.bf16.xpose.msra.mxu3 %v2277_v37  ;;  %v3877_v63 = vsel %vm1326_vm0, %v7304_v41, 0  ;;  %v2256_v41 = vsel %vm1326_vm0, %v7460_v27, 0 }
 0x281   : > { %3904 = vmatpush.bf16.xpose.msra.mxu2 %v3886_v49  ;;  %v2271_v49 = vsel %vm1326_vm0, %v2238_v10, 0 }
 0x286   : > { %v7649_v26 = vpop.permute.xlu0 %3126 }
 0x288   : > { %2280 = vmatpush.bf16.xpose.msra.mxu3 %v2274_v20  ;;  %v7651_v20 = vpop.permute.xlu2 %3122 }
 0x289   : > { %3905 = vmatpush.bf16.xpose.msra.mxu2 %v3883_v22 }
 0x290   : > { %5535 = vmatmul.msk.bf16.gmra.mxu2 %vm1326_vm0, %v7399_v51  ;;  %2281 = vmatpush.bf16.xpose.msra.mxu3 %v2271_v49  ;;  %v2259_v51 = vsel %vm1326_vm0, %v7513_v46, 0 }
 0x291   : > { %3906 = vmatpush.bf16.xpose.msra.mxu2 %v3880_v23 }
 0x298   : > { %2282 = vmatpush.bf16.xpose.msra.mxu3 %v2268_v36 }
 0x299   : > { %3907 = vmatpush.bf16.xpose.msra.mxu2 %v3877_v63 }
 0x2a0   : > { %5700 = vmatmul.msk.bf16.vlgmr.msra.gmra.mxu2 %vm1326_vm0, %v7325_v6  ;;  %2283 = vmatpush.bf16.xpose.msra.mxu3 %v2265_v29  ;;  %v7643_v6 = vpop.permute.xlu1 %4007  ;;  %v7660_v29 = vpop.permute.xlu2 %4011 }
 0x2a1   : > { %8856 = vst [vmem:[#allocation46_spill] sm:$0xff] %v7643_v6 }
 0x2a2   : > { %8858 = vst [vmem:[#allocation48_spill] sm:$0xff] %v7660_v29 }
 0x2a8   : > { %2284 = vmatpush.bf16.xpose.msra.mxu3 %v2262_v50  ;;  %v7647_v4 = vpop.permute.xlu1 %4009 }
 0x2a9   : > { %8857 = vst [vmem:[#allocation47_spill] sm:$0xff] %v7647_v4 }
 0x2b0   : > { %5701 = vmatmul.msk.bf16.gmra.mxu2 %vm1326_vm0, %v7319_v62  ;;  %2285 = vmatpush.bf16.xpose.msra.mxu3 %v2259_v51 }
 0x2b5   : > { %v1536_v62 = vpop.xlane.xlu0 %1535 }
 0x2b8   : > { %2286 = vmatpush.bf16.xpose.msra.mxu3 %v2256_v41 }
 0x2bd   : > { %v1538_v63 = vpop.xlane.xlu0 %1537 }
 0x2bf   : > { %v1497_v37 = vpop.f32.mrf.mxu3 }
 0x2c0   : > { %5702 = vmatmul.msk.bf16.gmra.mxu2 %vm1326_vm0, %v7401_v52  ;;  %v7668_v51 = vsel %vm1185_vm1, %v1497_v37, -3.4028235e+38 }
 0x2c5   : > { %v1540_v46 = vpop.xlane.xlu1 %1539 }
 0x2c7   : > { %v1499_v52 = vpop.f32.mrf.mxu3 }
 0x2cd   : > { %v1542_v27 = vpop.xlane.xlu1 %1541 }
 0x2ce   : > { %v1570_v10 = vsub.f32 %v7570_v42, %v1542_v27  ;;  %v1568_v42 = vsub.f32 %v7549_v12, %v1538_v63  ;;  %v1569_v12 = vsub.f32 %v7561_v55, %v1540_v46 }
 0x2d0   : > { %5703 = vmatmul.msk.bf16.gmra.mxu2 %vm1326_vm0, %v7409_v61  ;;  %v1567_v61 = vsub.f32 %v7540_v57, %v1536_v62  ;;  %v1589_v30 = vmul.f32 1.442695, %v1570_v10  ;;  %v1502_v57 = vpop.f32.mrf.mxu3  ;;  %v1585_v41 = vmul.f32 1.442695, %v1568_v42  ;;  %v1587_v63 = vmul.f32 1.442695, %v1569_v12 }
 0x2d2   : > { %v1583_v49 = vmul.f32 1.442695, %v1567_v61 }
 0x2d4   : > { %6465 = vpow2.f32 %v1583_v49  ;;  %v1544_v27 = vpop.xlane.xlu2 %1543 }
 0x2d5   : > { %6467 = vpow2.f32 %v1589_v30  ;;  %v1571_v10 = vsub.f32 %v7582_v58, %v1544_v27 }
 0x2d6   : > { %6469 = vpow2.f32 %v1585_v41 }
 0x2d7   : > { %v1591_v30 = vmul.f32 1.442695, %v1571_v10  ;;  %6471 = vpow2.f32 %v1587_v63 }
 0x2d8   : > { %v1504_v49 = vpop.f32.mrf.mxu3 }
 0x2d9   : > { %v7696_v55 = vsel %vm1185_vm1, %v1504_v49, -3.4028235e+38  ;;  %6473 = vpow2.f32 %v1591_v30 }
 0x2dc   : > { %v1546_v27 = vpop.xlane.xlu2 %1545 }
 0x2dd   : > { %v1572_v10 = vsub.f32 %v7591_v33, %v1546_v27 }
 0x2df   : > { %v1593_v49 = vmul.f32 1.442695, %v1572_v10 }
 0x2e0   : > { %v1507_v58 = vpop.f32.mrf.mxu3 }
 0x2e1   : > { %v7723_v9 = vsel %vm1185_vm1, %v1507_v58, -3.4028235e+38  ;;  %6475 = vpow2.f32 %v1593_v49 }
 0x2e3   : > { %v3024_v22 = vpop.f32.mrf.mxu2 }
 0x2e4   : > { %v7655_v23 = vsel %vm1185_vm1, %v3024_v22, -3.4028235e+38  ;;  %v7673_v22 = vpop.eup %6465  ;;  %v1548_v30 = vpop.xlane.xlu0 %1547 }
 0x2e5   : > { %3209 = vmax.xlane.f32.xlu1 %v7655_v23  ;;  %v7679_v37 = vpop.eup %6467  ;;  %v1573_v33 = vsub.f32 %v7601_v8, %v1548_v30 }
 0x2e6   : > { %v7686_v42 = vpop.eup %6469 }
 0x2e7   : > { %v7699_v41 = vpop.eup %6471  ;;  %v1595_v27 = vmul.f32 1.442695, %v1573_v33 }
 0x2e8   : > { %v7705_v12 = vpop.eup %6473  ;;  %v1509_v1 = vpop.f32.mrf.mxu3 }
 0x2e9   : > { %v7735_v25 = vpop.eup %6475  ;;  %6477 = vpow2.f32 %v1595_v27 }
 0x2eb   : > { %v3026_v36 = vpop.f32.mrf.mxu2 }
 0x2ec   : > { %v7664_v50 = vsel %vm1185_vm1, %v3026_v36, -3.4028235e+38  ;;  %v1550_v10 = vpop.xlane.xlu1 %1549 }
 0x2ed   : > { %3211 = vmax.xlane.f32.xlu2 %v7664_v50  ;;  %1551 = vmax.xlane.f32.xlu1 %v7668_v51  ;;  %v1574_v58 = vsub.f32 %v7610_v7, %v1550_v10 }
 0x2ef   : > { %v1597_v49 = vmul.f32 1.442695, %v1574_v58  ;;  %v7749_v33 = vpop.eup %6477 }
 0x2f0   : > { %v1512_v8 = vpop.f32.mrf.mxu3 }
 0x2f1   : > { %6479 = vpow2.f32 %v1597_v49 }
 0x2f3   : > { %v3029_v62 = vpop.f32.mrf.mxu2 }
 0x2f4   : > { %v7677_v61 = vsel %vm1185_vm1, %v3029_v62, -3.4028235e+38  ;;  %v7690_v62 = vsel %vm1185_vm1, %v1499_v52, -3.4028235e+38 }
 0x2f5   : > { %3213 = vmax.xlane.f32.xlu0 %v7677_v61  ;;  %1615 = vadd.xlane.f32.xlu2 %v7673_v22 }
 0x2f6   : > { %1621 = vadd.xlane.f32.xlu1 %v7679_v37 }
 0x2f7   : > { %v7756_v10 = vpop.eup %6479 }
 0x2f8   : > { %v1514_v7 = vpop.f32.mrf.mxu3 }
 0x2f9   : > { %v7760_v58 = vsel %vm1185_vm1, %v1514_v7, -3.4028235e+38 }
 0x2fb   : > { %v3031_v36 = vpop.f32.mrf.mxu2 }
 0x2fc   : > { %v7703_v52 = vsel %vm1185_vm1, %v3031_v36, -3.4028235e+38  ;;  %v7717_v36 = vsel %vm1185_vm1, %v1502_v57, -3.4028235e+38  ;;  %v7729_v57 = vsel %vm1185_vm1, %v1509_v1, -3.4028235e+38 }
 0x2fd   : > { %1553 = vmax.xlane.f32.xlu2 %v7690_v62  ;;  %1617 = vadd.xlane.f32.xlu0 %v7686_v42 }
 0x2fe   : > { %1557 = vmax.xlane.f32.xlu1 %v7696_v55 }
 0x303   : > { %v3034_v46 = vpop.f32.mrf.mxu2 }
 0x304   : > { %v7733_v17 = vsel %vm1185_vm1, %v3034_v46, -3.4028235e+38 }
 0x305   : > { %3215 = vmax.xlane.f32.xlu2 %v7703_v52  ;;  %1619 = vadd.xlane.f32.xlu0 %v7699_v41 }
 0x306   : > { %1623 = vadd.xlane.f32.xlu1 %v7705_v12 }
 0x30b   : > { %v3036_v63 = vpop.f32.mrf.mxu2 }
 0x30c   : > { %v7713_v43 = vsel %vm1185_vm1, %v3036_v63, -3.4028235e+38 }
 0x30d   : > { %3219 = vmax.xlane.f32.xlu2 %v7713_v43  ;;  %1555 = vmax.xlane.f32.xlu0 %v7717_v36 }
 0x30e   : > { %1559 = vmax.xlane.f32.xlu1 %v7723_v9 }
 0x313   : > { %v3039_v63 = vpop.f32.mrf.mxu2 }
 0x314   : > { %v7747_v46 = vsel %vm1185_vm1, %v3039_v63, -3.4028235e+38  ;;  %v7765_v63 = vsel %vm1185_vm1, %v1512_v8, -3.4028235e+38 }
 0x315   : > { %1561 = vmax.xlane.f32.xlu2 %v7729_v57  ;;  %3217 = vmax.xlane.f32.xlu0 %v7733_v17 }
 0x316   : > { %1625 = vadd.xlane.f32.xlu1 %v7735_v25 }
 0x31b   : > { %v3041_v30 = vpop.f32.mrf.mxu2 }
 0x31c   : > { %v7743_v1 = vsel %vm1185_vm1, %v3041_v30, -3.4028235e+38 }
 0x31d   : > { %3223 = vmax.xlane.f32.xlu2 %v7743_v1  ;;  %3221 = vmax.xlane.f32.xlu0 %v7747_v46 }
 0x31e   : > { %1627 = vadd.xlane.f32.xlu1 %v7749_v33 }
 0x323   : > { %v7754_v27 = vpop.f32.mrf.mxu2 }
 0x325   : > { %1629 = vadd.xlane.f32.xlu0 %v7756_v10  ;;  %1565 = vmax.xlane.f32.xlu2 %v7760_v58 }
 0x326   : > { %1563 = vmax.xlane.f32.xlu1 %v7765_v63 }
 0x32b   : > { %v3911_v49 = vpop.f32.mrf.mxu2 }
 0x32c   : > { %v7771_v30 = vsel %vm1185_vm1, %v3911_v49, -3.4028235e+38 }
 0x32d   : > { %8859 = vst [vmem:[#allocation49_spill] sm:$0xff] %v7771_v30 }
 0x32e   : > { %4096 = vmax.xlane.f32.xlu1 %v7771_v30 }
 0x333   : > { %v7774_v13 = vpop.f32.mrf.mxu2 }
 0x33b   : > { %v3916_v7 = vpop.f32.mrf.mxu2 }
 0x33c   : > { %v7778_v45 = vsel %vm1185_vm1, %v3916_v7, -3.4028235e+38 }
 0x33d   : > { %8860 = vst [vmem:[#allocation50_spill] sm:$0xff] %v7778_v45  ;;  %4100 = vmax.xlane.f32.xlu1 %v7778_v45 }
 0x358   : > { %v3210_v8 = vpop.xlane.xlu1 %3209 }
 0x359   : > { %v3241_v35 = vsub.f32 %v7655_v23, %v3210_v8 }
 0x35b   : > { %v3257_v6 = vmul.f32 1.442695, %v3241_v35 }
 0x35d   : > { %6481 = vpow2.f32 %v3257_v6 }
 0x360   : > { %v3212_v32 = vpop.xlane.xlu2 %3211  ;;  %v1552_v4 = vpop.xlane.xlu1 %1551 }
 0x361   : > { %v3242_v49 = vsub.f32 %v7664_v50, %v3212_v32  ;;  %v1575_v7 = vsub.f32 %v7668_v51, %v1552_v4 }
 0x363   : > { %v7783_v21 = vpop.eup %6481  ;;  %v3259_v29 = vmul.f32 1.442695, %v3242_v49  ;;  %v1599_v45 = vmul.f32 1.442695, %v1575_v7 }
 0x364   : > { %8861 = vst [vmem:[#allocation51_spill] sm:$0xff] %v7783_v21  ;;  %3289 = vadd.xlane.f32.xlu2 %v7783_v21 }
 0x365   : > { %6483 = vpow2.f32 %v3259_v29 }
 0x368   : > { %v1616_v30 = vpop.xlane.xlu2 %1615  ;;  %v7787_v31 = vpop.xlane.xlu0 %3213 }
 0x369   : > { %v1622_v28 = vpop.xlane.xlu1 %1621  ;;  %6485 = vrcp.f32 %v1616_v30 }
 0x36a   : > { %6487 = vpow2.f32 %v1599_v45 }
 0x36b   : > { %v7789_v23 = vpop.eup %6483 }
 0x36c   : > { %8862 = vst [vmem:[#allocation52_spill] sm:$0xff] %v7789_v23  ;;  %3291 = vadd.xlane.f32.xlu0 %v7789_v23 }
 0x36f   : > { %v6486_v6 = vpop.eup %6485 }
 0x370   : > { %v1554_v32 = vpop.xlane.xlu2 %1553  ;;  %v1618_v35 = vpop.xlane.xlu0 %1617  ;;  %v1663_v51 = vmul.f32 %v6486_v6, %v7673_v22 }
 0x371   : > { %v1576_v50 = vsub.f32 %v7690_v62, %v1554_v32  ;;  %6489 = vrcp.f32 %v1618_v35  ;;  %v1558_v29 = vpop.xlane.xlu1 %1557  ;;  %v7793_v8 = vpop.eup %6487 }
 0x372   : > { %v1679_v45 = vpack.c.bf16 %v1663_v51, %v1663_v51 }
 0x373   : > { %v1601_v4 = vmul.f32 1.442695, %v1576_v50 }
 0x374   : > { %1631 = vadd.xlane.f32.xlu0 %v7793_v8  ;;  %v1703_v62 = vunpack.c.l.b16 %v1679_v45 }
 0x375   : > { %6491 = vpow2.f32 %v1601_v4 }
 0x377   : > { %v6490_v49 = vpop.eup %6489 }
 0x378   : > { %v1620_v30 = vpop.xlane.xlu0 %1619  ;;  %v1664_v7 = vmul.f32 %v6490_v49, %v7686_v42  ;;  %v7801_v35 = vpop.xlane.xlu2 %3215 }
 0x379   : > { %6493 = vrcp.f32 %v1620_v30  ;;  %v1624_v21 = vpop.xlane.xlu1 %1623 }
 0x37a   : > { %v1680_v23 = vpack.c.bf16 %v1664_v7, %v1664_v7  ;;  %6495 = vrcp.f32 %v1622_v28 }
 0x37b   : > { %v7798_v2 = vpop.eup %6491 }
 0x37c   : > { %1633 = vadd.xlane.f32.xlu0 %v7798_v2  ;;  %v1704_v32 = vunpack.c.l.b16 %v1680_v23 }
 0x37e   : > { %v1711_v50 = vpack.c.b16 %v1704_v32, %v1703_v62 }
 0x37f   : > { %v6494_v22 = vpop.eup %6493 }
 0x380   : > { %1775 = vmatmul.bf16.vlgmr.msrb.gmra.mxu0 %v1711_v50  ;;  %v1556_v6 = vpop.xlane.xlu0 %1555  ;;  %v6496_v4 = vpop.eup %6495  ;;  %v1665_v49 = vmul.f32 %v6494_v22, %v7699_v41  ;;  %v6014_v22 = vld [vmem:[#allocation4 + $0x78] sm:$0xff] }
 0x381   : > { %2572 = vmatpush.bf16.msrb.mxu0 %v7451_v5  ;;  %v1577_v42 = vsub.f32 %v7717_v36, %v1556_v6  ;;  %v1560_v51 = vpop.xlane.xlu1 %1559  ;;  %v1666_v28 = vmul.f32 %v6496_v4, %v7679_v37  ;;  %v7808_v7 = vpop.xlane.xlu2 %3219 }
 0x382   : > { %v1681_v23 = vpack.c.bf16 %v1665_v49, %v1665_v49 }
 0x383   : > { %v1603_v30 = vmul.f32 1.442695, %v1577_v42  ;;  %v1682_v62 = vpack.c.bf16 %v1666_v28, %v1666_v28 }
 0x384   : > { %v1705_v36 = vunpack.c.l.b16 %v1681_v23 }
 0x385   : > { %2573 = vmatpush.bf16.msrb.mxu0 %v7486_v44  ;;  %6497 = vpow2.f32 %v1603_v30  ;;  %v1706_v37 = vunpack.c.l.b16 %v1682_v62  ;;  %v1578_v44 = vsub.f32 %v7696_v55, %v1558_v29  ;;  %v1579_v29 = vsub.f32 %v7723_v9, %v1560_v51  ;;  %v6046_v30 = vld [vmem:[#allocation4 + $0x30] sm:$0xff] }
 0x387   : > { %v1712_v6 = vpack.c.b16 %v1706_v37, %v1705_v36  ;;  %v1605_v42 = vmul.f32 1.442695, %v1578_v44  ;;  %v6047_v37 = vld [vmem:[#allocation4] sm:$0xff] }
 0x388   : > { %v3218_v45 = vpop.xlane.xlu0 %3217 }
 0x389   : > { %2574 = vmatpush.bf16.msrb.mxu0 %v7478_v16  ;;  %v3245_v5 = vsub.f32 %v7733_v17, %v3218_v45  ;;  %v1626_v32 = vpop.xlane.xlu1 %1625  ;;  %v7820_v17 = vpop.xlane.xlu2 %1561 }
 0x38a   : > { %6499 = vrcp.f32 %v1626_v32 }
 0x38b   : > { %6501 = vrcp.f32 %v1624_v21  ;;  %v3265_v41 = vmul.f32 1.442695, %v3245_v5  ;;  %v7812_v50 = vpop.eup %6497 }
 0x38c   : > { %1635 = vadd.xlane.f32.xlu2 %v7812_v50 }
 0x38d   : > { %2575 = vmatpush.bf16.msrb.mxu0 %v7447_v60  ;;  %6503 = vpow2.f32 %v3265_v41 }
 0x38e   : > { %6505 = vpow2.f32 %v1605_v42 }
 0x390   : > { %v6500_v16 = vpop.eup %6499  ;;  %v7817_v4 = vpop.xlane.xlu0 %3221  ;;  %2665 = vrot.lane.b32.xlu0 %v6014_v22, %s6991_s30  ;;  %1780 = vmatmul.bf16.gmra.mxu0 %v1712_v6 }
 0x391   : > { %v6502_v21 = vpop.eup %6501  ;;  %2576 = vmatpush.bf16.msrb.mxu0 %v7353_v48  ;;  %v1668_v60 = vmul.f32 %v6500_v16, %v7735_v25  ;;  %v1628_v23 = vpop.xlane.xlu1 %1627  ;;  %v1607_v25 = vmul.f32 1.442695, %v1579_v29 }
 0x392   : > { %v1667_v55 = vmul.f32 %v6502_v21, %v7705_v12  ;;  %v3224_v12 = vpop.xlane.xlu2 %3223 }
 0x393   : > { %v7824_v49 = vpop.eup %6503  ;;  %v1684_v28 = vpack.c.bf16 %v1668_v60, %v1668_v60  ;;  %v3248_v9 = vsub.f32 %v7743_v1, %v3224_v12 }
 0x394   : > { %3297 = vadd.xlane.f32.xlu1 %v7824_v49  ;;  %v1683_v48 = vpack.c.bf16 %v1667_v55, %v1667_v55  ;;  %v7855_v55 = vsel %vm1185_vm1, %v7754_v27, -3.4028235e+38 }
 0x395   : > { %2577 = vmatpush.bf16.msrb.mxu0 %v7373_v11  ;;  %v1708_v62 = vunpack.c.l.b16 %v1684_v28  ;;  %v7832_v11 = vpop.eup %6505 }
 0x396   : > { %v1707_v5 = vunpack.c.l.b16 %v1683_v48 }
 0x398   : > { %v1630_v45 = vpop.xlane.xlu0 %1629  ;;  %3433 = vrot.lane.b32.xlu0 %v6046_v30, %s6992_s11  ;;  %v1713_v51 = vpack.c.b16 %v1708_v62, %v1707_v5  ;;  %v6060_v30 = vld [vmem:[#allocation4 + $0x68] sm:$0xff] }
 0x399   : > { %2578 = vmatpush.bf16.msrb.mxu0 %v7365_v0  ;;  %6507 = vrcp.f32 %v1630_v45  ;;  %v3271_v0 = vmul.f32 1.442695, %v3248_v9 }
 0x39a   : > { %6509 = vrcp.f32 %v1628_v23  ;;  %v3247_v23 = vsub.f32 %v7747_v46, %v7817_v4 }
 0x39b   : > { %6511 = vpow2.f32 %v1607_v25 }
 0x39c   : > { %1637 = vadd.xlane.f32.xlu1 %v7832_v11  ;;  %6513 = vpow2.f32 %v3271_v0  ;;  %v3269_v48 = vmul.f32 1.442695, %v3247_v23 }
 0x39d   : > { %2579 = vmatpush.bf16.msrb.mxu0 %v7337_v19 }
 0x39f   : > { %v6508_v32 = vpop.eup %6507 }
 0x3a0   : > { %1785 = vmatmul.bf16.gmra.mxu0 %v1713_v51  ;;  %v6510_v36 = vpop.eup %6509  ;;  %v1670_v41 = vmul.f32 %v6508_v32, %v7756_v10  ;;  %v3244_v10 = vsub.f32 %v7703_v52, %v7801_v35  ;;  %v1566_v52 = vpop.xlane.xlu2 %1565 }
 0x3a1   : > { %v7838_v44 = vpop.eup %6511  ;;  %v1669_v22 = vmul.f32 %v6510_v36, %v7749_v33  ;;  %v3243_v33 = vsub.f32 %v7677_v61, %v7787_v31  ;;  %v1580_v61 = vsub.f32 %v7729_v57, %v7820_v17  ;;  %v1582_v35 = vsub.f32 %v7760_v58, %v1566_v52  ;;  %v6090_v52 = vld [vmem:[#allocation4 + $0x8] sm:$0xff] }
 0x3a2   : > { %v1686_v19 = vpack.c.bf16 %v1670_v41, %v1670_v41  ;;  %v7843_v16 = vpop.eup %6513  ;;  %v3263_v60 = vmul.f32 1.442695, %v3244_v10 }
 0x3a3   : > { %v1685_v6 = vpack.c.bf16 %v1669_v22, %v1669_v22  ;;  %v3261_v29 = vmul.f32 1.442695, %v3243_v33  ;;  %v1613_v57 = vmul.f32 1.442695, %v1582_v35  ;;  %v6059_v33 = vld [vmem:[#allocation4 + $0x10] sm:$0xff] }
 0x3a4   : > { %1639 = vadd.xlane.f32.xlu1 %v7838_v44  ;;  %3435 = vrot.lane.b32.xlu2 %v6047_v37, %s6992_s11  ;;  %v1710_v1 = vunpack.c.l.b16 %v1686_v19  ;;  %6515 = vpow2.f32 %v3263_v60  ;;  %v6093_v60 = vld [vmem:[#allocation4 + $0x20] sm:$0xff] }
 0x3a5   : > { %v1709_v21 = vunpack.c.l.b16 %v1685_v6  ;;  %6517 = vpow2.f32 %v3261_v29  ;;  %v6061_v6 = vld [vmem:[#allocation4 + $0x48] sm:$0xff] }
 0x3a7   : > { %v1714_v42 = vpack.c.b16 %v1710_v1, %v1709_v21 }
 0x3aa   : > { %v7863_v31 = vpop.eup %6515 }
 0x3ab   : > { %v7869_v27 = vpop.eup %6517 }
 0x3ac   : > { %3303 = vadd.xlane.f32.xlu1 %v7843_v16 }
 0x3b0   : > { %1790 = vmatmul.bf16.gmra.mxu0 %v1714_v42 }
 0x3c0   : > { %5364 = vmatmul.msk.bf16.vlgmr.msra.gmra.mxu0 %vm1326_vm0, %v7315_v56  ;;  %v3246_v56 = vsub.f32 %v7713_v43, %v7808_v7  ;;  %v1609_v43 = vmul.f32 1.442695, %v1580_v61  ;;  %v1564_v7 = vpop.xlane.xlu1 %1563 }
 0x3c1   : > { %3457 = vmatpush.bf16.msra.mxu0 %v7534_v18 }
 0x3c2   : > { %4094 = vmax.xlane.f32.xlu0 %v7855_v55  ;;  %v3267_v18 = vmul.f32 1.442695, %v3246_v56 }
 0x3c4   : > { %6519 = vpow2.f32 %v3267_v18 }
 0x3c5   : > { %3458 = vmatpush.bf16.msra.mxu0 %v7433_v40  ;;  %3562 = vrot.lane.b32.xlu1 %v6060_v30, %s6992_s11  ;;  %v3919_v40 = vpop.f32.mrf.mxu2  ;;  %6521 = vpow2.f32 %v1609_v43 }
 0x3c6   : > { %6523 = vpow2.f32 %v1613_v57  ;;  %v7907_v45 = vsel %vm1185_vm1, %v3919_v40, -3.4028235e+38  ;;  %v6092_v40 = vld [vmem:[#allocation4 + $0x38] sm:$0xff] }
 0x3c7   : > { %v6089_v57 = vld [vmem:[#allocation4 + $0x58] sm:$0xff] }
 0x3c8   : > { %v7927_v0 = vpop.xlane.xlu1 %4096 }
 0x3c9   : > { %3459 = vmatpush.bf16.msra.mxu0 %v7453_v14  ;;  %v7879_v14 = vsel %vm1185_vm1, %v7774_v13, -3.4028235e+38 }
 0x3ca   : > { %3295 = vadd.xlane.f32.xlu0 %v7863_v31  ;;  %v7884_v17 = vpop.eup %6519 }
 0x3cb   : > { %v7888_v28 = vpop.eup %6521 }
 0x3cd   : > { %3460 = vmatpush.bf16.msra.mxu0 %v7455_v15  ;;  %3293 = vadd.xlane.f32.xlu2 %v7869_v27  ;;  %v1581_v15 = vsub.f32 %v7765_v63, %v1564_v7  ;;  %v3921_v58 = vpop.f32.mrf.mxu2 }
 0x3d0   : > { %5365 = vmatmul.msk.bf16.gmra.mxu0 %vm1326_vm0, %v7309_v47  ;;  %v1611_v47 = vmul.f32 1.442695, %v1581_v15  ;;  %v7934_v42 = vpop.xlane.xlu1 %4100 }
 0x3d1   : > { %3461 = vmatpush.bf16.msra.mxu0 %v7543_v54  ;;  %v7891_v54 = vpop.eup %6523 }
 0x3d2   : > { %4098 = vmax.xlane.f32.xlu0 %v7879_v14  ;;  %6525 = vpow2.f32 %v1611_v47  ;;  %v6091_v47 = vld [vmem:[#allocation4 + $0x28] sm:$0xff] }
 0x3d5   : > { %3462 = vmatpush.bf16.msra.mxu0 %v7555_v34  ;;  %3299 = vadd.xlane.f32.xlu2 %v7884_v17  ;;  %v7900_v63 = vpop.f32.mrf.mxu2 }
 0x3d7   : > { %v7929_v41 = vpop.xlane.xlu2 %3289 }
 0x3d8   : > { %v7898_v34 = vpop.eup %6525 }
 0x3da   : > { %1641 = vadd.xlane.f32.xlu0 %v7888_v28 }
 0x3dd   : > { %1645 = vadd.xlane.f32.xlu2 %v7891_v54  ;;  %v3926_v62 = vpop.f32.mrf.mxu2 }
 0x3de   : > { %v7917_v46 = vsel %vm1185_vm1, %v3926_v62, -3.4028235e+38 }
 0x3df   : > { %v7894_v13 = vpop.xlane.xlu0 %3291 }
 0x3e0   : > { %5366 = vmatmul.msk.bf16.gmra.mxu0 %vm1326_vm0, %v7381_v24  ;;  %v7912_v24 = vsel %vm1185_vm1, %v3921_v58, -3.4028235e+38 }
 0x3e2   : > { %1643 = vadd.xlane.f32.xlu0 %v7898_v34 }
 0x3e5   : > { %4102 = vmax.xlane.f32.xlu2 %v7907_v45 }
 0x3e7   : > { %v1632_v25 = vpop.xlane.xlu0 %1631 }
 0x3e8   : > { %6527 = vrcp.f32 %v1632_v25 }
 0x3e9   : > { %6529 = vpow2.f32 %v3269_v48 }
 0x3ea   : > { %4104 = vmax.xlane.f32.xlu0 %v7912_v24 }
 0x3ee   : > { %v6528_v12 = vpop.eup %6527 }
 0x3ef   : > { %v1634_v4 = vpop.xlane.xlu0 %1633  ;;  %4108 = vmax.xlane.f32.xlu1 %v7917_v46  ;;  %v7922_v5 = vpop.eup %6529  ;;  %v1671_v9 = vmul.f32 %v6528_v12, %v7793_v8  ;;  %v3162_v8 = vsel %vm1326_vm0, %v7649_v26, 0  ;;  %v3159_v26 = vsel %vm1326_vm0, %v7606_v53, 0  ;;  %v3156_v53 = vsel %vm1326_vm0, %v7651_v20, 0 }
 0x3f0   : > { %6531 = vrcp.f32 %v1634_v4  ;;  %5367 = vmatmul.msk.bf16.gmra.mxu0 %vm1326_vm0, %v7389_v38  ;;  %v3153_v20 = vsel %vm1326_vm0, %v7576_v39, 0  ;;  %v3150_v39 = vsel %vm1326_vm0, %v7510_v3, 0  ;;  %v8864_v3 = vld [vmem:[#allocation35_spill] sm:$0xff] }
 0x3f1   : > { %v1687_v32 = vpack.c.bf16 %v1671_v9, %v1671_v9  ;;  %v6088_v9 = vld [vmem:[#allocation4 + $0x40] sm:$0xff] }
 0x3f2   : > { %3301 = vadd.xlane.f32.xlu0 %v7922_v5 }
 0x3f3   : > { %v1804_v22 = vunpack.c.l.b16 %v1687_v32 }
 0x3f6   : > { %v6532_v51 = vpop.eup %6531 }
 0x3f7   : > { %v1672_v36 = vmul.f32 %v6532_v51, %v7798_v2  ;;  %v6058_v51 = vld [vmem:[#allocation4 + $0x60] sm:$0xff] }
 0x3f9   : > { %v1688_v37 = vpack.c.bf16 %v1672_v36, %v1672_v36 }
 0x3fb   : > { %v1805_v19 = vunpack.c.l.b16 %v1688_v37 }
 0x3fd   : > { %v1812_v1 = vpack.c.b16 %v1805_v19, %v1804_v22  ;;  %v1776_v38 = vpop.f32.mrf.mxu0  ;;  %3564 = vrot.lane.b32.xlu2 %v6061_v6, %s6992_s11 }
 0x3fe   : > { %v1897_v21 = vpack.c.bf16 %v1776_v38, %v1776_v38 }
 0x3ff   : > { %1876 = vmatmul.bf16.vlgmr.msrb.gmra.mxu3 %v1812_v1  ;;  %v1636_v2 = vpop.xlane.xlu2 %1635  ;;  %v8863_v1 = vld [vmem:[#allocation43_spill] sm:$0xff] }
 0x400   : > { %1914 = vst.msk [vmem:[#allocation5] sm:$0xf] %vm1913_vm2, %v1897_v21  ;;  %3164 = vmatpush.bf16.xpose.msrb.mxu3 %v3162_v8  ;;  %6533 = vrcp.f32 %v1636_v2  ;;  %v3147_v38 = vsel %vm1326_vm0, %v8863_v1, 0  ;;  %v6054_v21 = vld [vmem:[#allocation4 + $0x78] sm:$0xff] }
 0x402   : > { %v2666_v10 = vpop.permute.xlu0 %2665 }
 0x403   : > { %2696 = vmatpush.bf16.msrb.mxu1 %v2666_v10  ;;  %v3144_v10 = vsel %vm1326_vm0, %v8864_v3, 0 }
 0x405   : > { %v1778_v29 = vpop.f32.mrf.mxu0  ;;  %3560 = vrot.lane.b32.xlu2 %v6059_v33, %s6992_s11  ;;  %v6086_v33 = vld [vmem:[#allocation4 + $0x30] sm:$0xff] }
 0x406   : > { %v1898_v30 = vpack.c.bf16 %v1778_v29, %v1778_v29  ;;  %4332 = vrot.lane.b32.xlu0 %v6093_v60, %s6993_s14  ;;  %v6534_v15 = vpop.eup %6533 }
 0x407   : > { %v7942_v56 = vpop.xlane.xlu1 %3297  ;;  %v3436_v18 = vpop.permute.xlu2 %3435  ;;  %v1673_v58 = vmul.f32 %v6534_v15, %v7812_v50 }
 0x408   : > { %1915 = vst.msk [vmem:[#allocation5 + $0x4] sm:$0xf] %vm1913_vm2, %v1898_v30  ;;  %3165 = vmatpush.bf16.xpose.msrb.mxu3 %v3159_v26  ;;  %3463 = vmatpush.bf16.msra.mxu0 %v3436_v18  ;;  %v8865_v18 = vld [vmem:[#allocation40_spill] sm:$0xff] }
 0x409   : > { %v1689_v4 = vpack.c.bf16 %v1673_v58, %v1673_v58 }
 0x40a   : > { %v3434_v61 = vpop.permute.xlu0 %3433 }
 0x40b   : > { %v1806_v50 = vunpack.c.l.b16 %v1689_v4 }
 0x40c   : > { %3464 = vmatpush.bf16.msra.mxu0 %v3434_v61  ;;  %v3141_v61 = vsel %vm1326_vm0, %v8865_v18, 0 }
 0x40d   : > { %v1781_v43 = vpop.f32.mrf.mxu0  ;;  %4326 = vrot.lane.b32.xlu2 %v6090_v52, %s6993_s14 }
 0x40e   : > { %v1899_v35 = vpack.c.bf16 %v1781_v43, %v1781_v43  ;;  %4330 = vrot.lane.b32.xlu0 %v6092_v40, %s6993_s14 }
 0x40f   : > { %v1638_v7 = vpop.xlane.xlu1 %1637 }
 0x410   : > { %1916 = vst.msk [vmem:[#allocation5 + $0x8] sm:$0xf] %vm1913_vm2, %v1899_v35  ;;  %3166 = vmatpush.bf16.xpose.msrb.mxu3 %v3156_v53  ;;  %6535 = vrcp.f32 %v1638_v7  ;;  %v7986_v7 = vsel %vm1185_vm1, %v7900_v63, -3.4028235e+38 }
 0x415   : > { %v1783_v23 = vpop.f32.mrf.mxu0  ;;  %4324 = vrot.lane.b32.xlu2 %v6089_v57, %s6993_s14 }
 0x416   : > { %v1900_v48 = vpack.c.bf16 %v1783_v23, %v1783_v23  ;;  %4328 = vrot.lane.b32.xlu0 %v6091_v47, %s6993_s14  ;;  %v6536_v25 = vpop.eup %6535 }
 0x417   : > { %v1674_v62 = vmul.f32 %v6536_v25, %v7832_v11  ;;  %v6055_v11 = vld [vmem:[#allocation4 + $0x50] sm:$0xff] }
 0x418   : > { %1917 = vst.msk [vmem:[#allocation5 + $0xc] sm:$0xf] %vm1913_vm2, %v1900_v48  ;;  %3167 = vmatpush.bf16.xpose.msrb.mxu3 %v3153_v20 }
 0x419   : > { %v1690_v12 = vpack.c.bf16 %v1674_v62, %v1674_v62 }
 0x41b   : > { %v1807_v32 = vunpack.c.l.b16 %v1690_v12 }
 0x41d   : > { %v1786_v36 = vpop.f32.mrf.mxu0  ;;  %4322 = vrot.lane.b32.xlu2 %v6088_v9, %s6993_s14  ;;  %v1813_v22 = vpack.c.b16 %v1807_v32, %v1806_v50  ;;  %v6057_v9 = vld [vmem:[#allocation4 + $0x70] sm:$0xff] }
 0x41e   : > { %v1901_v37 = vpack.c.bf16 %v1786_v36, %v1786_v36  ;;  %3558 = vrot.lane.b32.xlu0 %v6058_v51, %s6992_s11  ;;  %v6056_v36 = vld [vmem:[#allocation4 + $0x18] sm:$0xff] }
 0x41f   : > { %1881 = vmatmul.bf16.gmra.mxu3 %v1813_v22 }
 0x420   : > { %1918 = vst.msk [vmem:[#allocation5 + $0x10] sm:$0xf] %vm1913_vm2, %v1901_v37  ;;  %3168 = vmatpush.bf16.xpose.msrb.mxu3 %v3150_v39 }
 0x425   : > { %v1788_v19 = vpop.f32.mrf.mxu0  ;;  %3552 = vrot.lane.b32.xlu2 %v6055_v11, %s6992_s11 }
 0x426   : > { %v1902_v6 = vpack.c.bf16 %v1788_v19, %v1788_v19 }
 0x428   : > { %1919 = vst.msk [vmem:[#allocation5 + $0x14] sm:$0xf] %vm1913_vm2, %v1902_v6  ;;  %3169 = vmatpush.bf16.xpose.msrb.mxu3 %v3147_v38  ;;  %v6087_v6 = vld [vmem:[#allocation4] sm:$0xff] }
 0x42d   : > { %v1791_v8 = vpop.f32.mrf.mxu0  ;;  %3550 = vrot.lane.b32.xlu2 %v6054_v21, %s6992_s11 }
 0x42e   : > { %v1903_v2 = vpack.c.bf16 %v1791_v8, %v1791_v8 }
 0x430   : > { %1920 = vst.msk [vmem:[#allocation5 + $0x18] sm:$0xf] %vm1913_vm2, %v1903_v2  ;;  %3170 = vmatpush.bf16.xpose.msrb.mxu3 %v3144_v10 }
 0x435   : > { %v4095_v60 = vpop.xlane.xlu0 %4094  ;;  %v1793_v29 = vpop.f32.mrf.mxu0  ;;  %4318 = vrot.lane.b32.xlu2 %v6086_v33, %s6993_s14 }
 0x436   : > { %v4126_v30 = vsub.f32 %v7855_v55, %v4095_v60  ;;  %v1904_v26 = vpack.c.bf16 %v1793_v29, %v1793_v29  ;;  %v1640_v55 = vpop.xlane.xlu1 %1639 }
 0x438   : > { %v4142_v52 = vmul.f32 1.442695, %v4126_v30  ;;  %1921 = vst.msk [vmem:[#allocation5 + $0x1c] sm:$0xf] %vm1913_vm2, %v1904_v26  ;;  %3171 = vmatpush.bf16.xpose.msrb.mxu3 %v3141_v61  ;;  %v6101_v26 = vld [vmem:[#allocation4 + $0x48] sm:$0xff] }
 0x43a   : > { %6537 = vpow2.f32 %v4142_v52 }
 0x43b   : > { %6539 = vrcp.f32 %v1640_v55  ;;  %v8867_v55 = vld [vmem:[#allocation48_spill] sm:$0xff] }
 0x43d   : > { %v7974_v40 = vpop.xlane.xlu0 %3295  ;;  %v7988_v15 = vpop.f32.mrf.mxu0 }
 0x440   : > { %v7976_v43 = vpop.eup %6537  ;;  %v7978_v35 = vpop.xlane.xlu2 %3293 }
 0x441   : > { %4174 = vadd.xlane.f32.xlu1 %v7976_v43  ;;  %v6540_v58 = vpop.eup %6539 }
 0x442   : > { %v1675_v25 = vmul.f32 %v6540_v58, %v7838_v44  ;;  %v7999_v44 = vpop.xlane.xlu1 %3303 }
 0x444   : > { %v1691_v4 = vpack.c.bf16 %v1675_v25, %v1675_v25 }
 0x445   : > { %v7981_v53 = vpop.xlane.xlu0 %4098  ;;  %v7993_v23 = vpop.f32.mrf.mxu0 }
 0x446   : > { %v1808_v50 = vunpack.c.l.b16 %v1691_v4  ;;  %v4128_v58 = vsub.f32 %v7879_v14, %v7981_v53  ;;  %v8870_v53 = vld [vmem:[#allocation47_spill] sm:$0xff] }
 0x448   : > { %4106 = vmax.xlane.f32.xlu0 %v7986_v7  ;;  %v7991_v57 = vpop.xlane.xlu2 %3299 }
 0x44a   : > { %v3563_v8 = vpop.permute.xlu1 %3562 }
 0x44d   : > { %v1642_v47 = vpop.xlane.xlu0 %1641  ;;  %v2144_v37 = vpop.f32.mrf.mxu0 }
 0x44e   : > { %6541 = vrcp.f32 %v1642_v47  ;;  %v8003_v11 = vsel %vm1185_vm1, %v2144_v37, -3.4028235e+38  ;;  %v4047_v47 = vsel %vm1326_vm0, %v8867_v55, 0 }
 0x450   : > { %v1646_v48 = vpop.xlane.xlu2 %1645 }
 0x454   : > { %v6542_v20 = vpop.eup %6541 }
 0x455   : > { %v1644_v62 = vpop.xlane.xlu0 %1643  ;;  %v1676_v63 = vmul.f32 %v6542_v20, %v7888_v28 }
 0x456   : > { %6543 = vrcp.f32 %v1644_v62 }
 0x457   : > { %v1692_v12 = vpack.c.bf16 %v1676_v63, %v1676_v63  ;;  %6545 = vrcp.f32 %v1646_v48  ;;  %v8868_v48 = vld [vmem:[#allocation28_spill] sm:$0xff]  ;;  %v4146_v63 = vmul.f32 1.442695, %v4128_v58 }
 0x458   : > { %v4103_v51 = vpop.xlane.xlu2 %4102 }
 0x459   : > { %v1809_v32 = vunpack.c.l.b16 %v1692_v12  ;;  %v4130_v14 = vsub.f32 %v7907_v45, %v4103_v51 }
 0x45a   : > { %3556 = vrot.lane.b32.xlu1 %v6057_v9, %s6992_s11 }
 0x45b   : > { %v1814_v22 = vpack.c.b16 %v1809_v32, %v1808_v50  ;;  %v4044_v32 = vsel %vm1326_vm0, %v8870_v53, 0 }
 0x45c   : > { %v6544_v39 = vpop.eup %6543  ;;  %3554 = vrot.lane.b32.xlu0 %v6056_v36, %s6992_s11 }
 0x45d   : > { %1886 = vmatmul.bf16.gmra.mxu3 %v1814_v22  ;;  %v6546_v28 = vpop.eup %6545  ;;  %v1677_v19 = vmul.f32 %v6544_v39, %v7898_v34  ;;  %v4105_v3 = vpop.xlane.xlu0 %4104  ;;  %v4150_v22 = vmul.f32 1.442695, %v4130_v14 }
 0x45e   : > { %2328 = vmax.xlane.f32.xlu2 %v8003_v11  ;;  %v1678_v38 = vmul.f32 %v6546_v28, %v7891_v54  ;;  %v8011_v34 = vpop.f32.mrf.mxu0  ;;  %v8866_v54 = vld [vmem:[#allocation49_spill] sm:$0xff] }
 0x45f   : > { %v1693_v21 = vpack.c.bf16 %v1677_v19, %v1677_v19  ;;  %v4127_v18 = vsub.f32 %v8866_v54, %v7927_v0  ;;  %v8869_v0 = vld [vmem:[#allocation50_spill] sm:$0xff] }
 0x460   : > { %v3565_v1 = vpop.permute.xlu2 %3564  ;;  %v1694_v2 = vpack.c.bf16 %v1678_v38, %v1678_v38  ;;  %v4129_v20 = vsub.f32 %v8869_v0, %v7934_v42  ;;  %v4131_v42 = vsub.f32 %v7912_v24, %v4105_v3  ;;  %v8872_v24 = vld [vmem:[#allocation46_spill] sm:$0xff] }
 0x461   : > { %3574 = vmatpush.bf16.msra.mxu1 %v3565_v1  ;;  %v1810_v10 = vunpack.c.l.b16 %v1693_v21  ;;  %v4144_v52 = vmul.f32 1.442695, %v4127_v18  ;;  %v8871_v1 = vld [vmem:[#allocation32_spill] sm:$0xff]  ;;  %v4041_v38 = vsel %vm1326_vm0, %v8872_v24, 0 }
 0x462   : > { %4320 = vrot.lane.b32.xlu1 %v6087_v6, %s6993_s14  ;;  %v1811_v60 = vunpack.c.l.b16 %v1694_v2  ;;  %v4148_v12 = vmul.f32 1.442695, %v4129_v20  ;;  %v4152_v45 = vmul.f32 1.442695, %v4131_v42  ;;  %v4109_v19 = vpop.xlane.xlu1 %4108  ;;  %v8875_v18 = vld [vmem:[#allocation44_spill] sm:$0xff] }
 0x463   : > { %6547 = vpow2.f32 %v4144_v52  ;;  %v4133_v21 = vsub.f32 %v7917_v46, %v4109_v19  ;;  %v8874_v46 = vld [vmem:[#allocation36_spill] sm:$0xff]  ;;  %v4035_v52 = vsel %vm1326_vm0, %v8875_v18, 0  ;;  %v8079_v20 = vsel %vm1185_vm1, %v7993_v23, -3.4028235e+38  ;;  %v8879_v23 = vld [vmem:[#allocation33_spill] sm:$0xff] }
 0x464   : > { %v1815_v29 = vpack.c.b16 %v1811_v60, %v1810_v10  ;;  %6549 = vpow2.f32 %v4146_v63  ;;  %v8873_v60 = vld [vmem:[#allocation45_spill] sm:$0xff]  ;;  %v6099_v42 = vld [vmem:[#allocation4 + $0x10] sm:$0xff] }
 0x465   : > { %3575 = vmatpush.bf16.msra.mxu1 %v3563_v8  ;;  %v8009_v30 = vpop.xlane.xlu0 %3301  ;;  %6551 = vpow2.f32 %v4148_v12  ;;  %v4156_v10 = vmul.f32 1.442695, %v4133_v21  ;;  %v8877_v12 = vld [vmem:[#allocation41_spill] sm:$0xff] }
 0x466   : > { %v8024_v25 = vpop.f32.mrf.mxu0  ;;  %6553 = vpow2.f32 %v4150_v22 }
 0x467   : > { %6555 = vpow2.f32 %v4152_v45 }
 0x468   : > { %v3561_v33 = vpop.permute.xlu2 %3560  ;;  %6557 = vpow2.f32 %v4156_v10 }
 0x469   : > { %3576 = vmatpush.bf16.msra.mxu1 %v3561_v33  ;;  %v8030_v50 = vpop.eup %6547 }
 0x46a   : > { %v8042_v28 = vpop.eup %6549 }
 0x46b   : > { %v8045_v6 = vpop.eup %6551 }
 0x46c   : > { %v8054_v3 = vpop.eup %6553 }
 0x46d   : > { %1891 = vmatmul.bf16.gmra.mxu3 %v1815_v29  ;;  %v8057_v33 = vpop.eup %6555  ;;  %v4038_v29 = vsel %vm1326_vm0, %v8873_v60, 0 }
 0x46e   : > { %v8038_v36 = vpop.f32.mrf.mxu0  ;;  %v8062_v54 = vpop.eup %6557 }
 0x470   : > { %v8088_v53 = vpop.permute.xlu2 %4326 }
 0x476   : > { %4449 = vrot.lane.b32.xlu2 %v6101_v26, %s6993_s14  ;;  %v2154_v2 = vpop.f32.mrf.mxu0 }
 0x478   : > { %v8016_v61 = vpop.permute.xlu0 %4332  ;;  %v8092_v22 = vpop.permute.xlu2 %4324 }
 0x47d   : > { %5416 = vmatmul.msk.bf16.vlgmr.msra.gmra.mxu3 %vm1326_vm0, %v8868_v48  ;;  %v8876_v48 = vld [vmem:[#allocation39_spill] sm:$0xff] }
 0x47e   : > { %4049 = vmatpush.bf16.xpose.msra.mxu3 %v4047_v47  ;;  %v2156_v26 = vpop.f32.mrf.mxu0  ;;  %v4032_v0 = vsel %vm1326_vm0, %v8876_v48, 0  ;;  %v8883_v48 = vld [vmem:[#allocation42_spill] sm:$0xff] }
 0x47f   : > { %v8071_v55 = vsel %vm1185_vm1, %v2156_v26, -3.4028235e+38  ;;  %v8882_v26 = vld [vmem:[#allocation27_spill] sm:$0xff] }
 0x480   : > { %v8028_v62 = vpop.permute.xlu0 %4330 }
 0x482   : > { %v1877_v4 = vpop.f32.mrf.mxu3 }
 0x483   : > { %v1905_v9 = vpack.c.bf16 %v1877_v4, %v1877_v4 }
 0x485   : > { %1922 = vst.msk [vmem:[#allocation5 + $0x20] sm:$0xf] %vm1913_vm2, %v1905_v9  ;;  %v8878_v9 = vld [vmem:[#allocation37_spill] sm:$0xff] }
 0x486   : > { %4050 = vmatpush.bf16.xpose.msra.mxu3 %v4044_v32  ;;  %4176 = vadd.xlane.f32.xlu0 %v8030_v50  ;;  %v4029_v14 = vsel %vm1326_vm0, %v8878_v9, 0  ;;  %v4026_v32 = vsel %vm1326_vm0, %v8879_v23, 0 }
 0x488   : > { %v8040_v37 = vpop.permute.xlu0 %4328 }
 0x48a   : > { %v1879_v39 = vpop.f32.mrf.mxu3 }
 0x48b   : > { %v1906_v51 = vpack.c.bf16 %v1879_v39, %v1879_v39 }
 0x48c   : > { %4178 = vadd.xlane.f32.xlu1 %v8042_v28 }
 0x48d   : > { %1923 = vst.msk [vmem:[#allocation5 + $0x24] sm:$0xf] %vm1913_vm2, %v1906_v51  ;;  %5417 = vmatmul.msk.bf16.gmra.mxu3 %vm1326_vm0, %v8871_v1  ;;  %v8880_v51 = vld [vmem:[#allocation30_spill] sm:$0xff]  ;;  %v8098_v1 = vpop.permute.xlu2 %4322 }
 0x48e   : > { %4051 = vmatpush.bf16.xpose.msra.mxu3 %v4041_v38  ;;  %4180 = vadd.xlane.f32.xlu0 %v8045_v6 }
 0x490   : > { %v3559_v8 = vpop.permute.xlu0 %3558 }
 0x491   : > { %3577 = vmatpush.bf16.msra.mxu1 %v3559_v8  ;;  %v8881_v8 = vld [vmem:[#allocation29_spill] sm:$0xff] }
 0x494   : > { %4182 = vadd.xlane.f32.xlu1 %v8054_v3 }
 0x495   : > { %v3553_v10 = vpop.permute.xlu2 %3552 }
 0x496   : > { %4052 = vmatpush.bf16.xpose.msra.mxu3 %v4038_v29  ;;  %4184 = vadd.xlane.f32.xlu0 %v8057_v33 }
 0x49d   : > { %5418 = vmatmul.msk.bf16.gmra.mxu3 %vm1326_vm0, %v8874_v46  ;;  %v3551_v29 = vpop.permute.xlu2 %3550 }
 0x49e   : > { %4053 = vmatpush.bf16.xpose.msra.mxu3 %v4035_v52  ;;  %4188 = vadd.xlane.f32.xlu0 %v8062_v54  ;;  %v8115_v52 = vsel %vm1185_vm1, %v2154_v2, -3.4028235e+38 }
 0x49f   : > { %2338 = vmax.xlane.f32.xlu2 %v8071_v55 }
 0x4a2   : > { %v1882_v47 = vpop.f32.mrf.mxu3 }
 0x4a3   : > { %v1907_v58 = vpack.c.bf16 %v1882_v47, %v1882_v47 }
 0x4a5   : > { %1924 = vst.msk [vmem:[#allocation5 + $0x28] sm:$0xf] %vm1913_vm2, %v1907_v58 }
 0x4a6   : > { %4054 = vmatpush.bf16.xpose.msra.mxu3 %v4032_v0  ;;  %2326 = vmax.xlane.f32.xlu0 %v8079_v20 }
 0x4aa   : > { %v1884_v63 = vpop.f32.mrf.mxu3 }
 0x4ab   : > { %v1908_v4 = vpack.c.bf16 %v1884_v63, %v1884_v63 }
 0x4ad   : > { %5419 = vmatmul.msk.bf16.gmra.mxu3 %vm1326_vm0, %v8877_v12  ;;  %1925 = vst.msk [vmem:[#allocation5 + $0x2c] sm:$0xf] %vm1913_vm2, %v1908_v4 }
 0x4ae   : > { %4055 = vmatpush.bf16.xpose.msra.mxu3 %v4029_v14 }
 0x4b4   : > { %v4175_v24 = vpop.xlane.xlu1 %4174 }
 0x4b6   : > { %4056 = vmatpush.bf16.xpose.msra.mxu3 %v4026_v32  ;;  %v8884_v32 = vld [vmem:[#allocation26_spill] sm:$0xff] }
 0x4ba   : > { %4445 = vrot.lane.b32.xlu0 %v6099_v42, %s6993_s14 }
 0x4bb   : > { %v4107_v39 = vpop.xlane.xlu0 %4106 }
 0x4bc   : > { %v4132_v45 = vsub.f32 %v7986_v7, %v4107_v39  ;;  %v8108_v7 = vsel %vm1185_vm1, %v7988_v15, -3.4028235e+38  ;;  %v6100_v15 = vld [vmem:[#allocation4 + $0x68] sm:$0xff] }
 0x4bd   : > { %5584 = vmatmul.msk.bf16.vlgmr.msrb.gmra.mxu3 %vm1326_vm0, %v8880_v51 }
 0x4be   : > { %v4154_v19 = vmul.f32 1.442695, %v4132_v45 }
 0x4c0   : > { %6559 = vpow2.f32 %v4154_v19 }
 0x4c1   : > { %6561 = vrcp.f32 %v4175_v24 }
 0x4c6   : > { %v8100_v38 = vpop.eup %6559 }
 0x4c7   : > { %4186 = vadd.xlane.f32.xlu1 %v8100_v38  ;;  %v6562_v14 = vpop.eup %6561 }
 0x4c8   : > { %v4222_v23 = vmul.f32 %v6562_v14, %v7976_v43 }
 0x4ca   : > { %v4238_v51 = vpack.c.bf16 %v4222_v23, %v4222_v23 }
 0x4cc   : > { %v3557_v21 = vpop.permute.xlu1 %3556  ;;  %v8136_v43 = vunpack.c.l.b16 %v4238_v51  ;;  %v8169_v51 = vsel %vm1185_vm1, %v8024_v25, -3.4028235e+38 }
 0x4cd   : > { %5585 = vmatmul.msk.bf16.gmra.mxu3 %vm1326_vm0, %v8881_v8  ;;  %3578 = vmatpush.bf16.msra.mxu1 %v3557_v21 }
 0x4ce   : > { %v3555_v60 = vpop.permute.xlu0 %3554  ;;  %8885 = vst [vmem:[#allocation43_spill] sm:$0xff] %v8136_v43 }
 0x4cf   : > { %2324 = vmax.xlane.f32.xlu1 %v8108_v7 }
 0x4d1   : > { %3579 = vmatpush.bf16.msra.mxu1 %v3555_v60 }
 0x4d4   : > { %v8124_v2 = vpop.permute.xlu1 %4320 }
 0x4d5   : > { %3580 = vmatpush.bf16.msra.mxu1 %v3553_v10 }
 0x4d9   : > { %3581 = vmatpush.bf16.msra.mxu1 %v3551_v29 }
 0x4dd   : > { %5586 = vmatmul.msk.bf16.gmra.mxu3 %vm1326_vm0, %v8882_v26 }
 0x4e0   : > { %v1887_v46 = vpop.f32.mrf.mxu3 }
 0x4e1   : > { %v1909_v18 = vpack.c.bf16 %v1887_v46, %v1887_v46 }
 0x4e3   : > { %1926 = vst.msk [vmem:[#allocation5 + $0x30] sm:$0xf] %vm1913_vm2, %v1909_v18 }
 0x4e4   : > { %2336 = vmax.xlane.f32.xlu0 %v8115_v52 }
 0x4e8   : > { %v1889_v47 = vpop.f32.mrf.mxu3  ;;  %4447 = vrot.lane.b32.xlu1 %v6100_v15, %s6993_s14 }
 0x4e9   : > { %v1910_v58 = vpack.c.bf16 %v1889_v47, %v1889_v47 }
 0x4eb   : > { %1927 = vst.msk [vmem:[#allocation5 + $0x34] sm:$0xf] %vm1913_vm2, %v1910_v58 }
 0x4ed   : > { %5587 = vmatmul.msk.bf16.gmra.mxu3 %vm1326_vm0, %v8883_v48  ;;  %v8886_v48 = vld [vmem:[#allocation31_spill] sm:$0xff] }
 0x4f0   : > { %v1892_v0 = vpop.f32.mrf.mxu3 }
 0x4f1   : > { %v1911_v63 = vpack.c.bf16 %v1892_v0, %v1892_v0 }
 0x4f3   : > { %1928 = vst.msk [vmem:[#allocation5 + $0x38] sm:$0xf] %vm1913_vm2, %v1911_v63 }
 0x4f8   : > { %v1894_v4 = vpop.f32.mrf.mxu3 }
 0x4f9   : > { %v1912_v12 = vpack.c.bf16 %v1894_v4, %v1894_v4  ;;  %v4177_v9 = vpop.xlane.xlu0 %4176 }
 0x4fa   : > { %6563 = vrcp.f32 %v4177_v9 }
 0x4fb   : > { %1929 = vst.msk [vmem:[#allocation5 + $0x3c] sm:$0xf] %vm1913_vm2, %v1912_v12 }
 0x4fd   : > { %5752 = vmatmul.msk.bf16.vlgmr.msra.gmra.mxu3 %vm1326_vm0, %v8884_v32 }
 0x4ff   : > { %v4179_v42 = vpop.xlane.xlu1 %4178 }
 0x500   : > { %v6564_v39 = vpop.eup %6563  ;;  %6565 = vrcp.f32 %v4179_v42  ;;  %v2288_v45 = vpop.f32.mrf.mxu3 }
 0x501   : > { %v4223_v19 = vmul.f32 %v6564_v39, %v8030_v50  ;;  %v8133_v24 = vsel %vm1185_vm1, %v2288_v45, -3.4028235e+38  ;;  %v4181_v21 = vpop.xlane.xlu0 %4180 }
 0x502   : > { %6567 = vrcp.f32 %v4181_v21  ;;  %2340 = vmax.xlane.f32.xlu2 %v8133_v24 }
 0x503   : > { %v4239_v8 = vpack.c.bf16 %v4223_v19, %v4223_v19 }
 0x505   : > { %v8138_v10 = vunpack.c.l.b16 %v4239_v8  ;;  %v8891_v8 = vld [vmem:[#allocation34_spill] sm:$0xff] }
 0x506   : > { %v6566_v60 = vpop.eup %6565 }
 0x507   : > { %v4183_v26 = vpop.xlane.xlu1 %4182  ;;  %v4224_v50 = vmul.f32 %v6566_v60, %v8042_v28 }
 0x508   : > { %v6568_v46 = vpop.eup %6567  ;;  %6569 = vrcp.f32 %v4183_v26  ;;  %v2290_v60 = vpop.f32.mrf.mxu3  ;;  %v8180_v26 = vsel %vm1185_vm1, %v8038_v36, -3.4028235e+38 }
 0x509   : > { %v4185_v18 = vpop.xlane.xlu0 %4184  ;;  %v4225_v15 = vmul.f32 %v6568_v46, %v8045_v6  ;;  %v4240_v47 = vpack.c.bf16 %v4224_v50, %v4224_v50  ;;  %v8156_v6 = vsel %vm1185_vm1, %v8011_v34, -3.4028235e+38 }
 0x50a   : > { %6571 = vrcp.f32 %v4185_v18 }
 0x50b   : > { %v4241_v58 = vpack.c.bf16 %v4225_v15, %v4225_v15  ;;  %v8146_v0 = vunpack.c.l.b16 %v4240_v47  ;;  %v8189_v15 = vsel %vm1185_vm1, %v2290_v60, -3.4028235e+38  ;;  %v8892_v47 = vld [vmem:[#allocation38_spill] sm:$0xff] }
 0x50d   : > { %5753 = vmatmul.msk.bf16.gmra.mxu3 %vm1326_vm0, %v8886_v48  ;;  %8887 = vst [vmem:[#allocation35_spill] sm:$0xff] %v8146_v0  ;;  %v8148_v63 = vunpack.c.l.b16 %v4241_v58 }
 0x50e   : > { %v6570_v4 = vpop.eup %6569 }
 0x50f   : > { %8888 = vst [vmem:[#allocation40_spill] sm:$0xff] %v8148_v63  ;;  %v4226_v28 = vmul.f32 %v6570_v4, %v8054_v3 }
 0x510   : > { %v6572_v9 = vpop.eup %6571  ;;  %v2293_v18 = vpop.f32.mrf.mxu3 }
 0x511   : > { %v4189_v14 = vpop.xlane.xlu0 %4188  ;;  %v4227_v23 = vmul.f32 %v6572_v9, %v8057_v33  ;;  %v4242_v32 = vpack.c.bf16 %v4226_v28, %v4226_v28  ;;  %v8173_v33 = vpop.permute.xlu2 %4318  ;;  %v8199_v4 = vsel %vm1185_vm1, %v2293_v18, -3.4028235e+38 }
 0x512   : > { %2330 = vmax.xlane.f32.xlu1 %v8156_v6 }
 0x513   : > { %v4243_v42 = vpack.c.bf16 %v4227_v23, %v4227_v23  ;;  %v8160_v39 = vunpack.c.l.b16 %v4242_v32 }
 0x515   : > { %8889 = vst [vmem:[#allocation49_spill] sm:$0xff] %v8160_v39  ;;  %v8162_v45 = vunpack.c.l.b16 %v4243_v42 }
 0x517   : > { %8890 = vst [vmem:[#allocation48_spill] sm:$0xff] %v8162_v45 }
 0x518   : > { %v2295_v58 = vpop.f32.mrf.mxu3 }
 0x519   : > { %v2327_v34 = vpop.xlane.xlu0 %2326  ;;  %v2329_v25 = vpop.xlane.xlu2 %2328 }
 0x51a   : > { %v2357_v19 = vsub.f32 %v8079_v20, %v2327_v34  ;;  %2332 = vmax.xlane.f32.xlu1 %v8169_v51  ;;  %v2358_v20 = vsub.f32 %v8003_v11, %v2329_v25 }
 0x51c   : > { %v2374_v21 = vmul.f32 1.442695, %v2357_v19  ;;  %v2376_v46 = vmul.f32 1.442695, %v2358_v20 }
 0x51d   : > { %5754 = vmatmul.msk.bf16.gmra.mxu3 %vm1326_vm0, %v8891_v8 }
 0x51e   : > { %6573 = vpow2.f32 %v2374_v21 }
 0x51f   : > { %6575 = vpow2.f32 %v2376_v46 }
 0x520   : > { %6577 = vrcp.f32 %v4189_v14  ;;  %v2298_v28 = vpop.f32.mrf.mxu3 }
 0x521   : > { %v8224_v20 = vpop.permute.xlu2 %4449 }
 0x522   : > { %2334 = vmax.xlane.f32.xlu1 %v8180_v26 }
 0x524   : > { %v8183_v50 = vpop.eup %6573 }
 0x525   : > { %2406 = vadd.xlane.f32.xlu0 %v8183_v50  ;;  %v8194_v36 = vpop.eup %6575 }
 0x526   : > { %v6578_v11 = vpop.eup %6577 }
 0x527   : > { %v4229_v9 = vmul.f32 %v6578_v11, %v8062_v54 }
 0x528   : > { %v2300_v25 = vpop.f32.mrf.mxu3 }
 0x529   : > { %v4245_v34 = vpack.c.bf16 %v4229_v9, %v4229_v9 }
 0x52b   : > { %v8207_v60 = vunpack.c.l.b16 %v4245_v34 }
 0x52d   : > { %5755 = vmatmul.msk.bf16.gmra.mxu3 %vm1326_vm0, %v8892_v47  ;;  %2342 = vmax.xlane.f32.xlu0 %v8189_v15  ;;  %8894 = vst [vmem:[#allocation50_spill] sm:$0xff] %v8207_v60 }
 0x530   : > { %v2303_v54 = vpop.f32.mrf.mxu3 }
 0x535   : > { %2408 = vadd.xlane.f32.xlu0 %v8194_v36 }
 0x53a   : > { %v4187_v48 = vpop.xlane.xlu1 %4186 }
 0x53b   : > { %6579 = vrcp.f32 %v4187_v48 }
 0x53d   : > { %2344 = vmax.xlane.f32.xlu0 %v8199_v4 }
 0x541   : > { %v6580_v23 = vpop.eup %6579 }
 0x542   : > { %v2325_v32 = vpop.xlane.xlu1 %2324  ;;  %v4228_v42 = vmul.f32 %v6580_v23, %v8100_v38  ;;  %v2305_v38 = vpop.f32.mrf.mxu3 }
 0x543   : > { %v2356_v14 = vsub.f32 %v8108_v7, %v2325_v32 }
 0x544   : > { %v4244_v19 = vpack.c.bf16 %v4228_v42, %v4228_v42 }
 0x545   : > { %v2372_v21 = vmul.f32 1.442695, %v2356_v14 }
 0x546   : > { %v8205_v8 = vunpack.c.l.b16 %v4244_v19  ;;  %v8220_v19 = vpop.permute.xlu0 %4445 }
 0x547   : > { %6581 = vpow2.f32 %v2372_v21 }
 0x548   : > { %8893 = vst [vmem:[#allocation28_spill] sm:$0xff] %v8205_v8 }
 0x54a   : > { %v3173_v18 = vpop.f32.mrf.mxu3 }
 0x54d   : > { %v8211_v46 = vpop.eup %6581 }
 0x54e   : > { %2404 = vadd.xlane.f32.xlu1 %v8211_v46 }
 0x552   : > { %v3175_v47 = vpop.f32.mrf.mxu3 }
 0x55a   : > { %v8214_v7 = vpop.f32.mrf.mxu3  ;;  %v8216_v48 = vpop.permute.xlu1 %4447 }
 0x562   : > { %v3180_v11 = vpop.f32.mrf.mxu3 }
 0x56a   : > { %v3183_v34 = vpop.f32.mrf.mxu3 }
 0x585   : > { %v2331_v9 = vpop.xlane.xlu1 %2330 }
 0x586   : > { %v2359_v23 = vsub.f32 %v8156_v6, %v2331_v9  ;;  %v2337_v6 = vpop.xlane.xlu0 %2336 }
 0x588   : > { %v2378_v32 = vmul.f32 1.442695, %v2359_v23  ;;  %v2339_v23 = vpop.xlane.xlu2 %2338 }
 0x58a   : > { %6583 = vpow2.f32 %v2378_v32  ;;  %v8234_v32 = vpop.f32.mrf.mxu3 }
 0x58d   : > { %v2333_v42 = vpop.xlane.xlu1 %2332 }
 0x58e   : > { %v2360_v14 = vsub.f32 %v8169_v51, %v2333_v42  ;;  %v8232_v51 = vsel %vm1185_vm1, %v2295_v58, -3.4028235e+38  ;;  %v8244_v58 = vsel %vm1185_vm1, %v2298_v28, -3.4028235e+38  ;;  %v8257_v28 = vsel %vm1185_vm1, %v2303_v54, -3.4028235e+38 }
 0x58f   : > { %v8274_v54 = vsel %vm1185_vm1, %v3183_v34, -3.4028235e+38  ;;  %v8286_v34 = vsel %vm1185_vm1, %v3180_v11, -3.4028235e+38 }
 0x590   : > { %v8222_v21 = vpop.eup %6583  ;;  %v2380_v3 = vmul.f32 1.442695, %v2360_v14 }
 0x591   : > { %2410 = vadd.xlane.f32.xlu2 %v8222_v21 }
 0x592   : > { %6585 = vpow2.f32 %v2380_v3  ;;  %v2362_v3 = vsub.f32 %v8115_v52, %v2337_v6  ;;  %v3188_v52 = vpop.f32.mrf.mxu3 }
 0x595   : > { %v2335_v12 = vpop.xlane.xlu1 %2334 }
 0x596   : > { %v2361_v29 = vsub.f32 %v8180_v26, %v2335_v12  ;;  %v2363_v12 = vsub.f32 %v8071_v55, %v2339_v23  ;;  %v2384_v26 = vmul.f32 1.442695, %v2362_v3  ;;  %v8266_v3 = vsel %vm1185_vm1, %v2305_v38, -3.4028235e+38 }
 0x598   : > { %v8228_v9 = vpop.eup %6585  ;;  %v2382_v42 = vmul.f32 1.442695, %v2361_v29  ;;  %v2386_v14 = vmul.f32 1.442695, %v2363_v12  ;;  %v8248_v29 = vsel %vm1185_vm1, %v2300_v25, -3.4028235e+38  ;;  %v2407_v6 = vpop.xlane.xlu0 %2406 }
 0x599   : > { %2346 = vmax.xlane.f32.xlu2 %v8232_v51  ;;  %2412 = vadd.xlane.f32.xlu1 %v8228_v9  ;;  %v8270_v12 = vsel %vm1185_vm1, %v3175_v47, -3.4028235e+38  ;;  %v8282_v47 = vsel %vm1185_vm1, %v3173_v18, -3.4028235e+38  ;;  %v8299_v18 = vsel %vm1185_vm1, %v8214_v7, -3.4028235e+38 }
 0x59a   : > { %6587 = vpow2.f32 %v2382_v42  ;;  %v3190_v25 = vpop.f32.mrf.mxu3 }
 0x59b   : > { %6589 = vpow2.f32 %v2384_v26 }
 0x59c   : > { %6591 = vpow2.f32 %v2386_v14  ;;  %v2341_v14 = vpop.xlane.xlu2 %2340 }
 0x59d   : > { %v2364_v45 = vsub.f32 %v8133_v24, %v2341_v14  ;;  %v8303_v24 = vsel %vm1185_vm1, %v3190_v25, -3.4028235e+38  ;;  %v8317_v14 = vsel %vm1185_vm1, %v8234_v32, -3.4028235e+38 }
 0x5a0   : > { %v8240_v8 = vpop.eup %6587  ;;  %v2343_v42 = vpop.xlane.xlu0 %2342 }
 0x5a1   : > { %2348 = vmax.xlane.f32.xlu2 %v8244_v58  ;;  %2350 = vmax.xlane.f32.xlu1 %v8248_v29  ;;  %v8253_v55 = vpop.eup %6589  ;;  %v2365_v26 = vsub.f32 %v8189_v15, %v2343_v42  ;;  %v2388_v15 = vmul.f32 1.442695, %v2364_v45 }
 0x5a2   : > { %2414 = vadd.xlane.f32.xlu0 %v8240_v8  ;;  %v8259_v23 = vpop.eup %6591  ;;  %v4058_v60 = vpop.f32.mrf.mxu3 }
 0x5a3   : > { %v2390_v39 = vmul.f32 1.442695, %v2365_v26  ;;  %v8291_v0 = vsel %vm1185_vm1, %v4058_v60, -3.4028235e+38 }
 0x5a5   : > { %6593 = vpow2.f32 %v2390_v39 }
 0x5a6   : > { %6595 = vrcp.f32 %v2407_v6 }
 0x5a7   : > { %6597 = vpow2.f32 %v2388_v15 }
 0x5a8   : > { %v2409_v38 = vpop.xlane.xlu0 %2408 }
 0x5a9   : > { %2352 = vmax.xlane.f32.xlu2 %v8257_v28  ;;  %2416 = vadd.xlane.f32.xlu1 %v8253_v55 }
 0x5aa   : > { %2418 = vadd.xlane.f32.xlu0 %v8259_v23 }
 0x5ab   : > { %v8305_v11 = vpop.eup %6593 }
 0x5ac   : > { %v6596_v6 = vpop.eup %6595 }
 0x5ad   : > { %v2453_v7 = vmul.f32 %v6596_v6, %v8183_v50  ;;  %v8312_v42 = vpop.eup %6597 }
 0x5af   : > { %v2469_v15 = vpack.c.bf16 %v2453_v7, %v2453_v7 }
 0x5b0   : > { %v2345_v60 = vpop.xlane.xlu0 %2344 }
 0x5b1   : > { %3227 = vmax.xlane.f32.xlu2 %v8270_v12  ;;  %2354 = vmax.xlane.f32.xlu1 %v8266_v3  ;;  %v2366_v45 = vsub.f32 %v8199_v4, %v2345_v60  ;;  %v4060_v60 = vpop.f32.mrf.mxu3  ;;  %v2493_v50 = vunpack.c.l.b16 %v2469_v15 }
 0x5b2   : > { %3233 = vmax.xlane.f32.xlu0 %v8274_v54 }
 0x5b3   : > { %v2392_v25 = vmul.f32 1.442695, %v2366_v45  ;;  %v8324_v45 = vsel %vm1185_vm1, %v3188_v52, -3.4028235e+38 }
 0x5b9   : > { %3231 = vmax.xlane.f32.xlu2 %v8286_v34  ;;  %3225 = vmax.xlane.f32.xlu1 %v8282_v47 }
 0x5ba   : > { %4110 = vmax.xlane.f32.xlu0 %v8291_v0 }
 0x5c1   : > { %3239 = vmax.xlane.f32.xlu2 %v8303_v24  ;;  %3229 = vmax.xlane.f32.xlu1 %v8299_v18  ;;  %v2405_v39 = vpop.xlane.xlu1 %2404 }
 0x5c2   : > { %6599 = vrcp.f32 %v2405_v39  ;;  %2422 = vadd.xlane.f32.xlu0 %v8305_v11 }
 0x5c3   : > { %6601 = vpow2.f32 %v2392_v25 }
 0x5c4   : > { %6603 = vrcp.f32 %v2409_v38 }
 0x5c8   : > { %v6600_v26 = vpop.eup %6599 }
 0x5c9   : > { %v2452_v63 = vmul.f32 %v6600_v26, %v8211_v46  ;;  %3235 = vmax.xlane.f32.xlu1 %v8317_v14  ;;  %2420 = vadd.xlane.f32.xlu2 %v8312_v42  ;;  %v8326_v43 = vpop.eup %6601  ;;  %v4063_v46 = vpop.f32.mrf.mxu3 }
 0x5ca   : > { %v8338_v32 = vsel %vm1185_vm1, %v4063_v46, -3.4028235e+38 }
 0x5cb   : > { %v2468_v4 = vpack.c.bf16 %v2452_v63, %v2452_v63  ;;  %v8334_v63 = vsel %vm1185_vm1, %v4060_v60, -3.4028235e+38 }
 0x5cd   : > { %v2492_v39 = vunpack.c.l.b16 %v2468_v4 }
 0x5cf   : > { %v2500_v6 = vpack.c.b16 %v2493_v50, %v2492_v39 }
 0x5d1   : > { %3237 = vmax.xlane.f32.xlu1 %v8324_v45  ;;  %2580 = vmatmul.bf16.vlgmr.msrb.gmra.mxu0 %v2500_v6  ;;  %v4065_v52 = vpop.f32.mrf.mxu3 }
 0x5d2   : > { %4342 = vmatpush.bf16.msrb.mxu0 %v8016_v61  ;;  %2424 = vadd.xlane.f32.xlu2 %v8326_v43 }
 0x5d6   : > { %4343 = vmatpush.bf16.msrb.mxu0 %v8028_v62  ;;  %v6604_v62 = vpop.eup %6603 }
 0x5d7   : > { %v2454_v7 = vmul.f32 %v6604_v62, %v8194_v36 }
 0x5d9   : > { %4112 = vmax.xlane.f32.xlu1 %v8334_v63  ;;  %v2470_v15 = vpack.c.bf16 %v2454_v7, %v2454_v7  ;;  %v4068_v4 = vpop.f32.mrf.mxu3 }
 0x5da   : > { %4344 = vmatpush.bf16.msrb.mxu0 %v8040_v37  ;;  %4114 = vmax.xlane.f32.xlu2 %v8338_v32 }
 0x5de   : > { %4345 = vmatpush.bf16.msrb.mxu0 %v8088_v53 }
 0x5e1   : > { %v4070_v7 = vpop.f32.mrf.mxu3 }
 0x5e2   : > { %4346 = vmatpush.bf16.msrb.mxu0 %v8092_v22 }
 0x5e6   : > { %4347 = vmatpush.bf16.msrb.mxu0 %v8098_v1 }
 0x5ea   : > { %4348 = vmatpush.bf16.msrb.mxu0 %v8124_v2 }
 0x5ee   : > { %4349 = vmatpush.bf16.msrb.mxu0 %v8173_v33  ;;  %v2494_v33 = vunpack.c.l.b16 %v2470_v15 }
 0x604   : > { %v2411_v61 = vpop.xlane.xlu2 %2410 }
 0x605   : > { %6605 = vrcp.f32 %v2411_v61 }
 0x60b   : > { %v6606_v37 = vpop.eup %6605 }
 0x60c   : > { %v2413_v25 = vpop.xlane.xlu1 %2412  ;;  %v2347_v26 = vpop.xlane.xlu2 %2346  ;;  %v2455_v53 = vmul.f32 %v6606_v37, %v8222_v21 }
 0x60d   : > { %v2367_v22 = vsub.f32 %v8232_v51, %v2347_v26  ;;  %6607 = vrcp.f32 %v2413_v25 }
 0x60e   : > { %v2471_v1 = vpack.c.bf16 %v2455_v53, %v2455_v53 }
 0x60f   : > { %v2394_v2 = vmul.f32 1.442695, %v2367_v22 }
 0x610   : > { %v2495_v38 = vunpack.c.l.b16 %v2471_v1  ;;  %v8362_v1 = vsel %vm1185_vm1, %v4065_v52, -3.4028235e+38 }
 0x611   : > { %6609 = vpow2.f32 %v2394_v2 }
 0x612   : > { %v2501_v60 = vpack.c.b16 %v2495_v38, %v2494_v33 }
 0x613   : > { %v6608_v21 = vpop.eup %6607 }
 0x614   : > { %v2351_v50 = vpop.xlane.xlu1 %2350  ;;  %2585 = vmatmul.bf16.gmra.mxu0 %v2501_v60  ;;  %v2349_v39 = vpop.xlane.xlu2 %2348  ;;  %v2456_v37 = vmul.f32 %v6608_v21, %v8228_v9 }
 0x615   : > { %v2369_v36 = vsub.f32 %v8248_v29, %v2351_v50  ;;  %v2415_v6 = vpop.xlane.xlu0 %2414  ;;  %v2368_v46 = vsub.f32 %v8244_v58, %v2349_v39  ;;  %v4073_v50 = vpop.f32.mrf.mxu3 }
 0x616   : > { %6611 = vrcp.f32 %v2415_v6  ;;  %v2472_v15 = vpack.c.bf16 %v2456_v37, %v2456_v37 }
 0x617   : > { %v8353_v61 = vpop.eup %6609  ;;  %v2398_v51 = vmul.f32 1.442695, %v2369_v36  ;;  %v2396_v62 = vmul.f32 1.442695, %v2368_v46 }
 0x618   : > { %2426 = vadd.xlane.f32.xlu1 %v8353_v61 }
 0x619   : > { %6613 = vpow2.f32 %v2398_v51 }
 0x61a   : > { %6615 = vpow2.f32 %v2396_v62  ;;  %v8381_v62 = vsel %vm1185_vm1, %v4073_v50, -3.4028235e+38 }
 0x61c   : > { %v6612_v25 = vpop.eup %6611  ;;  %v2417_v26 = vpop.xlane.xlu1 %2416 }
 0x61d   : > { %v2353_v53 = vpop.xlane.xlu2 %2352  ;;  %6617 = vrcp.f32 %v2417_v26  ;;  %v2419_v29 = vpop.xlane.xlu0 %2418  ;;  %v2457_v58 = vmul.f32 %v6612_v25, %v8240_v8  ;;  %v2496_v8 = vunpack.c.l.b16 %v2472_v15 }
 0x61e   : > { %6619 = vrcp.f32 %v2419_v29  ;;  %v2370_v9 = vsub.f32 %v8257_v28, %v2353_v53  ;;  %v8377_v28 = vsel %vm1185_vm1, %v4070_v7, -3.4028235e+38  ;;  %v8387_v53 = vsel %vm1185_vm1, %v4068_v4, -3.4028235e+38 }
 0x61f   : > { %v8358_v22 = vpop.eup %6613  ;;  %v2473_v2 = vpack.c.bf16 %v2457_v58, %v2457_v58 }
 0x620   : > { %v8364_v33 = vpop.eup %6615  ;;  %2430 = vadd.xlane.f32.xlu0 %v8358_v22  ;;  %4116 = vmax.xlane.f32.xlu1 %v8362_v1  ;;  %v2400_v6 = vmul.f32 1.442695, %v2370_v9 }
 0x621   : > { %2428 = vadd.xlane.f32.xlu2 %v8364_v33  ;;  %v2497_v38 = vunpack.c.l.b16 %v2473_v2 }
 0x622   : > { %6621 = vpow2.f32 %v2400_v6 }
 0x623   : > { %v6618_v60 = vpop.eup %6617  ;;  %v2502_v39 = vpack.c.b16 %v2497_v38, %v2496_v8 }
 0x624   : > { %v6620_v36 = vpop.eup %6619  ;;  %v2355_v52 = vpop.xlane.xlu1 %2354  ;;  %v2458_v25 = vmul.f32 %v6618_v60, %v8253_v55 }
 0x625   : > { %v8370_v46 = vpop.xlane.xlu2 %3227  ;;  %v2371_v21 = vsub.f32 %v8266_v3, %v2355_v52  ;;  %v8373_v51 = vpop.xlane.xlu0 %3233  ;;  %2590 = vmatmul.bf16.gmra.mxu0 %v2502_v39  ;;  %v2459_v26 = vmul.f32 %v6620_v36, %v8259_v23 }
 0x626   : > { %v2474_v3 = vpack.c.bf16 %v2458_v25, %v2458_v25  ;;  %v4075_v39 = vpop.f32.mrf.mxu3 }
 0x627   : > { %v2402_v37 = vmul.f32 1.442695, %v2371_v21  ;;  %v2475_v7 = vpack.c.bf16 %v2459_v26, %v2459_v26  ;;  %v8895_v21 = vld [vmem:[#allocation52_spill] sm:$0xff]  ;;  %v8411_v25 = vsel %vm1185_vm1, %v4075_v39, -3.4028235e+38  ;;  %v8896_v26 = vld [vmem:[#allocation51_spill] sm:$0xff] }
 0x628   : > { %4122 = vmax.xlane.f32.xlu0 %v8381_v62  ;;  %4120 = vmax.xlane.f32.xlu1 %v8377_v28  ;;  %v8397_v15 = vpop.eup %6621  ;;  %v2498_v9 = vunpack.c.l.b16 %v2474_v3 }
 0x629   : > { %6623 = vpow2.f32 %v2402_v37  ;;  %4118 = vmax.xlane.f32.xlu2 %v8387_v53  ;;  %v2499_v8 = vunpack.c.l.b16 %v2475_v7 }
 0x62a   : > { %6625 = vrcp.f32 %v7894_v13 }
 0x62b   : > { %6627 = vrcp.f32 %v7929_v41  ;;  %v2503_v38 = vpack.c.b16 %v2499_v8, %v2498_v9 }
 0x62c   : > { %v3226_v29 = vpop.xlane.xlu1 %3225 }
 0x62d   : > { %v8392_v58 = vpop.xlane.xlu2 %3231  ;;  %v3249_v55 = vsub.f32 %v8282_v47, %v3226_v29  ;;  %v8395_v23 = vpop.xlane.xlu0 %4110 }
 0x62f   : > { %v8400_v4 = vpop.eup %6623  ;;  %v3273_v2 = vmul.f32 1.442695, %v3249_v55 }
 0x630   : > { %2432 = vadd.xlane.f32.xlu1 %v8397_v15  ;;  %v6626_v47 = vpop.eup %6625 }
 0x631   : > { %6629 = vpow2.f32 %v3273_v2  ;;  %2434 = vadd.xlane.f32.xlu2 %v8400_v4  ;;  %v6628_v6 = vpop.eup %6627  ;;  %v3338_v37 = vmul.f32 %v6626_v47, %v8895_v21 }
 0x632   : > { %v3337_v3 = vmul.f32 %v6628_v6, %v8896_v26 }
 0x633   : > { %v3354_v7 = vpack.c.bf16 %v3338_v37, %v3338_v37 }
 0x634   : > { %v3230_v60 = vpop.xlane.xlu1 %3229  ;;  %v3353_v9 = vpack.c.bf16 %v3337_v3, %v3337_v3 }
 0x635   : > { %v3240_v50 = vpop.xlane.xlu2 %3239  ;;  %v3251_v36 = vsub.f32 %v8299_v18, %v3230_v60  ;;  %v2423_v13 = vpop.xlane.xlu0 %2422  ;;  %2595 = vmatmul.bf16.gmra.mxu0 %v2503_v38  ;;  %v6097_v18 = vld [vmem:[#allocation4 + $0x70] sm:$0xff]  ;;  %v3378_v38 = vunpack.c.l.b16 %v3354_v7 }
 0x636   : > { %6631 = vrcp.f32 %v2423_v13  ;;  %v3377_v39 = vunpack.c.l.b16 %v3353_v9 }
 0x637   : > { %v8406_v52 = vpop.eup %6629  ;;  %v3277_v41 = vmul.f32 1.442695, %v3251_v36  ;;  %v3256_v36 = vsub.f32 %v8303_v24, %v3240_v50 }
 0x638   : > { %3305 = vadd.xlane.f32.xlu1 %v8406_v52  ;;  %v3385_v6 = vpack.c.b16 %v3378_v38, %v3377_v39  ;;  %v6098_v38 = vld [vmem:[#allocation4 + $0x60] sm:$0xff] }
 0x639   : > { %6633 = vpow2.f32 %v3277_v41  ;;  %4124 = vmax.xlane.f32.xlu2 %v8411_v25  ;;  %v3287_v26 = vmul.f32 1.442695, %v3256_v36 }
 0x63c   : > { %v3236_v29 = vpop.xlane.xlu1 %3235  ;;  %4441 = vrot.lane.b32.xlu0 %v6097_v18, %s6993_s14  ;;  %v6632_v2 = vpop.eup %6631 }
 0x63d   : > { %v2421_v55 = vpop.xlane.xlu2 %2420  ;;  %v3254_v8 = vsub.f32 %v8317_v14, %v3236_v29  ;;  %v2461_v60 = vmul.f32 %v6632_v2, %v8305_v11 }
 0x63e   : > { %6635 = vrcp.f32 %v2421_v55 }
 0x63f   : > { %6637 = vrcp.f32 %v7978_v35  ;;  %v8419_v59 = vpop.eup %6633  ;;  %v3283_v47 = vmul.f32 1.442695, %v3254_v8  ;;  %v2477_v21 = vpack.c.bf16 %v2461_v60, %v2461_v60 }
 0x640   : > { %6639 = vrcp.f32 %v7974_v40 }
 0x641   : > { %6641 = vpow2.f32 %v3283_v47  ;;  %3309 = vadd.xlane.f32.xlu2 %v8419_v59  ;;  %v2610_v18 = vunpack.c.l.b16 %v2477_v21 }
 0x642   : > { %6643 = vpow2.f32 %v3287_v26  ;;  %v4134_v26 = vsub.f32 %v8291_v0, %v8395_v23 }
 0x643   : > { %6645 = vrcp.f32 %v7991_v57 }
 0x644   : > { %v6636_v13 = vpop.eup %6635  ;;  %v8426_v37 = vpop.xlane.xlu1 %3237  ;;  %6647 = vrcp.f32 %v7942_v56  ;;  %v3250_v56 = vsub.f32 %v8270_v12, %v8370_v46 }
 0x645   : > { %v6638_v14 = vpop.eup %6637  ;;  %v2460_v35 = vmul.f32 %v6636_v13, %v8312_v42  ;;  %3465 = vmatmul.bf16.vlgmr.msra.gmra.mxu0 %v3385_v6 }
 0x646   : > { %v6640_v41 = vpop.eup %6639  ;;  %v3339_v11 = vmul.f32 %v6638_v14, %v7869_v27  ;;  %v3275_v39 = vmul.f32 1.442695, %v3250_v56  ;;  %v6095_v56 = vld [vmem:[#allocation4 + $0x50] sm:$0xff] }
 0x647   : > { %v2476_v40 = vpack.c.bf16 %v2460_v35, %v2460_v35  ;;  %v8428_v3 = vpop.eup %6641  ;;  %v3340_v24 = vmul.f32 %v6640_v41, %v7863_v31 }
 0x648   : > { %v3355_v29 = vpack.c.bf16 %v3339_v11, %v3339_v11  ;;  %v8436_v8 = vpop.eup %6643  ;;  %v3255_v11 = vsub.f32 %v8324_v45, %v8426_v37  ;;  %v2425_v37 = vpop.xlane.xlu2 %2424 }
 0x649   : > { %v2609_v7 = vunpack.c.l.b16 %v2476_v40  ;;  %3315 = vadd.xlane.f32.xlu2 %v8428_v3  ;;  %v3356_v2 = vpack.c.bf16 %v3340_v24, %v3340_v24 }
 0x64a   : > { %v3379_v27 = vunpack.c.l.b16 %v3355_v29 }
 0x64b   : > { %v2617_v50 = vpack.c.b16 %v2610_v18, %v2609_v7  ;;  %v3380_v31 = vunpack.c.l.b16 %v3356_v2  ;;  %v4158_v18 = vmul.f32 1.442695, %v4134_v26 }
 0x64c   : > { %v4113_v42 = vpop.xlane.xlu1 %4112 }
 0x64d   : > { %2697 = vmatmul.bf16.vlgmr.msrb.gmra.mxu1 %v2617_v50  ;;  %v4135_v55 = vsub.f32 %v8334_v63, %v4113_v42  ;;  %v3386_v63 = vpack.c.b16 %v3380_v31, %v3379_v27  ;;  %v8897_v50 = vld [vmem:[#allocation43_spill] sm:$0xff] }
 0x64e   : > { %4459 = vmatpush.bf16.msrb.mxu1 %v8224_v20  ;;  %v6646_v20 = vpop.eup %6645  ;;  %v8478_v23 = vpop.f32.mrf.mxu0  ;;  %v8898_v29 = vpack.c.b16 %v8138_v10, %v8897_v50 }
 0x64f   : > { %v4160_v9 = vmul.f32 1.442695, %v4135_v55  ;;  %v6648_v57 = vpop.eup %6647  ;;  %v3342_v60 = vmul.f32 %v6646_v20, %v7884_v17 }
 0x651   : > { %6649 = vpow2.f32 %v4160_v9  ;;  %3319 = vadd.xlane.f32.xlu2 %v8436_v8  ;;  %4443 = vrot.lane.b32.xlu1 %v6098_v38, %s6993_s14  ;;  %v3358_v36 = vpack.c.bf16 %v3342_v60, %v3342_v60  ;;  %v4115_v9 = vpop.xlane.xlu2 %4114  ;;  %v6094_v38 = vld [vmem:[#allocation4 + $0x78] sm:$0xff] }
 0x652   : > { %4460 = vmatpush.bf16.msrb.mxu1 %v8216_v48  ;;  %v3341_v48 = vmul.f32 %v6648_v57, %v7824_v49  ;;  %6651 = vrcp.f32 %v8009_v30  ;;  %v3253_v30 = vsub.f32 %v8274_v54, %v8373_v51  ;;  %v6096_v54 = vld [vmem:[#allocation4 + $0x18] sm:$0xff] }
 0x653   : > { %6653 = vpow2.f32 %v3275_v39  ;;  %v3382_v6 = vunpack.c.l.b16 %v3358_v36  ;;  %v8899_v36 = vld [vmem:[#allocation40_spill] sm:$0xff] }
 0x654   : > { %v3357_v13 = vpack.c.bf16 %v3341_v48, %v3341_v48  ;;  %6655 = vrcp.f32 %v7999_v44 }
 0x655   : > { %3470 = vmatmul.bf16.gmra.mxu0 %v3386_v63 }
 0x656   : > { %4461 = vmatpush.bf16.msrb.mxu1 %v8220_v19  ;;  %v3252_v19 = vsub.f32 %v8286_v34, %v8392_v58  ;;  %v3381_v14 = vunpack.c.l.b16 %v3357_v13  ;;  %v3281_v58 = vmul.f32 1.442695, %v3253_v30  ;;  %v8483_v42 = vpop.f32.mrf.mxu0  ;;  %v8900_v13 = vld [vmem:[#allocation35_spill] sm:$0xff] }
 0x657   : > { %v8443_v47 = vpop.eup %6649 }
 0x658   : > { %v3279_v12 = vmul.f32 1.442695, %v3252_v19  ;;  %v3387_v46 = vpack.c.b16 %v3382_v6, %v3381_v14  ;;  %v6652_v17 = vpop.eup %6651 }
 0x659   : > { %4192 = vadd.xlane.f32.xlu2 %v8443_v47  ;;  %v8454_v21 = vpop.eup %6653  ;;  %v3343_v35 = vmul.f32 %v6652_v17, %v7922_v5  ;;  %v3285_v5 = vmul.f32 1.442695, %v3255_v11 }
 0x65a   : > { %v6656_v49 = vpop.eup %6655  ;;  %6657 = vpow2.f32 %v3279_v12 }
 0x65b   : > { %v3344_v34 = vmul.f32 %v6656_v49, %v7843_v16  ;;  %v3359_v44 = vpack.c.bf16 %v3343_v35, %v3343_v35  ;;  %6659 = vpow2.f32 %v3281_v58 }
 0x65c   : > { %6661 = vpow2.f32 %v4158_v18 }
 0x65d   : > { %v3360_v40 = vpack.c.bf16 %v3344_v34, %v3344_v34  ;;  %v3383_v51 = vunpack.c.l.b16 %v3359_v44  ;;  %6663 = vpow2.f32 %v3285_v5  ;;  %v8903_v5 = vld [vmem:[#allocation49_spill] sm:$0xff] }
 0x65e   : > { %6665 = vrcp.f32 %v2425_v37 }
 0x65f   : > { %v3384_v16 = vunpack.c.l.b16 %v3360_v40 }
 0x660   : > { %v8461_v41 = vpop.eup %6657 }
 0x661   : > { %v3388_v7 = vpack.c.b16 %v3384_v16, %v3383_v51  ;;  %v8469_v24 = vpop.eup %6659 }
 0x662   : > { %v8472_v0 = vpop.eup %6661 }
 0x663   : > { %v8475_v45 = vpop.eup %6663 }
 0x664   : > { %v6666_v2 = vpop.eup %6665 }
 0x665   : > { %3475 = vmatmul.bf16.gmra.mxu0 %v3387_v46  ;;  %v2462_v27 = vmul.f32 %v6666_v2, %v8326_v43  ;;  %v8901_v43 = vpack.c.b16 %v8899_v36, %v8900_v13 }
 0x666   : > { %3307 = vadd.xlane.f32.xlu0 %v8454_v21 }
 0x667   : > { %v2478_v60 = vpack.c.bf16 %v2462_v27, %v2462_v27 }
 0x669   : > { %v2611_v14 = vunpack.c.l.b16 %v2478_v60 }
 0x66e   : > { %3311 = vadd.xlane.f32.xlu0 %v8461_v41 }
 0x671   : > { %4439 = vrot.lane.b32.xlu2 %v6096_v54, %s6993_s14 }
 0x675   : > { %3480 = vmatmul.bf16.gmra.mxu0 %v3388_v7 }
 0x676   : > { %3313 = vadd.xlane.f32.xlu0 %v8469_v24 }
 0x67b   : > { %4190 = vadd.xlane.f32.xlu1 %v8472_v0 }
 0x67e   : > { %3317 = vadd.xlane.f32.xlu0 %v8475_v45 }
 0x685   : > { %4350 = vmatmul.bf16.vlgmr.msrb.gmra.mxu0 %v8898_v29 }
 0x68b   : > { %v2427_v55 = vpop.xlane.xlu1 %2426 }
 0x68c   : > { %6667 = vrcp.f32 %v2427_v55 }
 0x691   : > { %v8486_v31 = vpop.f32.mrf.mxu0 }
 0x692   : > { %v6668_v63 = vpop.eup %6667  ;;  %4435 = vrot.lane.b32.xlu0 %v6094_v38, %s6993_s14  ;;  %v4136_v38 = vsub.f32 %v8338_v32, %v4115_v9 }
 0x693   : > { %v2431_v20 = vpop.xlane.xlu0 %2430  ;;  %v4117_v57 = vpop.xlane.xlu1 %4116  ;;  %v2463_v10 = vmul.f32 %v6668_v63, %v8353_v61 }
 0x694   : > { %6669 = vrcp.f32 %v2431_v20  ;;  %v4137_v48 = vsub.f32 %v8362_v1, %v4117_v57  ;;  %v2429_v39 = vpop.xlane.xlu2 %2428  ;;  %4437 = vrot.lane.b32.xlu1 %v6095_v56, %s6993_s14  ;;  %v4162_v56 = vmul.f32 1.442695, %v4136_v38 }
 0x695   : > { %6671 = vrcp.f32 %v2429_v39  ;;  %4355 = vmatmul.bf16.gmra.mxu0 %v8901_v43  ;;  %v2479_v19 = vpack.c.bf16 %v2463_v10, %v2463_v10  ;;  %v8905_v43 = vld [vmem:[#allocation50_spill] sm:$0xff] }
 0x696   : > { %v4164_v6 = vmul.f32 1.442695, %v4137_v48 }
 0x697   : > { %v2612_v12 = vunpack.c.l.b16 %v2479_v19  ;;  %v8906_v19 = vld [vmem:[#allocation28_spill] sm:$0xff] }
 0x698   : > { %6673 = vpow2.f32 %v4164_v6  ;;  %v8907_v6 = vpack.c.b16 %v8905_v43, %v8906_v19 }
 0x699   : > { %v8495_v46 = vpop.f32.mrf.mxu0  ;;  %v2618_v61 = vpack.c.b16 %v2612_v12, %v2611_v14 }
 0x69a   : > { %v6670_v17 = vpop.eup %6669 }
 0x69b   : > { %v6672_v49 = vpop.eup %6671  ;;  %v4123_v30 = vpop.xlane.xlu0 %4122  ;;  %2702 = vmatmul.bf16.gmra.mxu1 %v2618_v61  ;;  %v2465_v44 = vmul.f32 %v6670_v17, %v8358_v22 }
 0x69c   : > { %v4121_v1 = vpop.xlane.xlu1 %4120  ;;  %v4140_v35 = vsub.f32 %v8381_v62, %v4123_v30  ;;  %v4119_v34 = vpop.xlane.xlu2 %4118  ;;  %v2464_v58 = vmul.f32 %v6672_v49, %v8364_v33  ;;  %v8902_v62 = vld [vmem:[#allocation48_spill] sm:$0xff] }
 0x69d   : > { %v2481_v54 = vpack.c.bf16 %v2465_v44, %v2465_v44  ;;  %v8904_v7 = vpack.c.b16 %v8902_v62, %v8903_v5  ;;  %v4138_v57 = vsub.f32 %v8387_v53, %v4119_v34  ;;  %v4139_v13 = vsub.f32 %v8377_v28, %v4121_v1 }
 0x69e   : > { %v8500_v26 = vpop.eup %6673  ;;  %v4170_v40 = vmul.f32 1.442695, %v4140_v35  ;;  %v2480_v11 = vpack.c.bf16 %v2464_v58, %v2464_v58  ;;  %v2719_v28 = vpack.c.bf16 %v8483_v42, %v8483_v42 }
 0x69f   : > { %4196 = vadd.xlane.f32.xlu2 %v8500_v26  ;;  %v2614_v22 = vunpack.c.l.b16 %v2481_v54  ;;  %v4166_v39 = vmul.f32 1.442695, %v4138_v57  ;;  %v4168_v53 = vmul.f32 1.442695, %v4139_v13 }
 0x6a0   : > { %6675 = vpow2.f32 %v4170_v40  ;;  %v2613_v33 = vunpack.c.l.b16 %v2480_v11 }
 0x6a2   : > { %v8503_v51 = vpop.f32.mrf.mxu0  ;;  %v2619_v50 = vpack.c.b16 %v2614_v22, %v2613_v33 }
 0x6a4   : > { %v2433_v18 = vpop.xlane.xlu1 %2432  ;;  %v2435_v16 = vpop.xlane.xlu2 %2434 }
 0x6a5   : > { %6677 = vrcp.f32 %v2433_v18  ;;  %4360 = vmatmul.bf16.gmra.mxu0 %v8904_v7  ;;  %v2718_v18 = vpack.c.bf16 %v8478_v23, %v8478_v23 }
 0x6a6   : > { %6679 = vrcp.f32 %v2435_v16  ;;  %v8508_v37 = vpop.eup %6675 }
 0x6a7   : > { %4202 = vadd.xlane.f32.xlu2 %v8508_v37  ;;  %6681 = vpow2.f32 %v4162_v56 }
 0x6a8   : > { %6683 = vpow2.f32 %v4166_v39 }
 0x6a9   : > { %6685 = vpow2.f32 %v4168_v53 }
 0x6aa   : > { %v8511_v55 = vpop.f32.mrf.mxu0 }
 0x6ab   : > { %v6678_v29 = vpop.eup %6677  ;;  %2707 = vmatmul.bf16.gmra.mxu1 %v2619_v50 }
 0x6ac   : > { %v6680_v2 = vpop.eup %6679  ;;  %v4125_v27 = vpop.xlane.xlu2 %4124  ;;  %v2466_v63 = vmul.f32 %v6678_v29, %v8397_v15 }
 0x6ad   : > { %v2467_v20 = vmul.f32 %v6680_v2, %v8400_v4  ;;  %v4141_v4 = vsub.f32 %v8411_v25, %v4125_v27  ;;  %v8526_v12 = vpop.eup %6681  ;;  %v3306_v61 = vpop.xlane.xlu1 %3305 }
 0x6ae   : > { %v2482_v10 = vpack.c.bf16 %v2466_v63, %v2466_v63  ;;  %v8531_v30 = vpop.eup %6683  ;;  %v4442_v42 = vpop.permute.xlu0 %4441 }
 0x6af   : > { %v2483_v60 = vpack.c.bf16 %v2467_v20, %v2467_v20  ;;  %v4172_v17 = vmul.f32 1.442695, %v4141_v4  ;;  %v8535_v1 = vpop.eup %6685 }
 0x6b0   : > { %v2615_v32 = vunpack.c.l.b16 %v2482_v10 }
 0x6b1   : > { %v2616_v15 = vunpack.c.l.b16 %v2483_v60  ;;  %6687 = vpow2.f32 %v4172_v17 }
 0x6b2   : > { %v8517_v48 = vpop.f32.mrf.mxu0  ;;  %6689 = vrcp.f32 %v3306_v61 }
 0x6b3   : > { %v2620_v9 = vpack.c.b16 %v2616_v15, %v2615_v32  ;;  %v2722_v15 = vpack.c.bf16 %v8503_v51, %v8503_v51 }
 0x6b4   : > { %v3310_v36 = vpop.xlane.xlu2 %3309 }
 0x6b5   : > { %4365 = vmatmul.bf16.gmra.mxu0 %v8907_v6 }
 0x6b7   : > { %v8540_v58 = vpop.eup %6687 }
 0x6b8   : > { %v6690_v62 = vpop.eup %6689 }
 0x6b9   : > { %v3345_v7 = vmul.f32 %v6690_v62, %v8406_v52  ;;  %v2720_v52 = vpack.c.bf16 %v8486_v31, %v8486_v31 }
 0x6ba   : > { %v8524_v14 = vpop.f32.mrf.mxu0 }
 0x6bb   : > { %2712 = vmatmul.bf16.gmra.mxu1 %v2620_v9  ;;  %v3361_v29 = vpack.c.bf16 %v3345_v7, %v3345_v7  ;;  %v2721_v7 = vpack.c.bf16 %v8495_v46, %v8495_v46 }
 0x6bc   : > { %v3316_v49 = vpop.xlane.xlu2 %3315  ;;  %4194 = vadd.xlane.f32.xlu0 %v8526_v12 }
 0x6bd   : > { %v3494_v63 = vunpack.c.l.b16 %v3361_v29 }
 0x6be   : > { %4198 = vadd.xlane.f32.xlu1 %v8531_v30 }
 0x6bf   : > { %2752 = vrot.lane.b32.xlu2 %v2719_v28, %s6993_s14 }
 0x6c2   : > { %v3466_v25 = vpop.f32.mrf.mxu0 }
 0x6c3   : > { %v4444_v35 = vpop.permute.xlu1 %4443  ;;  %v3603_v33 = vpack.c.bf16 %v3466_v25, %v3466_v25 }
 0x6c4   : > { %v8537_v34 = vpop.xlane.xlu2 %3319  ;;  %4200 = vadd.xlane.f32.xlu0 %v8535_v1  ;;  %4462 = vmatpush.bf16.msrb.mxu1 %v4444_v35 }
 0x6c6   : > { %4204 = vadd.xlane.f32.xlu1 %v8540_v58 }
 0x6c8   : > { %4463 = vmatpush.bf16.msrb.mxu1 %v4442_v42 }
 0x6ca   : > { %v3468_v44 = vpop.f32.mrf.mxu0  ;;  %v2698_v46 = vpop.f32.mrf.mxu1 }
 0x6cb   : > { %v3604_v22 = vpack.c.bf16 %v3468_v44, %v3468_v44 }
 0x6cc   : > { %v8543_v40 = vpop.xlane.xlu2 %4192 }
 0x6d2   : > { %v8545_v11 = vpop.f32.mrf.mxu0 }
 0x6d4   : > { %v4440_v54 = vpop.permute.xlu2 %4439 }
 0x6d5   : > { %4464 = vmatpush.bf16.msrb.mxu1 %v4440_v54 }
 0x6d8   : > { %2750 = vrot.lane.b32.xlu0 %v2718_v18, %s6993_s14 }
 0x6d9   : > { %v3308_v16 = vpop.xlane.xlu0 %3307 }
 0x6da   : > { %v3473_v5 = vpop.f32.mrf.mxu0  ;;  %6691 = vrcp.f32 %v3308_v16 }
 0x6db   : > { %v3606_v13 = vpack.c.bf16 %v3473_v5, %v3473_v5 }
 0x6df   : > { %3635 = vrot.lane.b32.xlu1 %v3603_v33, %s6992_s11 }
 0x6e0   : > { %v6692_v50 = vpop.eup %6691  ;;  %3637 = vrot.lane.b32.xlu0 %v3604_v22, %s6992_s11 }
 0x6e1   : > { %v3346_v2 = vmul.f32 %v6692_v50, %v8454_v21  ;;  %v3312_v27 = vpop.xlane.xlu0 %3311 }
 0x6e2   : > { %v8554_v23 = vpop.f32.mrf.mxu0  ;;  %6693 = vrcp.f32 %v3312_v27 }
 0x6e3   : > { %v3362_v38 = vpack.c.bf16 %v3346_v2, %v3346_v2  ;;  %6695 = vrcp.f32 %v3310_v36 }
 0x6e5   : > { %v3495_v20 = vunpack.c.l.b16 %v3362_v38 }
 0x6e7   : > { %v3502_v57 = vpack.c.b16 %v3495_v20, %v3494_v63  ;;  %2754 = vrot.lane.b32.xlu1 %v2720_v52, %s6993_s14  ;;  %v3605_v63 = vpack.c.bf16 %v8545_v11, %v8545_v11  ;;  %v2726_v52 = vpack.c.bf16 %v2698_v46, %v2698_v46  ;;  %v2723_v11 = vpack.c.bf16 %v8511_v55, %v8511_v55 }
 0x6e8   : > { %v6694_v56 = vpop.eup %6693 }
 0x6e9   : > { %3582 = vmatmul.bf16.vlgmr.msra.gmra.mxu1 %v3502_v57  ;;  %v6696_v10 = vpop.eup %6695  ;;  %v3348_v21 = vmul.f32 %v6694_v56, %v8461_v41  ;;  %v3314_v43 = vpop.xlane.xlu0 %3313 }
 0x6ea   : > { %v3478_v60 = vpop.f32.mrf.mxu0  ;;  %v3347_v39 = vmul.f32 %v6696_v10, %v8419_v59  ;;  %6697 = vrcp.f32 %v3314_v43 }
 0x6eb   : > { %v3364_v19 = vpack.c.bf16 %v3348_v21, %v3348_v21  ;;  %6699 = vrcp.f32 %v3316_v49  ;;  %v3608_v17 = vpack.c.bf16 %v3478_v60, %v3478_v60 }
 0x6ec   : > { %v3363_v36 = vpack.c.bf16 %v3347_v39, %v3347_v39 }
 0x6ed   : > { %v3497_v31 = vunpack.c.l.b16 %v3364_v19 }
 0x6ee   : > { %v3496_v32 = vunpack.c.l.b16 %v3363_v36  ;;  %v4191_v28 = vpop.xlane.xlu1 %4190 }
 0x6ef   : > { %3641 = vrot.lane.b32.xlu1 %v3606_v13, %s6992_s11 }
 0x6f0   : > { %v3503_v4 = vpack.c.b16 %v3497_v31, %v3496_v32  ;;  %v6698_v53 = vpop.eup %6697  ;;  %v3607_v32 = vpack.c.bf16 %v8554_v23, %v8554_v23 }
 0x6f1   : > { %v6700_v59 = vpop.eup %6699  ;;  %v3349_v9 = vmul.f32 %v6698_v53, %v8469_v24  ;;  %v3318_v25 = vpop.xlane.xlu0 %3317  ;;  %v2724_v24 = vpack.c.bf16 %v8517_v48, %v8517_v48 }
 0x6f2   : > { %v8562_v6 = vpop.f32.mrf.mxu0  ;;  %v3350_v61 = vmul.f32 %v6700_v59, %v8428_v3  ;;  %6701 = vrcp.f32 %v3318_v25  ;;  %v2725_v59 = vpack.c.bf16 %v8524_v14, %v8524_v14 }
 0x6f3   : > { %v3365_v35 = vpack.c.bf16 %v3349_v9, %v3349_v9  ;;  %6703 = vrcp.f32 %v8537_v34 }
 0x6f4   : > { %v3366_v49 = vpack.c.bf16 %v3350_v61, %v3350_v61  ;;  %6705 = vrcp.f32 %v4191_v28  ;;  %v3609_v28 = vpack.c.bf16 %v8562_v6, %v8562_v6 }
 0x6f5   : > { %v3498_v44 = vunpack.c.l.b16 %v3365_v35  ;;  %6707 = vrcp.f32 %v8543_v40 }
 0x6f6   : > { %v3499_v54 = vunpack.c.l.b16 %v3366_v49 }
 0x6f7   : > { %2758 = vrot.lane.b32.xlu1 %v2722_v15, %s6993_s14 }
 0x6f8   : > { %v3504_v18 = vpack.c.b16 %v3499_v54, %v3498_v44  ;;  %v6702_v16 = vpop.eup %6701 }
 0x6f9   : > { %3587 = vmatmul.bf16.gmra.mxu1 %v3503_v4  ;;  %v6704_v62 = vpop.eup %6703  ;;  %v3351_v22 = vmul.f32 %v6702_v16, %v8475_v45 }
 0x6fa   : > { %v3483_v41 = vpop.f32.mrf.mxu0  ;;  %v3352_v48 = vmul.f32 %v6704_v62, %v8436_v8  ;;  %v6706_v56 = vpop.eup %6705 }
 0x6fb   : > { %v3610_v50 = vpack.c.bf16 %v3483_v41, %v3483_v41  ;;  %v3367_v29 = vpack.c.bf16 %v3351_v22, %v3351_v22  ;;  %v6708_v10 = vpop.eup %6707  ;;  %v4230_v40 = vmul.f32 %v6706_v56, %v8472_v0  ;;  %v2700_v0 = vpop.f32.mrf.mxu1 }
 0x6fc   : > { %v3368_v2 = vpack.c.bf16 %v3352_v48, %v3352_v48  ;;  %v4231_v13 = vmul.f32 %v6708_v10, %v8443_v47  ;;  %v2727_v6 = vpack.c.bf16 %v2700_v0, %v2700_v0 }
 0x6fd   : > { %v3500_v20 = vunpack.c.l.b16 %v3367_v29  ;;  %v4246_v43 = vpack.c.bf16 %v4230_v40, %v4230_v40 }
 0x6fe   : > { %v3501_v8 = vunpack.c.l.b16 %v3368_v2  ;;  %v4247_v19 = vpack.c.bf16 %v4231_v13, %v4231_v13  ;;  %v6117_v2 = vld [vmem:[#allocation15 + $0x38] sm:$0xff] }
 0x6ff   : > { %3645 = vrot.lane.b32.xlu1 %v3608_v17, %s6992_s11  ;;  %v4379_v15 = vunpack.c.l.b16 %v4246_v43  ;;  %4717 = vmatpush.bf16.msrb.mxu2 %v6117_v2  ;;  %v6112_v43 = vld [vmem:[#allocation15 + $0x10] sm:$0xff] }
 0x700   : > { %v3505_v57 = vpack.c.b16 %v3501_v8, %v3500_v20  ;;  %v4380_v55 = vunpack.c.l.b16 %v4247_v19  ;;  %v6115_v8 = vld [vmem:[#allocation15 + $0x28] sm:$0xff] }
 0x702   : > { %v4351_v51 = vpop.f32.mrf.mxu0  ;;  %v4387_v47 = vpack.c.b16 %v4380_v55, %v4379_v15  ;;  %v6110_v15 = vld [vmem:[#allocation15] sm:$0xff] }
 0x703   : > { %v4488_v42 = vpack.c.bf16 %v4351_v51, %v4351_v51 }
 0x704   : > { %v4436_v33 = vpop.permute.xlu0 %4435 }
 0x705   : > { %4520 = vrot.lane.b32.xlu2 %v4488_v42, %s6991_s30 }
 0x706   : > { %v4438_v3 = vpop.permute.xlu1 %4437 }
 0x707   : > { %2762 = vrot.lane.b32.xlu1 %v2724_v24, %s6993_s14  ;;  %4465 = vmatpush.bf16.msrb.mxu1 %v4438_v3 }
 0x709   : > { %3592 = vmatmul.bf16.gmra.mxu1 %v3504_v18 }
 0x70a   : > { %v4353_v5 = vpop.f32.mrf.mxu0 }
 0x70b   : > { %v4489_v34 = vpack.c.bf16 %v4353_v5, %v4353_v5  ;;  %4466 = vmatpush.bf16.msrb.mxu1 %v4436_v33 }
 0x70d   : > { %2756 = vrot.lane.b32.xlu2 %v2721_v7, %s6993_s14  ;;  %4522 = vrot.lane.b32.xlu0 %v4489_v34, %s6991_s30 }
 0x70f   : > { %3649 = vrot.lane.b32.xlu1 %v3610_v50, %s6992_s11 }
 0x712   : > { %v4356_v27 = vpop.f32.mrf.mxu0  ;;  %v4197_v38 = vpop.xlane.xlu2 %4196 }
 0x713   : > { %v4490_v45 = vpack.c.bf16 %v4356_v27, %v4356_v27  ;;  %6709 = vrcp.f32 %v4197_v38 }
 0x715   : > { %4524 = vrot.lane.b32.xlu2 %v4490_v45, %s6991_s30  ;;  %3639 = vrot.lane.b32.xlu0 %v3605_v63, %s6992_s11  ;;  %v6116_v45 = vld [vmem:[#allocation15 + $0x30] sm:$0xff] }
 0x716   : > { %4718 = vmatpush.bf16.msrb.mxu2 %v6116_v45 }
 0x717   : > { %2766 = vrot.lane.b32.xlu1 %v2726_v52, %s6993_s14 }
 0x718   : > { %v8603_v9 = vpop.f32.mrf.mxu1 }
 0x719   : > { %3597 = vmatmul.bf16.gmra.mxu1 %v3505_v57  ;;  %v6710_v61 = vpop.eup %6709 }
 0x71a   : > { %v4358_v60 = vpop.f32.mrf.mxu0  ;;  %v8588_v21 = vpop.xlane.xlu2 %4202  ;;  %v4233_v35 = vmul.f32 %v6710_v61, %v8500_v26  ;;  %4719 = vmatpush.bf16.msrb.mxu2 %v6115_v8 }
 0x71b   : > { %v4491_v39 = vpack.c.bf16 %v4358_v60, %v4358_v60 }
 0x71c   : > { %v4249_v54 = vpack.c.bf16 %v4233_v35, %v4233_v35 }
 0x71d   : > { %2760 = vrot.lane.b32.xlu2 %v2723_v11, %s6993_s14  ;;  %4526 = vrot.lane.b32.xlu0 %v4491_v39, %s6991_s30  ;;  %v6113_v39 = vld [vmem:[#allocation15 + $0x18] sm:$0xff] }
 0x71e   : > { %v4382_v26 = vunpack.c.l.b16 %v4249_v54 }
 0x720   : > { %v8612_v49 = vpop.f32.mrf.mxu1 }
 0x722   : > { %v4361_v36 = vpop.f32.mrf.mxu0  ;;  %v2753_v31 = vpop.permute.xlu2 %2752 }
 0x723   : > { %v4492_v4 = vpack.c.bf16 %v4361_v36, %v4361_v36  ;;  %2800 = vst.msk [vmem:[#allocation5 + $0x4] sm:$0xf] %vm2798_vm3, %v2753_v31  ;;  %v6111_v31 = vld [vmem:[#allocation15 + $0x8] sm:$0xff] }
 0x725   : > { %4528 = vrot.lane.b32.xlu2 %v4492_v4, %s6991_s30  ;;  %3643 = vrot.lane.b32.xlu0 %v3607_v32, %s6992_s11 }
 0x728   : > { %v8617_v33 = vpop.f32.mrf.mxu1 }
 0x729   : > { %4467 = vmatmul.bf16.vlgmr.msrb.gmra.mxu1 %v4387_v47  ;;  %v2730_v54 = vpack.c.bf16 %v8617_v33, %v8617_v33 }
 0x72a   : > { %v4363_v53 = vpop.f32.mrf.mxu0 }
 0x72b   : > { %v4493_v41 = vpack.c.bf16 %v4363_v53, %v4363_v53 }
 0x72d   : > { %2764 = vrot.lane.b32.xlu2 %v2725_v59, %s6993_s14  ;;  %4530 = vrot.lane.b32.xlu0 %v4493_v41, %s6991_s30 }
 0x72f   : > { %v4195_v23 = vpop.xlane.xlu0 %4194 }
 0x730   : > { %6711 = vrcp.f32 %v4195_v23  ;;  %v8622_v27 = vpop.f32.mrf.mxu1 }
 0x731   : > { %v4199_v51 = vpop.xlane.xlu1 %4198 }
 0x732   : > { %v4366_v17 = vpop.f32.mrf.mxu0 }
 0x733   : > { %v4494_v25 = vpack.c.bf16 %v4366_v17, %v4366_v17  ;;  %v2728_v17 = vpack.c.bf16 %v8603_v9, %v8603_v9 }
 0x735   : > { %4532 = vrot.lane.b32.xlu2 %v4494_v25, %s6991_s30  ;;  %3647 = vrot.lane.b32.xlu0 %v3609_v28, %s6992_s11 }
 0x736   : > { %v6712_v14 = vpop.eup %6711 }
 0x737   : > { %v4201_v42 = vpop.xlane.xlu0 %4200  ;;  %v4232_v44 = vmul.f32 %v6712_v14, %v8526_v12 }
 0x738   : > { %6713 = vrcp.f32 %v4201_v42  ;;  %v8628_v10 = vpop.f32.mrf.mxu1 }
 0x739   : > { %v4248_v24 = vpack.c.bf16 %v4232_v44, %v4232_v44  ;;  %6715 = vrcp.f32 %v4199_v51  ;;  %v4205_v22 = vpop.xlane.xlu1 %4204  ;;  %v2732_v33 = vpack.c.bf16 %v8628_v10, %v8628_v10  ;;  %v2731_v10 = vpack.c.bf16 %v8622_v27, %v8622_v27 }
 0x73a   : > { %v4368_v3 = vpop.f32.mrf.mxu0  ;;  %6717 = vrcp.f32 %v4205_v22 }
 0x73b   : > { %v4495_v18 = vpack.c.bf16 %v4368_v3, %v4368_v3  ;;  %v4381_v16 = vunpack.c.l.b16 %v4248_v24  ;;  %6719 = vrcp.f32 %v8588_v21  ;;  %v6114_v21 = vld [vmem:[#allocation15 + $0x20] sm:$0xff] }
 0x73c   : > { %4720 = vmatpush.bf16.msrb.mxu2 %v6114_v21 }
 0x73d   : > { %2768 = vrot.lane.b32.xlu2 %v2727_v6, %s6993_s14  ;;  %4534 = vrot.lane.b32.xlu0 %v4495_v18, %s6991_s30  ;;  %v4388_v62 = vpack.c.b16 %v4382_v26, %v4381_v16 }
 0x73e   : > { %v6714_v5 = vpop.eup %6713 }
 0x73f   : > { %4472 = vmatmul.bf16.gmra.mxu1 %v4388_v62  ;;  %v6716_v7 = vpop.eup %6715  ;;  %v4235_v12 = vmul.f32 %v6714_v5, %v8535_v1 }
 0x740   : > { %v4234_v34 = vmul.f32 %v6716_v7, %v8531_v30  ;;  %v6718_v1 = vpop.eup %6717  ;;  %4721 = vmatpush.bf16.msrb.mxu2 %v6113_v39 }
 0x741   : > { %v4251_v48 = vpack.c.bf16 %v4235_v12, %v4235_v12  ;;  %v6720_v30 = vpop.eup %6719  ;;  %v4237_v20 = vmul.f32 %v6718_v1, %v8540_v58  ;;  %v2729_v1 = vpack.c.bf16 %v8612_v49, %v8612_v49 }
 0x742   : > { %v4250_v50 = vpack.c.bf16 %v4234_v34, %v4234_v34  ;;  %v4236_v56 = vmul.f32 %v6720_v30, %v8508_v37  ;;  %v8632_v37 = vpop.f32.mrf.mxu1 }
 0x743   : > { %v4384_v29 = vunpack.c.l.b16 %v4251_v48  ;;  %v4253_v60 = vpack.c.bf16 %v4237_v20, %v4237_v20 }
 0x744   : > { %v4383_v46 = vunpack.c.l.b16 %v4250_v50  ;;  %v4252_v11 = vpack.c.bf16 %v4236_v56, %v4236_v56  ;;  %4722 = vmatpush.bf16.msrb.mxu2 %v6112_v43 }
 0x745   : > { %v4386_v40 = vunpack.c.l.b16 %v4253_v60 }
 0x746   : > { %v4389_v63 = vpack.c.b16 %v4384_v29, %v4383_v46  ;;  %v4385_v58 = vunpack.c.l.b16 %v4252_v11 }
 0x748   : > { %v4390_v19 = vpack.c.b16 %v4386_v40, %v4385_v58  ;;  %4723 = vmatpush.bf16.msrb.mxu2 %v6111_v31 }
 0x74a   : > { %v2751_v38 = vpop.permute.xlu0 %2750 }
 0x74b   : > { %2799 = vst.msk [vmem:[#allocation5] sm:$0xf] %vm2798_vm3, %v2751_v38 }
 0x74c   : > { %4724 = vmatpush.bf16.msrb.mxu2 %v6110_v15 }
 0x74f   : > { %4477 = vmatmul.bf16.gmra.mxu1 %v4389_v63 }
 0x751   : > { %v3636_v52 = vpop.permute.xlu1 %3635 }
 0x752   : > { %v3638_v57 = vpop.permute.xlu0 %3637  ;;  %3684 = vst.msk [vmem:[#allocation5] sm:$0xf] %vm3683_vm4, %v3636_v52 }
 0x753   : > { %3685 = vst.msk [vmem:[#allocation5 + $0x4] sm:$0xf] %vm3683_vm4, %v3638_v57 }
 0x759   : > { %v2755_v13 = vpop.permute.xlu1 %2754 }
 0x75a   : > { %2801 = vst.msk [vmem:[#allocation5 + $0x8] sm:$0xf] %vm2798_vm3, %v2755_v13  ;;  %v2733_v13 = vpack.c.bf16 %v8632_v37, %v8632_v37 }
 0x75f   : > { %v4521_v36 = vpop.permute.xlu2 %4520  ;;  %4482 = vmatmul.bf16.gmra.mxu1 %v4390_v19 }
 0x760   : > { %4569 = vst.msk [vmem:[#allocation5] sm:$0xf] %vm4568_vm5, %v4521_v36 }
 0x761   : > { %v3642_v32 = vpop.permute.xlu1 %3641 }
 0x766   : > { %v3583_v4 = vpop.f32.mrf.mxu1 }
 0x767   : > { %v3611_v0 = vpack.c.bf16 %v3583_v4, %v3583_v4  ;;  %v2757_v55 = vpop.permute.xlu2 %2756 }
 0x768   : > { %2802 = vst.msk [vmem:[#allocation5 + $0xc] sm:$0xf] %vm2798_vm3, %v2757_v55 }
 0x769   : > { %3687 = vst.msk [vmem:[#allocation5 + $0xc] sm:$0xf] %vm3683_vm4, %v3642_v32  ;;  %3651 = vrot.lane.b32.xlu0 %v3611_v0, %s6992_s11  ;;  %v2759_v47 = vpop.permute.xlu1 %2758 }
 0x76a   : > { %2803 = vst.msk [vmem:[#allocation5 + $0x10] sm:$0xf] %vm2798_vm3, %v2759_v47 }
 0x76e   : > { %v3585_v53 = vpop.f32.mrf.mxu1 }
 0x76f   : > { %v3612_v59 = vpack.c.bf16 %v3585_v53, %v3585_v53  ;;  %v4525_v41 = vpop.permute.xlu2 %4524  ;;  %v8705_v53 = vld [vmem:[%s8800_s6] ss:$0 sm:$0xff] }
 0x771   : > { %3653 = vrot.lane.b32.xlu1 %v3612_v59, %s6992_s11  ;;  %v3646_v23 = vpop.permute.xlu1 %3645 }
 0x776   : > { %v8640_v61 = vpop.f32.mrf.mxu1 }
 0x777   : > { %v2761_v28 = vpop.permute.xlu2 %2760  ;;  %v3613_v8 = vpack.c.bf16 %v8640_v61, %v8640_v61 }
 0x778   : > { %2804 = vst.msk [vmem:[#allocation5 + $0x14] sm:$0xf] %vm2798_vm3, %v2761_v28 }
 0x779   : > { %3689 = vst.msk [vmem:[#allocation5 + $0x14] sm:$0xf] %vm3683_vm4, %v3646_v23  ;;  %2770 = vrot.lane.b32.xlu1 %v2728_v17, %s6993_s14  ;;  %v2763_v25 = vpop.permute.xlu1 %2762 }
 0x77a   : > { %2805 = vst.msk [vmem:[#allocation5 + $0x18] sm:$0xf] %vm2798_vm3, %v2763_v25 }
 0x77e   : > { %v3590_v35 = vpop.f32.mrf.mxu1 }
 0x77f   : > { %v4523_v14 = vpop.permute.xlu0 %4522  ;;  %v3614_v51 = vpack.c.bf16 %v3590_v35, %v3590_v35  ;;  %v4529_v42 = vpop.permute.xlu2 %4528 }
 0x780   : > { %4570 = vst.msk [vmem:[#allocation5 + $0x4] sm:$0xf] %vm4568_vm5, %v4523_v14 }
 0x781   : > { %3657 = vrot.lane.b32.xlu1 %v3614_v51, %s6992_s11  ;;  %v3650_v44 = vpop.permute.xlu1 %3649 }
 0x786   : > { %v8650_v9 = vpop.f32.mrf.mxu1 }
 0x787   : > { %v3640_v24 = vpop.permute.xlu0 %3639  ;;  %v2765_v3 = vpop.permute.xlu2 %2764  ;;  %v6102_v6 = vld [vmem:[#allocation5] sm:$0xff]  ;;  %v3615_v11 = vpack.c.bf16 %v8650_v9, %v8650_v9 }
 0x788   : > { %3686 = vst.msk [vmem:[#allocation5 + $0x8] sm:$0xf] %vm3683_vm4, %v3640_v24  ;;  %4725 = vmatmul.bf16.vlgmr.msrb.gmra.mxu2 %v6102_v6 }
 0x789   : > { %4571 = vst.msk [vmem:[#allocation5 + $0x8] sm:$0xf] %vm4568_vm5, %v4525_v41  ;;  %2774 = vrot.lane.b32.xlu1 %v2730_v54, %s6993_s14  ;;  %v2767_v18 = vpop.permute.xlu1 %2766 }
 0x78a   : > { %2806 = vst.msk [vmem:[#allocation5 + $0x1c] sm:$0xf] %vm2798_vm3, %v2765_v3 }
 0x78b   : > { %3691 = vst.msk [vmem:[#allocation5 + $0x1c] sm:$0xf] %vm3683_vm4, %v3650_v44 }
 0x78c   : > { %2807 = vst.msk [vmem:[#allocation5 + $0x20] sm:$0xf] %vm2798_vm3, %v2767_v18 }
 0x78e   : > { %v3595_v16 = vpop.f32.mrf.mxu1 }
 0x78f   : > { %v4527_v26 = vpop.permute.xlu0 %4526  ;;  %v3616_v62 = vpack.c.bf16 %v3595_v16, %v3595_v16  ;;  %v4533_v5 = vpop.permute.xlu2 %4532 }
 0x790   : > { %4572 = vst.msk [vmem:[#allocation5 + $0xc] sm:$0xf] %vm4568_vm5, %v4527_v26 }
 0x791   : > { %3661 = vrot.lane.b32.xlu1 %v3616_v62, %s6992_s11 }
 0x796   : > { %v3598_v7 = vpop.f32.mrf.mxu1 }
 0x797   : > { %v3644_v12 = vpop.permute.xlu0 %3643  ;;  %v2769_v34 = vpop.permute.xlu2 %2768  ;;  %v6103_v22 = vld [vmem:[#allocation5 + $0x8] sm:$0xff]  ;;  %v3617_v19 = vpack.c.bf16 %v3598_v7, %v3598_v7 }
 0x798   : > { %3688 = vst.msk [vmem:[#allocation5 + $0x10] sm:$0xf] %vm3683_vm4, %v3644_v12  ;;  %4730 = vmatmul.bf16.gmra.mxu2 %v6103_v22 }
 0x799   : > { %4573 = vst.msk [vmem:[#allocation5 + $0x10] sm:$0xf] %vm4568_vm5, %v4529_v42  ;;  %2778 = vrot.lane.b32.xlu1 %v2732_v33, %s6993_s14 }
 0x79a   : > { %2808 = vst.msk [vmem:[#allocation5 + $0x24] sm:$0xf] %vm2798_vm3, %v2769_v34 }
 0x79e   : > { %v3600_v48 = vpop.f32.mrf.mxu1 }
 0x79f   : > { %v4531_v50 = vpop.permute.xlu0 %4530  ;;  %v3618_v29 = vpack.c.bf16 %v3600_v48, %v3600_v48 }
 0x7a0   : > { %4574 = vst.msk [vmem:[#allocation5 + $0x14] sm:$0xf] %vm4568_vm5, %v4531_v50 }
 0x7a1   : > { %3665 = vrot.lane.b32.xlu1 %v3618_v29, %s6992_s11 }
 0x7a6   : > { %v4468_v2 = vpop.f32.mrf.mxu1 }
 0x7a7   : > { %v3648_v38 = vpop.permute.xlu0 %3647  ;;  %v4496_v46 = vpack.c.bf16 %v4468_v2, %v4468_v2  ;;  %v6104_v63 = vld [vmem:[#allocation5 + $0x10] sm:$0xff] }
 0x7a8   : > { %3690 = vst.msk [vmem:[#allocation5 + $0x18] sm:$0xf] %vm3683_vm4, %v3648_v38  ;;  %4735 = vmatmul.bf16.gmra.mxu2 %v6104_v63 }
 0x7a9   : > { %4575 = vst.msk [vmem:[#allocation5 + $0x18] sm:$0xf] %vm4568_vm5, %v4533_v5  ;;  %4536 = vrot.lane.b32.xlu2 %v4496_v46, %s6991_s30 }
 0x7ae   : > { %v4470_v45 = vpop.f32.mrf.mxu1 }
 0x7af   : > { %v4535_v30 = vpop.permute.xlu0 %4534  ;;  %v4497_v20 = vpack.c.bf16 %v4470_v45, %v4470_v45 }
 0x7b0   : > { %4576 = vst.msk [vmem:[#allocation5 + $0x1c] sm:$0xf] %vm4568_vm5, %v4535_v30 }
 0x7b1   : > { %2772 = vrot.lane.b32.xlu2 %v2729_v1, %s6993_s14  ;;  %4538 = vrot.lane.b32.xlu0 %v4497_v20, %s6991_s30 }
 0x7b7   : > { %v6105_v52 = vld [vmem:[#allocation5 + $0x18] sm:$0xff] }
 0x7b8   : > { %4740 = vmatmul.bf16.gmra.mxu2 %v6105_v52 }
 0x7b9   : > { %3655 = vrot.lane.b32.xlu0 %v3613_v8, %s6992_s11 }
 0x7bc   : > { %v4473_v57 = vpop.f32.mrf.mxu1 }
 0x7bd   : > { %v4498_v56 = vpack.c.bf16 %v4473_v57, %v4473_v57 }
 0x7bf   : > { %4540 = vrot.lane.b32.xlu2 %v4498_v56, %s6991_s30 }
 0x7c4   : > { %v4475_v49 = vpop.f32.mrf.mxu1 }
 0x7c5   : > { %v4499_v60 = vpack.c.bf16 %v4475_v49, %v4475_v49 }
 0x7c7   : > { %2776 = vrot.lane.b32.xlu2 %v2731_v10, %s6993_s14  ;;  %4542 = vrot.lane.b32.xlu0 %v4499_v60, %s6991_s30 }
 0x7cc   : > { %v4478_v21 = vpop.f32.mrf.mxu1 }
 0x7cd   : > { %v4500_v40 = vpack.c.bf16 %v4478_v21, %v4478_v21 }
 0x7cf   : > { %3659 = vrot.lane.b32.xlu0 %v3615_v11, %s6992_s11  ;;  %4544 = vrot.lane.b32.xlu2 %v4500_v40, %s6991_s30 }
 0x7d4   : > { %v4480_v39 = vpop.f32.mrf.mxu1 }
 0x7d5   : > { %v4501_v58 = vpack.c.bf16 %v4480_v39, %v4480_v39 }
 0x7d7   : > { %2780 = vrot.lane.b32.xlu2 %v2733_v13, %s6993_s14  ;;  %4546 = vrot.lane.b32.xlu0 %v4501_v58, %s6991_s30 }
 0x7db   : > { %v3652_v27 = vpop.permute.xlu0 %3651 }
 0x7dc   : > { %3692 = vst.msk [vmem:[#allocation5 + $0x20] sm:$0xf] %vm3683_vm4, %v3652_v27  ;;  %v4483_v43 = vpop.f32.mrf.mxu1 }
 0x7dd   : > { %v4502_v36 = vpack.c.bf16 %v4483_v43, %v4483_v43 }
 0x7df   : > { %3663 = vrot.lane.b32.xlu0 %v3617_v19, %s6992_s11  ;;  %4548 = vrot.lane.b32.xlu2 %v4502_v36, %s6991_s30 }
 0x7e3   : > { %v3654_v31 = vpop.permute.xlu1 %3653 }
 0x7e4   : > { %3693 = vst.msk [vmem:[#allocation5 + $0x24] sm:$0xf] %vm3683_vm4, %v3654_v31  ;;  %v4485_v32 = vpop.f32.mrf.mxu1 }
 0x7e5   : > { %v4503_v37 = vpack.c.bf16 %v4485_v32, %v4485_v32 }
 0x7e7   : > { %4550 = vrot.lane.b32.xlu0 %v4503_v37, %s6991_s30 }
 0x7eb   : > { %v2771_v15 = vpop.permute.xlu1 %2770 }
 0x7ec   : > { %2809 = vst.msk [vmem:[#allocation5 + $0x28] sm:$0xf] %vm2798_vm3, %v2771_v15 }
 0x7f3   : > { %v3658_v4 = vpop.permute.xlu1 %3657 }
 0x7fb   : > { %v2775_v0 = vpop.permute.xlu1 %2774 }
 0x7fc   : > { %2811 = vst.msk [vmem:[#allocation5 + $0x30] sm:$0xf] %vm2798_vm3, %v2775_v0 }
 0x803   : > { %v3662_v55 = vpop.permute.xlu1 %3661  ;;  %v4537_v47 = vpop.permute.xlu2 %4536 }
 0x804   : > { %4577 = vst.msk [vmem:[#allocation5 + $0x20] sm:$0xf] %vm4568_vm5, %v4537_v47 }
 0x80b   : > { %v2779_v59 = vpop.permute.xlu1 %2778  ;;  %v2773_v41 = vpop.permute.xlu2 %2772 }
 0x80c   : > { %2813 = vst.msk [vmem:[#allocation5 + $0x38] sm:$0xf] %vm2798_vm3, %v2779_v59  ;;  %v4726_v23 = vpop.f32.mrf.mxu2 }
 0x80d   : > { %2810 = vst.msk [vmem:[#allocation5 + $0x2c] sm:$0xf] %vm2798_vm3, %v2773_v41  ;;  %v4727_v61 = vadd.f32 %v8705_v53, %v4726_v23 }
 0x80e   : > { %3695 = vst.msk [vmem:[#allocation5 + $0x2c] sm:$0xf] %vm3683_vm4, %v3658_v4 }
 0x80f   : > { %4766 = vst [vmem:[%s8713_s13] sm:$0xff] %v4727_v61 }
 0x813   : > { %v3666_v26 = vpop.permute.xlu1 %3665 }
 0x814   : > { %v4728_v17 = vpop.f32.mrf.mxu2 }
 0x815   : > { %v4729_v28 = vadd.f32 %v8705_v53, %v4728_v17 }
 0x817   : > { %4767 = vst [vmem:[%s8713_s13 + $0x8] sm:$0xff] %v4729_v28 }
 0x819   : > { %v4541_v25 = vpop.permute.xlu2 %4540 }
 0x81c   : > { %v4731_v35 = vpop.f32.mrf.mxu2 }
 0x81d   : > { %v4732_v14 = vadd.f32 %v8705_v53, %v4731_v35 }
 0x81f   : > { %4768 = vst [vmem:[%s8713_s13 + $0x10] sm:$0xff] %v4732_v14 }
 0x821   : > { %v2777_v51 = vpop.permute.xlu2 %2776 }
 0x822   : > { %2812 = vst.msk [vmem:[#allocation5 + $0x34] sm:$0xf] %vm2798_vm3, %v2777_v51 }
 0x823   : > { %3697 = vst.msk [vmem:[#allocation5 + $0x34] sm:$0xf] %vm3683_vm4, %v3662_v55  ;;  %v4539_v42 = vpop.permute.xlu0 %4538 }
 0x824   : > { %4578 = vst.msk [vmem:[#allocation5 + $0x24] sm:$0xf] %vm4568_vm5, %v4539_v42  ;;  %v4733_v44 = vpop.f32.mrf.mxu2 }
 0x825   : > { %v4734_v9 = vadd.f32 %v8705_v53, %v4733_v44 }
 0x827   : > { %4769 = vst [vmem:[%s8713_s13 + $0x18] sm:$0xff] %v4734_v9 }
 0x829   : > { %v4545_v54 = vpop.permute.xlu2 %4544 }
 0x82b   : > { %v3656_v24 = vpop.permute.xlu0 %3655  ;;  %v6106_v3 = vld [vmem:[#allocation5 + $0x20] sm:$0xff] }
 0x82c   : > { %3694 = vst.msk [vmem:[#allocation5 + $0x28] sm:$0xf] %vm3683_vm4, %v3656_v24  ;;  %v4736_v6 = vpop.f32.mrf.mxu2  ;;  %4745 = vmatmul.bf16.gmra.mxu2 %v6106_v3 }
 0x82d   : > { %4579 = vst.msk [vmem:[#allocation5 + $0x28] sm:$0xf] %vm4568_vm5, %v4541_v25  ;;  %v4737_v18 = vadd.f32 %v8705_v53, %v4736_v6 }
 0x82f   : > { %4770 = vst [vmem:[%s8713_s13 + $0x20] sm:$0xff] %v4737_v18 }
 0x831   : > { %v2781_v16 = vpop.permute.xlu2 %2780 }
 0x832   : > { %2814 = vst.msk [vmem:[#allocation5 + $0x3c] sm:$0xf] %vm2798_vm3, %v2781_v16 }
 0x833   : > { %3699 = vst.msk [vmem:[#allocation5 + $0x3c] sm:$0xf] %vm3683_vm4, %v3666_v26 }
 0x834   : > { %v4738_v62 = vpop.f32.mrf.mxu2 }
 0x835   : > { %v4739_v5 = vadd.f32 %v8705_v53, %v4738_v62 }
 0x837   : > { %4771 = vst [vmem:[%s8713_s13 + $0x28] sm:$0xff] %v4739_v5 }
 0x839   : > { %v4543_v7 = vpop.permute.xlu0 %4542  ;;  %v4549_v46 = vpop.permute.xlu2 %4548 }
 0x83a   : > { %4580 = vst.msk [vmem:[#allocation5 + $0x2c] sm:$0xf] %vm4568_vm5, %v4543_v7 }
 0x83c   : > { %v4741_v33 = vpop.f32.mrf.mxu2 }
 0x83d   : > { %v4742_v12 = vadd.f32 %v8705_v53, %v4741_v33 }
 0x83f   : > { %4772 = vst [vmem:[%s8713_s13 + $0x30] sm:$0xff] %v4742_v12 }
 0x841   : > { %v3660_v34 = vpop.permute.xlu0 %3659  ;;  %v6107_v22 = vld [vmem:[#allocation5 + $0x28] sm:$0xff] }
 0x842   : > { %3696 = vst.msk [vmem:[#allocation5 + $0x30] sm:$0xf] %vm3683_vm4, %v3660_v34  ;;  %4750 = vmatmul.bf16.gmra.mxu2 %v6107_v22 }
 0x843   : > { %4581 = vst.msk [vmem:[#allocation5 + $0x30] sm:$0xf] %vm4568_vm5, %v4545_v54 }
 0x844   : > { %v4743_v48 = vpop.f32.mrf.mxu2 }
 0x845   : > { %v4744_v50 = vadd.f32 %v8705_v53, %v4743_v48 }
 0x847   : > { %4773 = vst [vmem:[%s8713_s13 + $0x38] sm:$0xff] %v4744_v50 }
 0x849   : > { %v4547_v29 = vpop.permute.xlu0 %4546 }
 0x84a   : > { %4582 = vst.msk [vmem:[#allocation5 + $0x34] sm:$0xf] %vm4568_vm5, %v4547_v29 }
 0x851   : > { %v3664_v2 = vpop.permute.xlu0 %3663  ;;  %v6108_v38 = vld [vmem:[#allocation5 + $0x30] sm:$0xff] }
 0x852   : > { %3698 = vst.msk [vmem:[#allocation5 + $0x38] sm:$0xf] %vm3683_vm4, %v3664_v2  ;;  %4755 = vmatmul.bf16.gmra.mxu2 %v6108_v38 }
 0x853   : > { %4583 = vst.msk [vmem:[#allocation5 + $0x38] sm:$0xf] %vm4568_vm5, %v4549_v46 }
 0x859   : > { %v4551_v63 = vpop.permute.xlu0 %4550 }
 0x85a   : > { %4584 = vst.msk [vmem:[#allocation5 + $0x3c] sm:$0xf] %vm4568_vm5, %v4551_v63 }
 0x861   : > { %v6109_v45 = vld [vmem:[#allocation5 + $0x38] sm:$0xff] }
 0x862   : > { %4760 = vmatmul.bf16.gmra.mxu2 %v6109_v45 }
 0x8af   : > { %v4746_v1 = vpop.f32.mrf.mxu2 }
 0x8b0   : > { %v4747_v30 = vadd.f32 %v8705_v53, %v4746_v1 }
 0x8b2   : > { %4774 = vst [vmem:[%s8713_s13 + $0x40] sm:$0xff] %v4747_v30 }
 0x8b7   : > { %v4748_v20 = vpop.f32.mrf.mxu2 }
 0x8b8   : > { %v4749_v8 = vadd.f32 %v8705_v53, %v4748_v20 }
 0x8ba   : > { %4775 = vst [vmem:[%s8713_s13 + $0x48] sm:$0xff] %v4749_v8 }
 0x8c5   : > { %v4751_v52 = vpop.f32.mrf.mxu2 }
 0x8c6   : > { %v4752_v57 = vadd.f32 %v8705_v53, %v4751_v52 }
 0x8c8   : > { %4776 = vst [vmem:[%s8713_s13 + $0x50] sm:$0xff] %v4752_v57 }
 0x8cd   : > { %v4753_v56 = vpop.f32.mrf.mxu2 }
 0x8ce   : > { %v4754_v49 = vadd.f32 %v8705_v53, %v4753_v56 }
 0x8d0   : > { %4777 = vst [vmem:[%s8713_s13 + $0x58] sm:$0xff] %v4754_v49 }
 0x8d5   : > { %v4756_v10 = vpop.f32.mrf.mxu2 }
 0x8d6   : > { %v4757_v60 = vadd.f32 %v8705_v53, %v4756_v10 }
 0x8d8   : > { %4778 = vst [vmem:[%s8713_s13 + $0x60] sm:$0xff] %v4757_v60 }
 0x8dd   : > { %v4758_v21 = vpop.f32.mrf.mxu2 }
 0x8de   : > { %v4759_v11 = vadd.f32 %v8705_v53, %v4758_v21 }
 0x8e0   : > { %4779 = vst [vmem:[%s8713_s13 + $0x68] sm:$0xff] %v4759_v11 }
 0x8e5   : > { %v4761_v40 = vpop.f32.mrf.mxu2 }
 0x8e6   : > { %v4762_v39 = vadd.f32 %v8705_v53, %v4761_v40 }
 0x8e8   : > { %4780 = vst [vmem:[%s8713_s13 + $0x70] sm:$0xff] %v4762_v39 }
 0x8ed   : > { %v4763_v13 = vpop.f32.mrf.mxu2 }
 0x8ee   : > { %v4764_v58 = vadd.f32 %v8705_v53, %v4763_v13 }
 0x8f0   : > { %4781 = vst [vmem:[%s8713_s13 + $0x78] sm:$0xff] %v4764_v58 }
 0x8f1   : > { %6928 = shalt.err (!%p6925_p9)
}
 0x8f2   : > { %s6994_s26 = smov 128   ;;  %s6995_s30 = smov 8  }
 0x8f3   : > { %6385 = dma.vmem_to_hbm [thread:$0]  (%p7132_p3), %s4797_s15, 2048, %s4799_s5, %s4783_s19, %s6994_s26, %s6994_s26, %s6995_s30  }
 0x8f4 PF: > { %s4813_s11 = sand.u32 1, %s6971_s24   ;;  %p8908_p12 = scmp.ge.s32.totalorder %s6983_s27, 2 }
 0x8f5   : > { %s4814_s14 = scalar_lea.sflag [#allocation8], %s4813_s11 }
 0x8f6   : > { %p6408_p13 = pnand %p8908_p12, %p7071_p6 }
 0x8f8   : > { %p6409_p0 = pneg %p6408_p13 }
 0x8fa   : > { %6966 = dma.done.wait (%p6409_p0), %s4814_s14, 2048  }
 0x8fb   : > { %6968 = vsyncadd (%p6409_p0), %s4814_s14, 4294965248  ;;  %s8909_s3 = sld [smem:[#allocation24_spill]]  ;;  %p25_p5 = scmp.ge.s32.totalorder %s7122_s21, 4  }
 0x8fc   : > { %s8910_s26 = sld [smem:[#allocation25_spill]]  ;;  %s8911_s24 = smov %s6975_s25 }
 0x8fd   : > { %s8913_s27 = smov %s7122_s21  ;;  %27 = sbr.rel (!%p25_p5) target bundleno = 14 (0xe), region = 122 }
 0x901   : > { %s8912_s25 = smov %s8909_s3 }
 0x902   :  { %4820 = vsyncpa [#allocation7], 1 }
 0x903   :  { %4822 = vsyncpa [#allocation7 + $0x1], 1 }
 0x904   :  { %4823 = vsyncpa [#allocation10], 1 }
 0x905   :  { %4825 = vsyncpa [#allocation10 + $0x1], 1 }
 0x906   :  { %4826 = vsyncpa [#allocation13], 1 }
 0x907   :  { %4827 = vsyncpa [#allocation16], 1 }
 0x908   :  { %4828 = vsyncpa [#allocation8], 1 }
 0x909   :  { %4830 = vsyncpa [#allocation8 + $0x1], 1 }

</bundles_post_ra>
